<compile_context>
chip_gen: v7x
topology: tpu7x:2x2x1
jax: 0.10.0
libtpu: 0.0.40
codegen_flags: <defaults>
</compile_context>

<pallas_src>
import functools

import numpy as np

import jax
import jax.numpy as jnp
from jax import lax
from jax.experimental import pallas as pl
from jax.experimental.pallas import tpu as pltpu

Z_SIZE = 100
CONV_DIM = 4
N_RES_BLOCKS = 3
N_DECONV = 4
C0 = (CONV_DIM // 2) ** N_DECONV // 2      # = 8, conv_initial_channels
IMG_SIZE = 2                               # spatial size through the res blocks
IMG_OUT = 32                               # final spatial size
BN_EPS = 1e-5


# --------------------------- fused whole-network kernel ---------------------

def _mm(x, w_ref):
    """bf16 MXU matmul with f32 accumulation (activation cast in-kernel)."""
    return jnp.dot(x.astype(jnp.bfloat16), w_ref[...],
                   preferred_element_type=jnp.float32)


def _bn(y, pool, gamma, beta):
    """Training-mode BatchNorm on an (N, C*H*W) NCHW-flat activation.

    `pool` is a precomputed (D, D) matrix with 1/(H*W) in every (col, col)
    position that shares a channel, so  rowsum(y) @ pool / N  is the
    per-channel batch mean already broadcast to every column of that channel.
    All math in f32; the two (1, D) x (D, D) stat matmuls are negligible.
    """
    inv_n = 1.0 / y.shape[0]
    mean = jnp.dot(jnp.sum(y, axis=0, keepdims=True), pool,
                   preferred_element_type=jnp.float32) * inv_n
    d = y - mean
    var = jnp.dot(jnp.sum(d * d, axis=0, keepdims=True), pool,
                  preferred_element_type=jnp.float32) * inv_n
    return d * lax.rsqrt(var + BN_EPS) * gamma + beta


def _generator_kernel(*refs, n_res_blocks):
    it = iter(refs[:-1])
    o_ref = refs[-1]

    z = next(it)[...].astype(jnp.float32)
    fc_w = next(it)
    fc_b = next(it)[...]
    res_pool = next(it)[...]

    # fc_1 (Linear): output columns are already NCHW-flat (c, h, w).
    h = _mm(z, fc_w) + fc_b                                   # (N, 32)

    # Residual blocks: h = BN(conv2(relu(BN(conv1(h))))) + h
    for _ in range(n_res_blocks):
        w1 = next(it); g1 = next(it)[...]; b1 = next(it)[...]
        w2 = next(it); g2 = next(it)[...]; b2 = next(it)[...]
        y = jnp.maximum(_bn(_mm(h, w1), res_pool, g1, b1), 0.0)
        h = _bn(_mm(y, w2), res_pool, g2, b2) + h

    # Decoder (exact Generator.forward control flow):
    # relu(CT0) -> relu(BN0)
    w = next(it); g = next(it)[...]; b = next(it)[...]; p = next(it)[...]
    h = jnp.maximum(_mm(h, w), 0.0)                           # (N, 4*4*4)
    h = jnp.maximum(_bn(h, p, g, b), 0.0)
    # relu(CT1) -> BN1
    w = next(it); g = next(it)[...]; b = next(it)[...]; p = next(it)[...]
    h = jnp.maximum(_mm(h, w), 0.0)                           # (N, 2*8*8)
    h = _bn(h, p, g, b)
    # tanh(CT2) -> BN2
    w = next(it); g = next(it)[...]; b = next(it)[...]; p = next(it)[...]
    h = jnp.tanh(_mm(h, w))                                   # (N, 1*16*16)
    h = _bn(h, p, g, b)
    # tanh(CT3)
    w = next(it)
    h = jnp.tanh(_mm(h, w))                                   # (N, 3*32*32)
    o_ref[...] = h.astype(o_ref.dtype)


def generator_forward(prepped_params, z):
    """z: (N, z_size) -> (N, 3, 32, 32).  One fused pallas_call for the net."""
    n = z.shape[0]
    d_out = 3 * IMG_OUT * IMG_OUT
    args = [z.astype(jnp.float32)] + list(prepped_params)
    kernel = functools.partial(_generator_kernel, n_res_blocks=N_RES_BLOCKS)
    out2d = pl.pallas_call(
        kernel,
        grid=(1,),
        in_specs=[pl.BlockSpec(a.shape, lambda i: (0, 0)) for a in args],
        out_specs=pl.BlockSpec((n, d_out), lambda i: (0, 0)),
        out_shape=jax.ShapeDtypeStruct((n, d_out), jnp.float32),
        compiler_params=pltpu.CompilerParams(dimension_semantics=("arbitrary",)),
    )(*args)
    # Output columns are NCHW-flat (c, h, w) -> this reshape is a free view.
    return out2d.reshape(n, 3, IMG_OUT, IMG_OUT)


# ------------------- one-time parameter prep (outside jit) ------------------

def _conv3x3_same_dense(w, hw):
    """(Co,Ci,3,3) Conv2d(stride=1,pad=1,bias=False) weight -> exact dense
    (Ci*hw*hw, Co*hw*hw) matrix on an hw x hw image, NCHW-flat both sides."""
    w_np = np.asarray(w, np.float32)
    co, ci, kh_sz, kw_sz = w_np.shape
    m = np.zeros((ci, hw, hw, co, hw, hw), np.float32)
    for ho in range(hw):
        for wo in range(hw):
            for hi in range(hw):
                kh = hi - ho + 1
                if not 0 <= kh < kh_sz:
                    continue
                for wi in range(hw):
                    kw = wi - wo + 1
                    if 0 <= kw < kw_sz:
                        m[:, hi, wi, :, ho, wo] = w_np[:, :, kh, kw].T
    return jnp.asarray(m.reshape(ci * hw * hw, co * hw * hw))


def _deconv4x4s2_dense(w, h_in):
    """(Ci,Co,4,4) ConvTranspose2d(k=4,s=2,p=1,bias=False) weight -> exact dense
    (Ci*h_in^2, Co*(2*h_in)^2) matrix, NCHW-flat both sides."""
    w_np = np.asarray(w, np.float32)
    ci, co, ksz, _ = w_np.shape
    h_out = 2 * h_in
    m = np.zeros((ci, h_in, h_in, co, h_out, h_out), np.float32)
    for kh in range(ksz):
        for kw in range(ksz):
            tap = w_np[:, :, kh, kw]                 # (Ci, Co)
            for hi in range(h_in):
                ho = 2 * hi + kh - 1                 # ho = s*hi - p + kh
                if not 0 <= ho < h_out:
                    continue
                for wi in range(h_in):
                    wo = 2 * wi + kw - 1
                    if 0 <= wo < h_out:
                        m[:, hi, wi, :, ho, wo] = tap
    return jnp.asarray(m.reshape(ci * h_in * h_in, co * h_out * h_out))


def _bn_pool(channels, hw_sq):
    """(D, D) per-channel pooling matrix (columns NCHW-flat, D = channels*hw_sq)."""
    return jnp.asarray(
        np.kron(np.eye(channels), np.ones((hw_sq, hw_sq)) / hw_sq),
        dtype=jnp.float32)


def _row(v):
    return jnp.asarray(v, jnp.float32).reshape(1, -1)


def prepare_generator_params(params):
    """One-time conversion of PyTorch-layout parameters into MXU-ready dense
    matrices (bf16 weights, f32 BN vectors / pooling matrices)."""
    hw = IMG_SIZE * IMG_SIZE
    prepped = [
        jnp.asarray(params["fc_w"], jnp.float32).T.astype(jnp.bfloat16),  # (z,32)
        _row(params["fc_b"]),
        _bn_pool(C0, hw),
    ]
    for blk in params["res"]:
        prepped += [
            _conv3x3_same_dense(blk["w1"], IMG_SIZE).astype(jnp.bfloat16),
            _row(jnp.repeat(blk["g1"], hw)), _row(jnp.repeat(blk["b1"], hw)),
            _conv3x3_same_dense(blk["w2"], IMG_SIZE).astype(jnp.bfloat16),
            _row(jnp.repeat(blk["g2"], hw)), _row(jnp.repeat(blk["b2"], hw)),
        ]
    h = IMG_SIZE
    for layer in params["dec"]:
        prepped.append(_deconv4x4s2_dense(layer["w"], h).astype(jnp.bfloat16))
        h *= 2
        if "g" in layer:                              # BatchNorm2d after this CT
            c_out = layer["w"].shape[1]
            prepped += [_row(jnp.repeat(layer["g"], h * h)),
                        _row(jnp.repeat(layer["b"], h * h)),
                        _bn_pool(c_out, h * h)]
    return tuple(prepped)


# --------------------------- parameter initialisation -----------------------

def init_generator_params(key, z_size=Z_SIZE):
    keys = iter(jax.random.split(key, 32))

    def nrm(shape, scale=0.05):
        return scale * jax.random.normal(next(keys), shape, jnp.float32)

    params = {
        "fc_w": nrm((C0 * IMG_SIZE * IMG_SIZE, z_size)),   # PyTorch Linear (out,in)
        "fc_b": nrm((C0 * IMG_SIZE * IMG_SIZE,)),
        "res": [],
        "dec": [],
    }
    for _ in range(N_RES_BLOCKS):
        params["res"].append({
            "w1": nrm((C0, C0, 3, 3)),
            "g1": jnp.ones((C0,), jnp.float32), "b1": jnp.zeros((C0,), jnp.float32),
            "w2": nrm((C0, C0, 3, 3)),
            "g2": jnp.ones((C0,), jnp.float32), "b2": jnp.zeros((C0,), jnp.float32),
        })
    in_c = C0
    for l in range(N_DECONV):
        out_c = in_c // 2 if l < N_DECONV - 1 else 3
        layer = {"w": nrm((in_c, out_c, 4, 4))}            # ConvTranspose2d (Cin,Cout,KH,KW)
        if l < N_DECONV - 1:                               # BatchNorm2d after all but last
            layer["g"] = jnp.ones((out_c,), jnp.float32)
            layer["b"] = jnp.zeros((out_c,), jnp.float32)
        params["dec"].append(layer)
        in_c = out_c
    return params


# ----------------------- pure-JAX NCHW reference (check) --------------------

def _bn_ref(x, gamma, beta):
    mean = jnp.mean(x, axis=(0, 2, 3), keepdims=True)
    var = jnp.mean(jnp.square(x - mean), axis=(0, 2, 3), keepdims=True)
    return ((x - mean) * lax.rsqrt(var + BN_EPS) * gamma.reshape(1, -1, 1, 1)
            + beta.reshape(1, -1, 1, 1))


def _conv_ref(x, w, padding):
    return lax.conv_general_dilated(
        x, w, window_strides=(1, 1), padding=[(padding, padding)] * 2,
        dimension_numbers=("NCHW", "OIHW", "NCHW"))


def _deconv_ref(x, w, stride=2, padding=1):
    k = w.shape[-1]
    w_conv = jnp.flip(w, axis=(2, 3)).transpose(1, 0, 2, 3)
    return lax.conv_general_dilated(
        x, w_conv, window_strides=(1, 1),
        padding=[(k - 1 - padding, k - 1 - padding)] * 2,
        lhs_dilation=(stride, stride),
        dimension_numbers=("NCHW", "OIHW", "NCHW"))


def generator_reference(params, z):
    h = z @ jnp.asarray(params["fc_w"], jnp.float32).T + params["fc_b"]
    h = h.reshape(-1, C0, IMG_SIZE, IMG_SIZE)
    for blk in params["res"]:
        y = jax.nn.relu(_bn_ref(_conv_ref(h, blk["w1"], 1), blk["g1"], blk["b1"]))
        h = _bn_ref(_conv_ref(y, blk["w2"], 1), blk["g2"], blk["b2"]) + h
    dec = params["dec"]
    h = jax.nn.relu(_deconv_ref(h, dec[0]["w"]))
    h = jax.nn.relu(_bn_ref(h, dec[0]["g"], dec[0]["b"]))
    h = jax.nn.relu(_deconv_ref(h, dec[1]["w"]))
    h = _bn_ref(h, dec[1]["g"], dec[1]["b"])
    h = jnp.tanh(_deconv_ref(h, dec[2]["w"]))
    h = _bn_ref(h, dec[2]["g"], dec[2]["b"])
    h = jnp.tanh(_deconv_ref(h, dec[3]["w"]))
    return h


# ------------------------------------ main -----------------------------------

if __name__ == "__main__":
    key = jax.random.PRNGKey(0)
    kp, kx = jax.random.split(key)
    params = init_generator_params(kp)
    prepped = prepare_generator_params(params)        # once, outside jit
    z = jax.random.normal(kx, (2, Z_SIZE), jnp.float32)

    fwd = jax.jit(generator_forward)
    out = jax.block_until_ready(fwd(prepped, z))

    assert out.shape == (2, 3, IMG_OUT, IMG_OUT), out.shape
    assert out.dtype == jnp.float32
    assert bool(jnp.all(jnp.isfinite(out)))

    # Cross-check the fused bf16-matmul kernel against a pure-JAX f32 NCHW
    # reference of the same forward (loose tolerance for bf16 MXU operands).
    ref = generator_reference(params, z)
    max_err = float(jnp.max(jnp.abs(out - ref)))
    assert max_err < 5e-2, max_err

    print("KERNEL_OK")
</pallas_src>

<mosaic_0001>
module attributes {stable_mosaic.version = 11 : i64} {
  func.func @_generator_kernel(%arg0: i32, %arg1: memref<2x100xf32, #tpu.memory_space<vmem>>, %arg2: memref<100x32xbf16, #tpu.memory_space<vmem>>, %arg3: memref<1x32xf32, #tpu.memory_space<vmem>>, %arg4: memref<32x32xf32, #tpu.memory_space<vmem>>, %arg5: memref<32x32xbf16, #tpu.memory_space<vmem>>, %arg6: memref<1x32xf32, #tpu.memory_space<vmem>>, %arg7: memref<1x32xf32, #tpu.memory_space<vmem>>, %arg8: memref<32x32xbf16, #tpu.memory_space<vmem>>, %arg9: memref<1x32xf32, #tpu.memory_space<vmem>>, %arg10: memref<1x32xf32, #tpu.memory_space<vmem>>, %arg11: memref<32x32xbf16, #tpu.memory_space<vmem>>, %arg12: memref<1x32xf32, #tpu.memory_space<vmem>>, %arg13: memref<1x32xf32, #tpu.memory_space<vmem>>, %arg14: memref<32x32xbf16, #tpu.memory_space<vmem>>, %arg15: memref<1x32xf32, #tpu.memory_space<vmem>>, %arg16: memref<1x32xf32, #tpu.memory_space<vmem>>, %arg17: memref<32x32xbf16, #tpu.memory_space<vmem>>, %arg18: memref<1x32xf32, #tpu.memory_space<vmem>>, %arg19: memref<1x32xf32, #tpu.memory_space<vmem>>, %arg20: memref<32x32xbf16, #tpu.memory_space<vmem>>, %arg21: memref<1x32xf32, #tpu.memory_space<vmem>>, %arg22: memref<1x32xf32, #tpu.memory_space<vmem>>, %arg23: memref<32x64xbf16, #tpu.memory_space<vmem>>, %arg24: memref<1x64xf32, #tpu.memory_space<vmem>>, %arg25: memref<1x64xf32, #tpu.memory_space<vmem>>, %arg26: memref<64x64xf32, #tpu.memory_space<vmem>>, %arg27: memref<64x128xbf16, #tpu.memory_space<vmem>>, %arg28: memref<1x128xf32, #tpu.memory_space<vmem>>, %arg29: memref<1x128xf32, #tpu.memory_space<vmem>>, %arg30: memref<128x128xf32, #tpu.memory_space<vmem>>, %arg31: memref<128x256xbf16, #tpu.memory_space<vmem>>, %arg32: memref<1x256xf32, #tpu.memory_space<vmem>>, %arg33: memref<1x256xf32, #tpu.memory_space<vmem>>, %arg34: memref<256x256xf32, #tpu.memory_space<vmem>>, %arg35: memref<256x3072xbf16, #tpu.memory_space<vmem>>, %arg36: memref<2x3072xf32, #tpu.memory_space<vmem>>) attributes {dimension_semantics = [#tpu.dimension_semantics<arbitrary>], iteration_bounds = array<i64: 1>, scalar_prefetch = 0 : i64, scratch_operands = 0 : i64, tpu.core_type = #tpu.core_type<tc>, window_params = [{pipeline_mode = #tpu.pipeline_mode<synchronous>, transform_indices = @transform_0, window_bounds = array<i64: 2, 100>}, {pipeline_mode = #tpu.pipeline_mode<synchronous>, transform_indices = @transform_1, window_bounds = array<i64: 100, 32>}, {pipeline_mode = #tpu.pipeline_mode<synchronous>, transform_indices = @transform_2, window_bounds = array<i64: 1, 32>}, {pipeline_mode = #tpu.pipeline_mode<synchronous>, transform_indices = @transform_3, window_bounds = array<i64: 32, 32>}, {pipeline_mode = #tpu.pipeline_mode<synchronous>, transform_indices = @transform_4, window_bounds = array<i64: 32, 32>}, {pipeline_mode = #tpu.pipeline_mode<synchronous>, transform_indices = @transform_5, window_bounds = array<i64: 1, 32>}, {pipeline_mode = #tpu.pipeline_mode<synchronous>, transform_indices = @transform_6, window_bounds = array<i64: 1, 32>}, {pipeline_mode = #tpu.pipeline_mode<synchronous>, transform_indices = @transform_7, window_bounds = array<i64: 32, 32>}, {pipeline_mode = #tpu.pipeline_mode<synchronous>, transform_indices = @transform_8, window_bounds = array<i64: 1, 32>}, {pipeline_mode = #tpu.pipeline_mode<synchronous>, transform_indices = @transform_9, window_bounds = array<i64: 1, 32>}, {pipeline_mode = #tpu.pipeline_mode<synchronous>, transform_indices = @transform_10, window_bounds = array<i64: 32, 32>}, {pipeline_mode = #tpu.pipeline_mode<synchronous>, transform_indices = @transform_11, window_bounds = array<i64: 1, 32>}, {pipeline_mode = #tpu.pipeline_mode<synchronous>, transform_indices = @transform_12, window_bounds = array<i64: 1, 32>}, {pipeline_mode = #tpu.pipeline_mode<synchronous>, transform_indices = @transform_13, window_bounds = array<i64: 32, 32>}, {pipeline_mode = #tpu.pipeline_mode<synchronous>, transform_indices = @transform_14, window_bounds = array<i64: 1, 32>}, {pipeline_mode = #tpu.pipeline_mode<synchronous>, transform_indices = @transform_15, window_bounds = array<i64: 1, 32>}, {pipeline_mode = #tpu.pipeline_mode<synchronous>, transform_indices = @transform_16, window_bounds = array<i64: 32, 32>}, {pipeline_mode = #tpu.pipeline_mode<synchronous>, transform_indices = @transform_17, window_bounds = array<i64: 1, 32>}, {pipeline_mode = #tpu.pipeline_mode<synchronous>, transform_indices = @transform_18, window_bounds = array<i64: 1, 32>}, {pipeline_mode = #tpu.pipeline_mode<synchronous>, transform_indices = @transform_19, window_bounds = array<i64: 32, 32>}, {pipeline_mode = #tpu.pipeline_mode<synchronous>, transform_indices = @transform_20, window_bounds = array<i64: 1, 32>}, {pipeline_mode = #tpu.pipeline_mode<synchronous>, transform_indices = @transform_21, window_bounds = array<i64: 1, 32>}, {pipeline_mode = #tpu.pipeline_mode<synchronous>, transform_indices = @transform_22, window_bounds = array<i64: 32, 64>}, {pipeline_mode = #tpu.pipeline_mode<synchronous>, transform_indices = @transform_23, window_bounds = array<i64: 1, 64>}, {pipeline_mode = #tpu.pipeline_mode<synchronous>, transform_indices = @transform_24, window_bounds = array<i64: 1, 64>}, {pipeline_mode = #tpu.pipeline_mode<synchronous>, transform_indices = @transform_25, window_bounds = array<i64: 64, 64>}, {pipeline_mode = #tpu.pipeline_mode<synchronous>, transform_indices = @transform_26, window_bounds = array<i64: 64, 128>}, {pipeline_mode = #tpu.pipeline_mode<synchronous>, transform_indices = @transform_27, window_bounds = array<i64: 1, 128>}, {pipeline_mode = #tpu.pipeline_mode<synchronous>, transform_indices = @transform_28, window_bounds = array<i64: 1, 128>}, {pipeline_mode = #tpu.pipeline_mode<synchronous>, transform_indices = @transform_29, window_bounds = array<i64: 128, 128>}, {pipeline_mode = #tpu.pipeline_mode<synchronous>, transform_indices = @transform_30, window_bounds = array<i64: 128, 256>}, {pipeline_mode = #tpu.pipeline_mode<synchronous>, transform_indices = @transform_31, window_bounds = array<i64: 1, 256>}, {pipeline_mode = #tpu.pipeline_mode<synchronous>, transform_indices = @transform_32, window_bounds = array<i64: 1, 256>}, {pipeline_mode = #tpu.pipeline_mode<synchronous>, transform_indices = @transform_33, window_bounds = array<i64: 256, 256>}, {pipeline_mode = #tpu.pipeline_mode<synchronous>, transform_indices = @transform_34, window_bounds = array<i64: 256, 3072>}, {pipeline_mode = #tpu.pipeline_mode<synchronous>, transform_indices = @transform_35, window_bounds = array<i64: 2, 3072>}]} {
    %c0 = arith.constant 0 : index
    %c0_0 = arith.constant 0 : index
    %0 = vector.load %arg1[%c0, %c0_0] : memref<2x100xf32, #tpu.memory_space<vmem>>, vector<2x100xf32>
    %c0_1 = arith.constant 0 : index
    %c0_2 = arith.constant 0 : index
    %1 = vector.load %arg3[%c0_1, %c0_2] : memref<1x32xf32, #tpu.memory_space<vmem>>, vector<1x32xf32>
    %c0_3 = arith.constant 0 : index
    %c0_4 = arith.constant 0 : index
    %2 = vector.load %arg4[%c0_3, %c0_4] : memref<32x32xf32, #tpu.memory_space<vmem>>, vector<32x32xf32>
    %3 = arith.truncf %0 : vector<2x100xf32> to vector<2x100xbf16>
    %c0_5 = arith.constant 0 : index
    %c0_6 = arith.constant 0 : index
    %4 = vector.load %arg2[%c0_5, %c0_6] : memref<100x32xbf16, #tpu.memory_space<vmem>>, vector<100x32xbf16>
    %cst = arith.constant dense<0.000000e+00> : vector<2x32xf32>
    %5 = tpu.matmul %3, %4, %cst {dimension_numbers = #tpu.dot_dimension_numbers<[1], [0], [0], [1], [0, 0, 1, 1], [], []>} : vector<2x100xbf16>, vector<100x32xbf16>, vector<2x32xf32> -> vector<2x32xf32>
    %6 = vector.broadcast %1 : vector<1x32xf32> to vector<2x32xf32>
    %7 = arith.addf %5, %6 : vector<2x32xf32>
    %c0_7 = arith.constant 0 : index
    %c0_8 = arith.constant 0 : index
    %8 = vector.load %arg6[%c0_7, %c0_8] : memref<1x32xf32, #tpu.memory_space<vmem>>, vector<1x32xf32>
    %c0_9 = arith.constant 0 : index
    %c0_10 = arith.constant 0 : index
    %9 = vector.load %arg7[%c0_9, %c0_10] : memref<1x32xf32, #tpu.memory_space<vmem>>, vector<1x32xf32>
    %c0_11 = arith.constant 0 : index
    %c0_12 = arith.constant 0 : index
    %10 = vector.load %arg9[%c0_11, %c0_12] : memref<1x32xf32, #tpu.memory_space<vmem>>, vector<1x32xf32>
    %c0_13 = arith.constant 0 : index
    %c0_14 = arith.constant 0 : index
    %11 = vector.load %arg10[%c0_13, %c0_14] : memref<1x32xf32, #tpu.memory_space<vmem>>, vector<1x32xf32>
    %12 = arith.truncf %7 : vector<2x32xf32> to vector<2x32xbf16>
    %c0_15 = arith.constant 0 : index
    %c0_16 = arith.constant 0 : index
    %13 = vector.load %arg5[%c0_15, %c0_16] : memref<32x32xbf16, #tpu.memory_space<vmem>>, vector<32x32xbf16>
    %cst_17 = arith.constant dense<0.000000e+00> : vector<2x32xf32>
    %14 = tpu.matmul %12, %13, %cst_17 {dimension_numbers = #tpu.dot_dimension_numbers<[1], [0], [0], [1], [0, 0, 1, 1], [], []>} : vector<2x32xbf16>, vector<32x32xbf16>, vector<2x32xf32> -> vector<2x32xf32>
    %cst_18 = arith.constant dense<0.000000e+00> : vector<32xf32>
    %15 = vector.multi_reduction <add>, %14, %cst_18 [0] : vector<2x32xf32> to vector<32xf32>
    %16 = vector.shape_cast %15 : vector<32xf32> to vector<1x32xf32>
    %cst_19 = arith.constant dense<0.000000e+00> : vector<1x32xf32>
    %17 = tpu.matmul %16, %2, %cst_19 {dimension_numbers = #tpu.dot_dimension_numbers<[1], [0], [0], [1], [0, 0, 1, 1], [], []>} : vector<1x32xf32>, vector<32x32xf32>, vector<1x32xf32> -> vector<1x32xf32>
    %cst_20 = arith.constant 5.000000e-01 : f32
    %18 = vector.broadcast %cst_20 : f32 to vector<1x32xf32>
    %19 = arith.mulf %17, %18 : vector<1x32xf32>
    %20 = vector.broadcast %19 : vector<1x32xf32> to vector<2x32xf32>
    %21 = arith.subf %14, %20 : vector<2x32xf32>
    %22 = arith.mulf %21, %21 : vector<2x32xf32>
    %cst_21 = arith.constant dense<0.000000e+00> : vector<32xf32>
    %23 = vector.multi_reduction <add>, %22, %cst_21 [0] : vector<2x32xf32> to vector<32xf32>
    %24 = vector.shape_cast %23 : vector<32xf32> to vector<1x32xf32>
    %cst_22 = arith.constant dense<0.000000e+00> : vector<1x32xf32>
    %25 = tpu.matmul %24, %2, %cst_22 {dimension_numbers = #tpu.dot_dimension_numbers<[1], [0], [0], [1], [0, 0, 1, 1], [], []>} : vector<1x32xf32>, vector<32x32xf32>, vector<1x32xf32> -> vector<1x32xf32>
    %cst_23 = arith.constant 5.000000e-01 : f32
    %26 = vector.broadcast %cst_23 : f32 to vector<1x32xf32>
    %27 = arith.mulf %25, %26 : vector<1x32xf32>
    %cst_24 = arith.constant 9.99999974E-6 : f32
    %28 = vector.broadcast %cst_24 : f32 to vector<1x32xf32>
    %29 = arith.addf %27, %28 : vector<1x32xf32>
    %30 = math.rsqrt %29 : vector<1x32xf32>
    %31 = vector.broadcast %30 : vector<1x32xf32> to vector<2x32xf32>
    %32 = arith.mulf %21, %31 : vector<2x32xf32>
    %33 = vector.broadcast %8 : vector<1x32xf32> to vector<2x32xf32>
    %34 = arith.mulf %32, %33 : vector<2x32xf32>
    %35 = vector.broadcast %9 : vector<1x32xf32> to vector<2x32xf32>
    %36 = arith.addf %34, %35 : vector<2x32xf32>
    %cst_25 = arith.constant 0.000000e+00 : f32
    %37 = vector.broadcast %cst_25 : f32 to vector<2x32xf32>
    %38 = arith.maximumf %36, %37 : vector<2x32xf32>
    %39 = arith.truncf %38 : vector<2x32xf32> to vector<2x32xbf16>
    %c0_26 = arith.constant 0 : index
    %c0_27 = arith.constant 0 : index
    %40 = vector.load %arg8[%c0_26, %c0_27] : memref<32x32xbf16, #tpu.memory_space<vmem>>, vector<32x32xbf16>
    %cst_28 = arith.constant dense<0.000000e+00> : vector<2x32xf32>
    %41 = tpu.matmul %39, %40, %cst_28 {dimension_numbers = #tpu.dot_dimension_numbers<[1], [0], [0], [1], [0, 0, 1, 1], [], []>} : vector<2x32xbf16>, vector<32x32xbf16>, vector<2x32xf32> -> vector<2x32xf32>
    %cst_29 = arith.constant dense<0.000000e+00> : vector<32xf32>
    %42 = vector.multi_reduction <add>, %41, %cst_29 [0] : vector<2x32xf32> to vector<32xf32>
    %43 = vector.shape_cast %42 : vector<32xf32> to vector<1x32xf32>
    %cst_30 = arith.constant dense<0.000000e+00> : vector<1x32xf32>
    %44 = tpu.matmul %43, %2, %cst_30 {dimension_numbers = #tpu.dot_dimension_numbers<[1], [0], [0], [1], [0, 0, 1, 1], [], []>} : vector<1x32xf32>, vector<32x32xf32>, vector<1x32xf32> -> vector<1x32xf32>
    %cst_31 = arith.constant 5.000000e-01 : f32
    %45 = vector.broadcast %cst_31 : f32 to vector<1x32xf32>
    %46 = arith.mulf %44, %45 : vector<1x32xf32>
    %47 = vector.broadcast %46 : vector<1x32xf32> to vector<2x32xf32>
    %48 = arith.subf %41, %47 : vector<2x32xf32>
    %49 = arith.mulf %48, %48 : vector<2x32xf32>
    %cst_32 = arith.constant dense<0.000000e+00> : vector<32xf32>
    %50 = vector.multi_reduction <add>, %49, %cst_32 [0] : vector<2x32xf32> to vector<32xf32>
    %51 = vector.shape_cast %50 : vector<32xf32> to vector<1x32xf32>
    %cst_33 = arith.constant dense<0.000000e+00> : vector<1x32xf32>
    %52 = tpu.matmul %51, %2, %cst_33 {dimension_numbers = #tpu.dot_dimension_numbers<[1], [0], [0], [1], [0, 0, 1, 1], [], []>} : vector<1x32xf32>, vector<32x32xf32>, vector<1x32xf32> -> vector<1x32xf32>
    %cst_34 = arith.constant 5.000000e-01 : f32
    %53 = vector.broadcast %cst_34 : f32 to vector<1x32xf32>
    %54 = arith.mulf %52, %53 : vector<1x32xf32>
    %cst_35 = arith.constant 9.99999974E-6 : f32
    %55 = vector.broadcast %cst_35 : f32 to vector<1x32xf32>
    %56 = arith.addf %54, %55 : vector<1x32xf32>
    %57 = math.rsqrt %56 : vector<1x32xf32>
    %58 = vector.broadcast %57 : vector<1x32xf32> to vector<2x32xf32>
    %59 = arith.mulf %48, %58 : vector<2x32xf32>
    %60 = vector.broadcast %10 : vector<1x32xf32> to vector<2x32xf32>
    %61 = arith.mulf %59, %60 : vector<2x32xf32>
    %62 = vector.broadcast %11 : vector<1x32xf32> to vector<2x32xf32>
    %63 = arith.addf %61, %62 : vector<2x32xf32>
    %64 = arith.addf %63, %7 : vector<2x32xf32>
    %c0_36 = arith.constant 0 : index
    %c0_37 = arith.constant 0 : index
    %65 = vector.load %arg12[%c0_36, %c0_37] : memref<1x32xf32, #tpu.memory_space<vmem>>, vector<1x32xf32>
    %c0_38 = arith.constant 0 : index
    %c0_39 = arith.constant 0 : index
    %66 = vector.load %arg13[%c0_38, %c0_39] : memref<1x32xf32, #tpu.memory_space<vmem>>, vector<1x32xf32>
    %c0_40 = arith.constant 0 : index
    %c0_41 = arith.constant 0 : index
    %67 = vector.load %arg15[%c0_40, %c0_41] : memref<1x32xf32, #tpu.memory_space<vmem>>, vector<1x32xf32>
    %c0_42 = arith.constant 0 : index
    %c0_43 = arith.constant 0 : index
    %68 = vector.load %arg16[%c0_42, %c0_43] : memref<1x32xf32, #tpu.memory_space<vmem>>, vector<1x32xf32>
    %69 = arith.truncf %64 : vector<2x32xf32> to vector<2x32xbf16>
    %c0_44 = arith.constant 0 : index
    %c0_45 = arith.constant 0 : index
    %70 = vector.load %arg11[%c0_44, %c0_45] : memref<32x32xbf16, #tpu.memory_space<vmem>>, vector<32x32xbf16>
    %cst_46 = arith.constant dense<0.000000e+00> : vector<2x32xf32>
    %71 = tpu.matmul %69, %70, %cst_46 {dimension_numbers = #tpu.dot_dimension_numbers<[1], [0], [0], [1], [0, 0, 1, 1], [], []>} : vector<2x32xbf16>, vector<32x32xbf16>, vector<2x32xf32> -> vector<2x32xf32>
    %cst_47 = arith.constant dense<0.000000e+00> : vector<32xf32>
    %72 = vector.multi_reduction <add>, %71, %cst_47 [0] : vector<2x32xf32> to vector<32xf32>
    %73 = vector.shape_cast %72 : vector<32xf32> to vector<1x32xf32>
    %cst_48 = arith.constant dense<0.000000e+00> : vector<1x32xf32>
    %74 = tpu.matmul %73, %2, %cst_48 {dimension_numbers = #tpu.dot_dimension_numbers<[1], [0], [0], [1], [0, 0, 1, 1], [], []>} : vector<1x32xf32>, vector<32x32xf32>, vector<1x32xf32> -> vector<1x32xf32>
    %cst_49 = arith.constant 5.000000e-01 : f32
    %75 = vector.broadcast %cst_49 : f32 to vector<1x32xf32>
    %76 = arith.mulf %74, %75 : vector<1x32xf32>
    %77 = vector.broadcast %76 : vector<1x32xf32> to vector<2x32xf32>
    %78 = arith.subf %71, %77 : vector<2x32xf32>
    %79 = arith.mulf %78, %78 : vector<2x32xf32>
    %cst_50 = arith.constant dense<0.000000e+00> : vector<32xf32>
    %80 = vector.multi_reduction <add>, %79, %cst_50 [0] : vector<2x32xf32> to vector<32xf32>
    %81 = vector.shape_cast %80 : vector<32xf32> to vector<1x32xf32>
    %cst_51 = arith.constant dense<0.000000e+00> : vector<1x32xf32>
    %82 = tpu.matmul %81, %2, %cst_51 {dimension_numbers = #tpu.dot_dimension_numbers<[1], [0], [0], [1], [0, 0, 1, 1], [], []>} : vector<1x32xf32>, vector<32x32xf32>, vector<1x32xf32> -> vector<1x32xf32>
    %cst_52 = arith.constant 5.000000e-01 : f32
    %83 = vector.broadcast %cst_52 : f32 to vector<1x32xf32>
    %84 = arith.mulf %82, %83 : vector<1x32xf32>
    %cst_53 = arith.constant 9.99999974E-6 : f32
    %85 = vector.broadcast %cst_53 : f32 to vector<1x32xf32>
    %86 = arith.addf %84, %85 : vector<1x32xf32>
    %87 = math.rsqrt %86 : vector<1x32xf32>
    %88 = vector.broadcast %87 : vector<1x32xf32> to vector<2x32xf32>
    %89 = arith.mulf %78, %88 : vector<2x32xf32>
    %90 = vector.broadcast %65 : vector<1x32xf32> to vector<2x32xf32>
    %91 = arith.mulf %89, %90 : vector<2x32xf32>
    %92 = vector.broadcast %66 : vector<1x32xf32> to vector<2x32xf32>
    %93 = arith.addf %91, %92 : vector<2x32xf32>
    %cst_54 = arith.constant 0.000000e+00 : f32
    %94 = vector.broadcast %cst_54 : f32 to vector<2x32xf32>
    %95 = arith.maximumf %93, %94 : vector<2x32xf32>
    %96 = arith.truncf %95 : vector<2x32xf32> to vector<2x32xbf16>
    %c0_55 = arith.constant 0 : index
    %c0_56 = arith.constant 0 : index
    %97 = vector.load %arg14[%c0_55, %c0_56] : memref<32x32xbf16, #tpu.memory_space<vmem>>, vector<32x32xbf16>
    %cst_57 = arith.constant dense<0.000000e+00> : vector<2x32xf32>
    %98 = tpu.matmul %96, %97, %cst_57 {dimension_numbers = #tpu.dot_dimension_numbers<[1], [0], [0], [1], [0, 0, 1, 1], [], []>} : vector<2x32xbf16>, vector<32x32xbf16>, vector<2x32xf32> -> vector<2x32xf32>
    %cst_58 = arith.constant dense<0.000000e+00> : vector<32xf32>
    %99 = vector.multi_reduction <add>, %98, %cst_58 [0] : vector<2x32xf32> to vector<32xf32>
    %100 = vector.shape_cast %99 : vector<32xf32> to vector<1x32xf32>
    %cst_59 = arith.constant dense<0.000000e+00> : vector<1x32xf32>
    %101 = tpu.matmul %100, %2, %cst_59 {dimension_numbers = #tpu.dot_dimension_numbers<[1], [0], [0], [1], [0, 0, 1, 1], [], []>} : vector<1x32xf32>, vector<32x32xf32>, vector<1x32xf32> -> vector<1x32xf32>
    %cst_60 = arith.constant 5.000000e-01 : f32
    %102 = vector.broadcast %cst_60 : f32 to vector<1x32xf32>
    %103 = arith.mulf %101, %102 : vector<1x32xf32>
    %104 = vector.broadcast %103 : vector<1x32xf32> to vector<2x32xf32>
    %105 = arith.subf %98, %104 : vector<2x32xf32>
    %106 = arith.mulf %105, %105 : vector<2x32xf32>
    %cst_61 = arith.constant dense<0.000000e+00> : vector<32xf32>
    %107 = vector.multi_reduction <add>, %106, %cst_61 [0] : vector<2x32xf32> to vector<32xf32>
    %108 = vector.shape_cast %107 : vector<32xf32> to vector<1x32xf32>
    %cst_62 = arith.constant dense<0.000000e+00> : vector<1x32xf32>
    %109 = tpu.matmul %108, %2, %cst_62 {dimension_numbers = #tpu.dot_dimension_numbers<[1], [0], [0], [1], [0, 0, 1, 1], [], []>} : vector<1x32xf32>, vector<32x32xf32>, vector<1x32xf32> -> vector<1x32xf32>
    %cst_63 = arith.constant 5.000000e-01 : f32
    %110 = vector.broadcast %cst_63 : f32 to vector<1x32xf32>
    %111 = arith.mulf %109, %110 : vector<1x32xf32>
    %cst_64 = arith.constant 9.99999974E-6 : f32
    %112 = vector.broadcast %cst_64 : f32 to vector<1x32xf32>
    %113 = arith.addf %111, %112 : vector<1x32xf32>
    %114 = math.rsqrt %113 : vector<1x32xf32>
    %115 = vector.broadcast %114 : vector<1x32xf32> to vector<2x32xf32>
    %116 = arith.mulf %105, %115 : vector<2x32xf32>
    %117 = vector.broadcast %67 : vector<1x32xf32> to vector<2x32xf32>
    %118 = arith.mulf %116, %117 : vector<2x32xf32>
    %119 = vector.broadcast %68 : vector<1x32xf32> to vector<2x32xf32>
    %120 = arith.addf %118, %119 : vector<2x32xf32>
    %121 = arith.addf %120, %64 : vector<2x32xf32>
    %c0_65 = arith.constant 0 : index
    %c0_66 = arith.constant 0 : index
    %122 = vector.load %arg18[%c0_65, %c0_66] : memref<1x32xf32, #tpu.memory_space<vmem>>, vector<1x32xf32>
    %c0_67 = arith.constant 0 : index
    %c0_68 = arith.constant 0 : index
    %123 = vector.load %arg19[%c0_67, %c0_68] : memref<1x32xf32, #tpu.memory_space<vmem>>, vector<1x32xf32>
    %c0_69 = arith.constant 0 : index
    %c0_70 = arith.constant 0 : index
    %124 = vector.load %arg21[%c0_69, %c0_70] : memref<1x32xf32, #tpu.memory_space<vmem>>, vector<1x32xf32>
    %c0_71 = arith.constant 0 : index
    %c0_72 = arith.constant 0 : index
    %125 = vector.load %arg22[%c0_71, %c0_72] : memref<1x32xf32, #tpu.memory_space<vmem>>, vector<1x32xf32>
    %126 = arith.truncf %121 : vector<2x32xf32> to vector<2x32xbf16>
    %c0_73 = arith.constant 0 : index
    %c0_74 = arith.constant 0 : index
    %127 = vector.load %arg17[%c0_73, %c0_74] : memref<32x32xbf16, #tpu.memory_space<vmem>>, vector<32x32xbf16>
    %cst_75 = arith.constant dense<0.000000e+00> : vector<2x32xf32>
    %128 = tpu.matmul %126, %127, %cst_75 {dimension_numbers = #tpu.dot_dimension_numbers<[1], [0], [0], [1], [0, 0, 1, 1], [], []>} : vector<2x32xbf16>, vector<32x32xbf16>, vector<2x32xf32> -> vector<2x32xf32>
    %cst_76 = arith.constant dense<0.000000e+00> : vector<32xf32>
    %129 = vector.multi_reduction <add>, %128, %cst_76 [0] : vector<2x32xf32> to vector<32xf32>
    %130 = vector.shape_cast %129 : vector<32xf32> to vector<1x32xf32>
    %cst_77 = arith.constant dense<0.000000e+00> : vector<1x32xf32>
    %131 = tpu.matmul %130, %2, %cst_77 {dimension_numbers = #tpu.dot_dimension_numbers<[1], [0], [0], [1], [0, 0, 1, 1], [], []>} : vector<1x32xf32>, vector<32x32xf32>, vector<1x32xf32> -> vector<1x32xf32>
    %cst_78 = arith.constant 5.000000e-01 : f32
    %132 = vector.broadcast %cst_78 : f32 to vector<1x32xf32>
    %133 = arith.mulf %131, %132 : vector<1x32xf32>
    %134 = vector.broadcast %133 : vector<1x32xf32> to vector<2x32xf32>
    %135 = arith.subf %128, %134 : vector<2x32xf32>
    %136 = arith.mulf %135, %135 : vector<2x32xf32>
    %cst_79 = arith.constant dense<0.000000e+00> : vector<32xf32>
    %137 = vector.multi_reduction <add>, %136, %cst_79 [0] : vector<2x32xf32> to vector<32xf32>
    %138 = vector.shape_cast %137 : vector<32xf32> to vector<1x32xf32>
    %cst_80 = arith.constant dense<0.000000e+00> : vector<1x32xf32>
    %139 = tpu.matmul %138, %2, %cst_80 {dimension_numbers = #tpu.dot_dimension_numbers<[1], [0], [0], [1], [0, 0, 1, 1], [], []>} : vector<1x32xf32>, vector<32x32xf32>, vector<1x32xf32> -> vector<1x32xf32>
    %cst_81 = arith.constant 5.000000e-01 : f32
    %140 = vector.broadcast %cst_81 : f32 to vector<1x32xf32>
    %141 = arith.mulf %139, %140 : vector<1x32xf32>
    %cst_82 = arith.constant 9.99999974E-6 : f32
    %142 = vector.broadcast %cst_82 : f32 to vector<1x32xf32>
    %143 = arith.addf %141, %142 : vector<1x32xf32>
    %144 = math.rsqrt %143 : vector<1x32xf32>
    %145 = vector.broadcast %144 : vector<1x32xf32> to vector<2x32xf32>
    %146 = arith.mulf %135, %145 : vector<2x32xf32>
    %147 = vector.broadcast %122 : vector<1x32xf32> to vector<2x32xf32>
    %148 = arith.mulf %146, %147 : vector<2x32xf32>
    %149 = vector.broadcast %123 : vector<1x32xf32> to vector<2x32xf32>
    %150 = arith.addf %148, %149 : vector<2x32xf32>
    %cst_83 = arith.constant 0.000000e+00 : f32
    %151 = vector.broadcast %cst_83 : f32 to vector<2x32xf32>
    %152 = arith.maximumf %150, %151 : vector<2x32xf32>
    %153 = arith.truncf %152 : vector<2x32xf32> to vector<2x32xbf16>
    %c0_84 = arith.constant 0 : index
    %c0_85 = arith.constant 0 : index
    %154 = vector.load %arg20[%c0_84, %c0_85] : memref<32x32xbf16, #tpu.memory_space<vmem>>, vector<32x32xbf16>
    %cst_86 = arith.constant dense<0.000000e+00> : vector<2x32xf32>
    %155 = tpu.matmul %153, %154, %cst_86 {dimension_numbers = #tpu.dot_dimension_numbers<[1], [0], [0], [1], [0, 0, 1, 1], [], []>} : vector<2x32xbf16>, vector<32x32xbf16>, vector<2x32xf32> -> vector<2x32xf32>
    %cst_87 = arith.constant dense<0.000000e+00> : vector<32xf32>
    %156 = vector.multi_reduction <add>, %155, %cst_87 [0] : vector<2x32xf32> to vector<32xf32>
    %157 = vector.shape_cast %156 : vector<32xf32> to vector<1x32xf32>
    %cst_88 = arith.constant dense<0.000000e+00> : vector<1x32xf32>
    %158 = tpu.matmul %157, %2, %cst_88 {dimension_numbers = #tpu.dot_dimension_numbers<[1], [0], [0], [1], [0, 0, 1, 1], [], []>} : vector<1x32xf32>, vector<32x32xf32>, vector<1x32xf32> -> vector<1x32xf32>
    %cst_89 = arith.constant 5.000000e-01 : f32
    %159 = vector.broadcast %cst_89 : f32 to vector<1x32xf32>
    %160 = arith.mulf %158, %159 : vector<1x32xf32>
    %161 = vector.broadcast %160 : vector<1x32xf32> to vector<2x32xf32>
    %162 = arith.subf %155, %161 : vector<2x32xf32>
    %163 = arith.mulf %162, %162 : vector<2x32xf32>
    %cst_90 = arith.constant dense<0.000000e+00> : vector<32xf32>
    %164 = vector.multi_reduction <add>, %163, %cst_90 [0] : vector<2x32xf32> to vector<32xf32>
    %165 = vector.shape_cast %164 : vector<32xf32> to vector<1x32xf32>
    %cst_91 = arith.constant dense<0.000000e+00> : vector<1x32xf32>
    %166 = tpu.matmul %165, %2, %cst_91 {dimension_numbers = #tpu.dot_dimension_numbers<[1], [0], [0], [1], [0, 0, 1, 1], [], []>} : vector<1x32xf32>, vector<32x32xf32>, vector<1x32xf32> -> vector<1x32xf32>
    %cst_92 = arith.constant 5.000000e-01 : f32
    %167 = vector.broadcast %cst_92 : f32 to vector<1x32xf32>
    %168 = arith.mulf %166, %167 : vector<1x32xf32>
    %cst_93 = arith.constant 9.99999974E-6 : f32
    %169 = vector.broadcast %cst_93 : f32 to vector<1x32xf32>
    %170 = arith.addf %168, %169 : vector<1x32xf32>
    %171 = math.rsqrt %170 : vector<1x32xf32>
    %172 = vector.broadcast %171 : vector<1x32xf32> to vector<2x32xf32>
    %173 = arith.mulf %162, %172 : vector<2x32xf32>
    %174 = vector.broadcast %124 : vector<1x32xf32> to vector<2x32xf32>
    %175 = arith.mulf %173, %174 : vector<2x32xf32>
    %176 = vector.broadcast %125 : vector<1x32xf32> to vector<2x32xf32>
    %177 = arith.addf %175, %176 : vector<2x32xf32>
    %178 = arith.addf %177, %121 : vector<2x32xf32>
    %c0_94 = arith.constant 0 : index
    %c0_95 = arith.constant 0 : index
    %179 = vector.load %arg24[%c0_94, %c0_95] : memref<1x64xf32, #tpu.memory_space<vmem>>, vector<1x64xf32>
    %c0_96 = arith.constant 0 : index
    %c0_97 = arith.constant 0 : index
    %180 = vector.load %arg25[%c0_96, %c0_97] : memref<1x64xf32, #tpu.memory_space<vmem>>, vector<1x64xf32>
    %c0_98 = arith.constant 0 : index
    %c0_99 = arith.constant 0 : index
    %181 = vector.load %arg26[%c0_98, %c0_99] : memref<64x64xf32, #tpu.memory_space<vmem>>, vector<64x64xf32>
    %182 = arith.truncf %178 : vector<2x32xf32> to vector<2x32xbf16>
    %c0_100 = arith.constant 0 : index
    %c0_101 = arith.constant 0 : index
    %183 = vector.load %arg23[%c0_100, %c0_101] : memref<32x64xbf16, #tpu.memory_space<vmem>>, vector<32x64xbf16>
    %cst_102 = arith.constant dense<0.000000e+00> : vector<2x64xf32>
    %184 = tpu.matmul %182, %183, %cst_102 {dimension_numbers = #tpu.dot_dimension_numbers<[1], [0], [0], [1], [0, 0, 1, 1], [], []>} : vector<2x32xbf16>, vector<32x64xbf16>, vector<2x64xf32> -> vector<2x64xf32>
    %cst_103 = arith.constant 0.000000e+00 : f32
    %185 = vector.broadcast %cst_103 : f32 to vector<2x64xf32>
    %186 = arith.maximumf %184, %185 : vector<2x64xf32>
    %cst_104 = arith.constant dense<0.000000e+00> : vector<64xf32>
    %187 = vector.multi_reduction <add>, %186, %cst_104 [0] : vector<2x64xf32> to vector<64xf32>
    %188 = vector.shape_cast %187 : vector<64xf32> to vector<1x64xf32>
    %cst_105 = arith.constant dense<0.000000e+00> : vector<1x64xf32>
    %189 = tpu.matmul %188, %181, %cst_105 {dimension_numbers = #tpu.dot_dimension_numbers<[1], [0], [0], [1], [0, 0, 1, 1], [], []>} : vector<1x64xf32>, vector<64x64xf32>, vector<1x64xf32> -> vector<1x64xf32>
    %cst_106 = arith.constant 5.000000e-01 : f32
    %190 = vector.broadcast %cst_106 : f32 to vector<1x64xf32>
    %191 = arith.mulf %189, %190 : vector<1x64xf32>
    %192 = vector.broadcast %191 : vector<1x64xf32> to vector<2x64xf32>
    %193 = arith.subf %186, %192 : vector<2x64xf32>
    %194 = arith.mulf %193, %193 : vector<2x64xf32>
    %cst_107 = arith.constant dense<0.000000e+00> : vector<64xf32>
    %195 = vector.multi_reduction <add>, %194, %cst_107 [0] : vector<2x64xf32> to vector<64xf32>
    %196 = vector.shape_cast %195 : vector<64xf32> to vector<1x64xf32>
    %cst_108 = arith.constant dense<0.000000e+00> : vector<1x64xf32>
    %197 = tpu.matmul %196, %181, %cst_108 {dimension_numbers = #tpu.dot_dimension_numbers<[1], [0], [0], [1], [0, 0, 1, 1], [], []>} : vector<1x64xf32>, vector<64x64xf32>, vector<1x64xf32> -> vector<1x64xf32>
    %cst_109 = arith.constant 5.000000e-01 : f32
    %198 = vector.broadcast %cst_109 : f32 to vector<1x64xf32>
    %199 = arith.mulf %197, %198 : vector<1x64xf32>
    %cst_110 = arith.constant 9.99999974E-6 : f32
    %200 = vector.broadcast %cst_110 : f32 to vector<1x64xf32>
    %201 = arith.addf %199, %200 : vector<1x64xf32>
    %202 = math.rsqrt %201 : vector<1x64xf32>
    %203 = vector.broadcast %202 : vector<1x64xf32> to vector<2x64xf32>
    %204 = arith.mulf %193, %203 : vector<2x64xf32>
    %205 = vector.broadcast %179 : vector<1x64xf32> to vector<2x64xf32>
    %206 = arith.mulf %204, %205 : vector<2x64xf32>
    %207 = vector.broadcast %180 : vector<1x64xf32> to vector<2x64xf32>
    %208 = arith.addf %206, %207 : vector<2x64xf32>
    %cst_111 = arith.constant 0.000000e+00 : f32
    %209 = vector.broadcast %cst_111 : f32 to vector<2x64xf32>
    %210 = arith.maximumf %208, %209 : vector<2x64xf32>
    %c0_112 = arith.constant 0 : index
    %c0_113 = arith.constant 0 : index
    %211 = vector.load %arg28[%c0_112, %c0_113] : memref<1x128xf32, #tpu.memory_space<vmem>>, vector<1x128xf32>
    %c0_114 = arith.constant 0 : index
    %c0_115 = arith.constant 0 : index
    %212 = vector.load %arg29[%c0_114, %c0_115] : memref<1x128xf32, #tpu.memory_space<vmem>>, vector<1x128xf32>
    %c0_116 = arith.constant 0 : index
    %c0_117 = arith.constant 0 : index
    %213 = vector.load %arg30[%c0_116, %c0_117] : memref<128x128xf32, #tpu.memory_space<vmem>>, vector<128x128xf32>
    %214 = arith.truncf %210 : vector<2x64xf32> to vector<2x64xbf16>
    %c0_118 = arith.constant 0 : index
    %c0_119 = arith.constant 0 : index
    %215 = vector.load %arg27[%c0_118, %c0_119] : memref<64x128xbf16, #tpu.memory_space<vmem>>, vector<64x128xbf16>
    %cst_120 = arith.constant dense<0.000000e+00> : vector<2x128xf32>
    %216 = tpu.matmul %214, %215, %cst_120 {dimension_numbers = #tpu.dot_dimension_numbers<[1], [0], [0], [1], [0, 0, 1, 1], [], []>} : vector<2x64xbf16>, vector<64x128xbf16>, vector<2x128xf32> -> vector<2x128xf32>
    %cst_121 = arith.constant 0.000000e+00 : f32
    %217 = vector.broadcast %cst_121 : f32 to vector<2x128xf32>
    %218 = arith.maximumf %216, %217 : vector<2x128xf32>
    %cst_122 = arith.constant dense<0.000000e+00> : vector<128xf32>
    %219 = vector.multi_reduction <add>, %218, %cst_122 [0] : vector<2x128xf32> to vector<128xf32>
    %220 = vector.shape_cast %219 : vector<128xf32> to vector<1x128xf32>
    %cst_123 = arith.constant dense<0.000000e+00> : vector<1x128xf32>
    %221 = tpu.matmul %220, %213, %cst_123 {dimension_numbers = #tpu.dot_dimension_numbers<[1], [0], [0], [1], [0, 0, 1, 1], [], []>} : vector<1x128xf32>, vector<128x128xf32>, vector<1x128xf32> -> vector<1x128xf32>
    %cst_124 = arith.constant 5.000000e-01 : f32
    %222 = vector.broadcast %cst_124 : f32 to vector<1x128xf32>
    %223 = arith.mulf %221, %222 : vector<1x128xf32>
    %224 = vector.broadcast %223 : vector<1x128xf32> to vector<2x128xf32>
    %225 = arith.subf %218, %224 : vector<2x128xf32>
    %226 = arith.mulf %225, %225 : vector<2x128xf32>
    %cst_125 = arith.constant dense<0.000000e+00> : vector<128xf32>
    %227 = vector.multi_reduction <add>, %226, %cst_125 [0] : vector<2x128xf32> to vector<128xf32>
    %228 = vector.shape_cast %227 : vector<128xf32> to vector<1x128xf32>
    %cst_126 = arith.constant dense<0.000000e+00> : vector<1x128xf32>
    %229 = tpu.matmul %228, %213, %cst_126 {dimension_numbers = #tpu.dot_dimension_numbers<[1], [0], [0], [1], [0, 0, 1, 1], [], []>} : vector<1x128xf32>, vector<128x128xf32>, vector<1x128xf32> -> vector<1x128xf32>
    %cst_127 = arith.constant 5.000000e-01 : f32
    %230 = vector.broadcast %cst_127 : f32 to vector<1x128xf32>
    %231 = arith.mulf %229, %230 : vector<1x128xf32>
    %cst_128 = arith.constant 9.99999974E-6 : f32
    %232 = vector.broadcast %cst_128 : f32 to vector<1x128xf32>
    %233 = arith.addf %231, %232 : vector<1x128xf32>
    %234 = math.rsqrt %233 : vector<1x128xf32>
    %235 = vector.broadcast %234 : vector<1x128xf32> to vector<2x128xf32>
    %236 = arith.mulf %225, %235 : vector<2x128xf32>
    %237 = vector.broadcast %211 : vector<1x128xf32> to vector<2x128xf32>
    %238 = arith.mulf %236, %237 : vector<2x128xf32>
    %239 = vector.broadcast %212 : vector<1x128xf32> to vector<2x128xf32>
    %240 = arith.addf %238, %239 : vector<2x128xf32>
    %c0_129 = arith.constant 0 : index
    %c0_130 = arith.constant 0 : index
    %241 = vector.load %arg32[%c0_129, %c0_130] : memref<1x256xf32, #tpu.memory_space<vmem>>, vector<1x256xf32>
    %c0_131 = arith.constant 0 : index
    %c0_132 = arith.constant 0 : index
    %242 = vector.load %arg33[%c0_131, %c0_132] : memref<1x256xf32, #tpu.memory_space<vmem>>, vector<1x256xf32>
    %c0_133 = arith.constant 0 : index
    %c0_134 = arith.constant 0 : index
    %243 = vector.load %arg34[%c0_133, %c0_134] : memref<256x256xf32, #tpu.memory_space<vmem>>, vector<256x256xf32>
    %244 = arith.truncf %240 : vector<2x128xf32> to vector<2x128xbf16>
    %c0_135 = arith.constant 0 : index
    %c0_136 = arith.constant 0 : index
    %245 = vector.load %arg31[%c0_135, %c0_136] : memref<128x256xbf16, #tpu.memory_space<vmem>>, vector<128x256xbf16>
    %cst_137 = arith.constant dense<0.000000e+00> : vector<2x256xf32>
    %246 = tpu.matmul %244, %245, %cst_137 {dimension_numbers = #tpu.dot_dimension_numbers<[1], [0], [0], [1], [0, 0, 1, 1], [], []>} : vector<2x128xbf16>, vector<128x256xbf16>, vector<2x256xf32> -> vector<2x256xf32>
    %247 = math.tanh %246 : vector<2x256xf32>
    %cst_138 = arith.constant dense<0.000000e+00> : vector<256xf32>
    %248 = vector.multi_reduction <add>, %247, %cst_138 [0] : vector<2x256xf32> to vector<256xf32>
    %249 = vector.shape_cast %248 : vector<256xf32> to vector<1x256xf32>
    %cst_139 = arith.constant dense<0.000000e+00> : vector<1x256xf32>
    %250 = tpu.matmul %249, %243, %cst_139 {dimension_numbers = #tpu.dot_dimension_numbers<[1], [0], [0], [1], [0, 0, 1, 1], [], []>} : vector<1x256xf32>, vector<256x256xf32>, vector<1x256xf32> -> vector<1x256xf32>
    %cst_140 = arith.constant 5.000000e-01 : f32
    %251 = vector.broadcast %cst_140 : f32 to vector<1x256xf32>
    %252 = arith.mulf %250, %251 : vector<1x256xf32>
    %253 = vector.broadcast %252 : vector<1x256xf32> to vector<2x256xf32>
    %254 = arith.subf %247, %253 : vector<2x256xf32>
    %255 = arith.mulf %254, %254 : vector<2x256xf32>
    %cst_141 = arith.constant dense<0.000000e+00> : vector<256xf32>
    %256 = vector.multi_reduction <add>, %255, %cst_141 [0] : vector<2x256xf32> to vector<256xf32>
    %257 = vector.shape_cast %256 : vector<256xf32> to vector<1x256xf32>
    %cst_142 = arith.constant dense<0.000000e+00> : vector<1x256xf32>
    %258 = tpu.matmul %257, %243, %cst_142 {dimension_numbers = #tpu.dot_dimension_numbers<[1], [0], [0], [1], [0, 0, 1, 1], [], []>} : vector<1x256xf32>, vector<256x256xf32>, vector<1x256xf32> -> vector<1x256xf32>
    %cst_143 = arith.constant 5.000000e-01 : f32
    %259 = vector.broadcast %cst_143 : f32 to vector<1x256xf32>
    %260 = arith.mulf %258, %259 : vector<1x256xf32>
    %cst_144 = arith.constant 9.99999974E-6 : f32
    %261 = vector.broadcast %cst_144 : f32 to vector<1x256xf32>
    %262 = arith.addf %260, %261 : vector<1x256xf32>
    %263 = math.rsqrt %262 : vector<1x256xf32>
    %264 = vector.broadcast %263 : vector<1x256xf32> to vector<2x256xf32>
    %265 = arith.mulf %254, %264 : vector<2x256xf32>
    %266 = vector.broadcast %241 : vector<1x256xf32> to vector<2x256xf32>
    %267 = arith.mulf %265, %266 : vector<2x256xf32>
    %268 = vector.broadcast %242 : vector<1x256xf32> to vector<2x256xf32>
    %269 = arith.addf %267, %268 : vector<2x256xf32>
    %270 = arith.truncf %269 : vector<2x256xf32> to vector<2x256xbf16>
    %c0_145 = arith.constant 0 : index
    %c0_146 = arith.constant 0 : index
    %271 = vector.load %arg35[%c0_145, %c0_146] : memref<256x3072xbf16, #tpu.memory_space<vmem>>, vector<256x3072xbf16>
    %cst_147 = arith.constant dense<0.000000e+00> : vector<2x3072xf32>
    %272 = tpu.matmul %270, %271, %cst_147 {dimension_numbers = #tpu.dot_dimension_numbers<[1], [0], [0], [1], [0, 0, 1, 1], [], []>} : vector<2x256xbf16>, vector<256x3072xbf16>, vector<2x3072xf32> -> vector<2x3072xf32>
    %273 = math.tanh %272 : vector<2x3072xf32>
    %c0_148 = arith.constant 0 : index
    %c0_149 = arith.constant 0 : index
    %274 = vector.load %arg36[%c0_148, %c0_149] : memref<2x3072xf32, #tpu.memory_space<vmem>>, vector<2x3072xf32>
    tpu.vector_store %arg36[%c0_148, %c0_149], %273 {strides = array<i32>} : memref<2x3072xf32, #tpu.memory_space<vmem>>, vector<2x3072xf32>,
    return
  }
  func.func @transform_0(%arg0: i32) -> (i32, i32) {
    %c0_i32 = arith.constant 0 : i32
    %c0_i32_0 = arith.constant 0 : i32
    %c0_i32_1 = arith.constant 0 : i32
    return %c0_i32, %c0_i32_0 : i32, i32
  }
  func.func @transform_1(%arg0: i32) -> (i32, i32) {
    %c0_i32 = arith.constant 0 : i32
    %c0_i32_0 = arith.constant 0 : i32
    %c0_i32_1 = arith.constant 0 : i32
    return %c0_i32, %c0_i32_0 : i32, i32
  }
  func.func @transform_2(%arg0: i32) -> (i32, i32) {
    %c0_i32 = arith.constant 0 : i32
    %c0_i32_0 = arith.constant 0 : i32
    %c0_i32_1 = arith.constant 0 : i32
    return %c0_i32, %c0_i32_0 : i32, i32
  }
  func.func @transform_3(%arg0: i32) -> (i32, i32) {
    %c0_i32 = arith.constant 0 : i32
    %c0_i32_0 = arith.constant 0 : i32
    %c0_i32_1 = arith.constant 0 : i32
    return %c0_i32, %c0_i32_0 : i32, i32
  }
  func.func @transform_4(%arg0: i32) -> (i32, i32) {
    %c0_i32 = arith.constant 0 : i32
    %c0_i32_0 = arith.constant 0 : i32
    %c0_i32_1 = arith.constant 0 : i32
    return %c0_i32, %c0_i32_0 : i32, i32
  }
  func.func @transform_5(%arg0: i32) -> (i32, i32) {
    %c0_i32 = arith.constant 0 : i32
    %c0_i32_0 = arith.constant 0 : i32
    %c0_i32_1 = arith.constant 0 : i32
    return %c0_i32, %c0_i32_0 : i32, i32
  }
  func.func @transform_6(%arg0: i32) -> (i32, i32) {
    %c0_i32 = arith.constant 0 : i32
    %c0_i32_0 = arith.constant 0 : i32
    %c0_i32_1 = arith.constant 0 : i32
    return %c0_i32, %c0_i32_0 : i32, i32
  }
  func.func @transform_7(%arg0: i32) -> (i32, i32) {
    %c0_i32 = arith.constant 0 : i32
    %c0_i32_0 = arith.constant 0 : i32
    %c0_i32_1 = arith.constant 0 : i32
    return %c0_i32, %c0_i32_0 : i32, i32
  }
  func.func @transform_8(%arg0: i32) -> (i32, i32) {
    %c0_i32 = arith.constant 0 : i32
    %c0_i32_0 = arith.constant 0 : i32
    %c0_i32_1 = arith.constant 0 : i32
    return %c0_i32, %c0_i32_0 : i32, i32
  }
  func.func @transform_9(%arg0: i32) -> (i32, i32) {
    %c0_i32 = arith.constant 0 : i32
    %c0_i32_0 = arith.constant 0 : i32
    %c0_i32_1 = arith.constant 0 : i32
    return %c0_i32, %c0_i32_0 : i32, i32
  }
  func.func @transform_10(%arg0: i32) -> (i32, i32) {
    %c0_i32 = arith.constant 0 : i32
    %c0_i32_0 = arith.constant 0 : i32
    %c0_i32_1 = arith.constant 0 : i32
    return %c0_i32, %c0_i32_0 : i32, i32
  }
  func.func @transform_11(%arg0: i32) -> (i32, i32) {
    %c0_i32 = arith.constant 0 : i32
    %c0_i32_0 = arith.constant 0 : i32
    %c0_i32_1 = arith.constant 0 : i32
    return %c0_i32, %c0_i32_0 : i32, i32
  }
  func.func @transform_12(%arg0: i32) -> (i32, i32) {
    %c0_i32 = arith.constant 0 : i32
    %c0_i32_0 = arith.constant 0 : i32
    %c0_i32_1 = arith.constant 0 : i32
    return %c0_i32, %c0_i32_0 : i32, i32
  }
  func.func @transform_13(%arg0: i32) -> (i32, i32) {
    %c0_i32 = arith.constant 0 : i32
    %c0_i32_0 = arith.constant 0 : i32
    %c0_i32_1 = arith.constant 0 : i32
    return %c0_i32, %c0_i32_0 : i32, i32
  }
  func.func @transform_14(%arg0: i32) -> (i32, i32) {
    %c0_i32 = arith.constant 0 : i32
    %c0_i32_0 = arith.constant 0 : i32
    %c0_i32_1 = arith.constant 0 : i32
    return %c0_i32, %c0_i32_0 : i32, i32
  }
  func.func @transform_15(%arg0: i32) -> (i32, i32) {
    %c0_i32 = arith.constant 0 : i32
    %c0_i32_0 = arith.constant 0 : i32
    %c0_i32_1 = arith.constant 0 : i32
    return %c0_i32, %c0_i32_0 : i32, i32
  }
  func.func @transform_16(%arg0: i32) -> (i32, i32) {
    %c0_i32 = arith.constant 0 : i32
    %c0_i32_0 = arith.constant 0 : i32
    %c0_i32_1 = arith.constant 0 : i32
    return %c0_i32, %c0_i32_0 : i32, i32
  }
  func.func @transform_17(%arg0: i32) -> (i32, i32) {
    %c0_i32 = arith.constant 0 : i32
    %c0_i32_0 = arith.constant 0 : i32
    %c0_i32_1 = arith.constant 0 : i32
    return %c0_i32, %c0_i32_0 : i32, i32
  }
  func.func @transform_18(%arg0: i32) -> (i32, i32) {
    %c0_i32 = arith.constant 0 : i32
    %c0_i32_0 = arith.constant 0 : i32
    %c0_i32_1 = arith.constant 0 : i32
    return %c0_i32, %c0_i32_0 : i32, i32
  }
  func.func @transform_19(%arg0: i32) -> (i32, i32) {
    %c0_i32 = arith.constant 0 : i32
    %c0_i32_0 = arith.constant 0 : i32
    %c0_i32_1 = arith.constant 0 : i32
    return %c0_i32, %c0_i32_0 : i32, i32
  }
  func.func @transform_20(%arg0: i32) -> (i32, i32) {
    %c0_i32 = arith.constant 0 : i32
    %c0_i32_0 = arith.constant 0 : i32
    %c0_i32_1 = arith.constant 0 : i32
    return %c0_i32, %c0_i32_0 : i32, i32
  }
  func.func @transform_21(%arg0: i32) -> (i32, i32) {
    %c0_i32 = arith.constant 0 : i32
    %c0_i32_0 = arith.constant 0 : i32
    %c0_i32_1 = arith.constant 0 : i32
    return %c0_i32, %c0_i32_0 : i32, i32
  }
  func.func @transform_22(%arg0: i32) -> (i32, i32) {
    %c0_i32 = arith.constant 0 : i32
    %c0_i32_0 = arith.constant 0 : i32
    %c0_i32_1 = arith.constant 0 : i32
    return %c0_i32, %c0_i32_0 : i32, i32
  }
  func.func @transform_23(%arg0: i32) -> (i32, i32) {
    %c0_i32 = arith.constant 0 : i32
    %c0_i32_0 = arith.constant 0 : i32
    %c0_i32_1 = arith.constant 0 : i32
    return %c0_i32, %c0_i32_0 : i32, i32
  }
  func.func @transform_24(%arg0: i32) -> (i32, i32) {
    %c0_i32 = arith.constant 0 : i32
    %c0_i32_0 = arith.constant 0 : i32
    %c0_i32_1 = arith.constant 0 : i32
    return %c0_i32, %c0_i32_0 : i32, i32
  }
  func.func @transform_25(%arg0: i32) -> (i32, i32) {
    %c0_i32 = arith.constant 0 : i32
    %c0_i32_0 = arith.constant 0 : i32
    %c0_i32_1 = arith.constant 0 : i32
    return %c0_i32, %c0_i32_0 : i32, i32
  }
  func.func @transform_26(%arg0: i32) -> (i32, i32) {
    %c0_i32 = arith.constant 0 : i32
    %c0_i32_0 = arith.constant 0 : i32
    %c0_i32_1 = arith.constant 0 : i32
    return %c0_i32, %c0_i32_0 : i32, i32
  }
  func.func @transform_27(%arg0: i32) -> (i32, i32) {
    %c0_i32 = arith.constant 0 : i32
    %c0_i32_0 = arith.constant 0 : i32
    %c0_i32_1 = arith.constant 0 : i32
    return %c0_i32, %c0_i32_0 : i32, i32
  }
  func.func @transform_28(%arg0: i32) -> (i32, i32) {
    %c0_i32 = arith.constant 0 : i32
    %c0_i32_0 = arith.constant 0 : i32
    %c0_i32_1 = arith.constant 0 : i32
    return %c0_i32, %c0_i32_0 : i32, i32
  }
  func.func @transform_29(%arg0: i32) -> (i32, i32) {
    %c0_i32 = arith.constant 0 : i32
    %c0_i32_0 = arith.constant 0 : i32
    %c0_i32_1 = arith.constant 0 : i32
    return %c0_i32, %c0_i32_0 : i32, i32
  }
  func.func @transform_30(%arg0: i32) -> (i32, i32) {
    %c0_i32 = arith.constant 0 : i32
    %c0_i32_0 = arith.constant 0 : i32
    %c0_i32_1 = arith.constant 0 : i32
    return %c0_i32, %c0_i32_0 : i32, i32
  }
  func.func @transform_31(%arg0: i32) -> (i32, i32) {
    %c0_i32 = arith.constant 0 : i32
    %c0_i32_0 = arith.constant 0 : i32
    %c0_i32_1 = arith.constant 0 : i32
    return %c0_i32, %c0_i32_0 : i32, i32
  }
  func.func @transform_32(%arg0: i32) -> (i32, i32) {
    %c0_i32 = arith.constant 0 : i32
    %c0_i32_0 = arith.constant 0 : i32
    %c0_i32_1 = arith.constant 0 : i32
    return %c0_i32, %c0_i32_0 : i32, i32
  }
  func.func @transform_33(%arg0: i32) -> (i32, i32) {
    %c0_i32 = arith.constant 0 : i32
    %c0_i32_0 = arith.constant 0 : i32
    %c0_i32_1 = arith.constant 0 : i32
    return %c0_i32, %c0_i32_0 : i32, i32
  }
  func.func @transform_34(%arg0: i32) -> (i32, i32) {
    %c0_i32 = arith.constant 0 : i32
    %c0_i32_0 = arith.constant 0 : i32
    %c0_i32_1 = arith.constant 0 : i32
    return %c0_i32, %c0_i32_0 : i32, i32
  }
  func.func @transform_35(%arg0: i32) -> (i32, i32) {
    %c0_i32 = arith.constant 0 : i32
    %c0_i32_0 = arith.constant 0 : i32
    %c0_i32_1 = arith.constant 0 : i32
    return %c0_i32, %c0_i32_0 : i32, i32
  }
}

</mosaic_0001>

<bundles_post_ra>
// kernel: generator_forward.1
= control target key start
LH: loop header
LB: loop body
LE: loop exit
PB: predicated region body
PF: predicated region fallthrough
CT: control target
= control target key end

     0   :  { %s8380_s6 = smov 1   ;;  %s8381_s10 = smov 2   ;;  %s9213_s0 = inlined_call_operand.smem [shape: u32[36], index: -1, kind: input, shape index: {}] }
   0x1   :  { %s8470_s5 = sld [smem:[%s9213_s0]]   ;;  %s8382_s14 = smov 3  }
   0x2   :  { %s8475_s9 = sld [smem:[%s9213_s0 + %s8380_s6]]   ;;  %s8383_s18 = smov 4  }
   0x3   :  { %s8480_s13 = sld [smem:[%s9213_s0 + %s8381_s10]]   ;;  %s8384_s22 = smov 5  }
   0x4   :  { %s8485_s17 = sld [smem:[%s9213_s0 + %s8382_s14]]   ;;  %s8385_s26 = smov 6  }
   0x5   :  { %s8490_s21 = sld [smem:[%s9213_s0 + %s8383_s18]]   ;;  %s8386_s30 = smov 7  }
   0x6   :  { %s8495_s25 = sld [smem:[%s9213_s0 + %s8384_s22]]   ;;  %s8387_s4 = smov 8  }
   0x7   :  { %9232 = sst [smem:[#allocation72_spill]] %s8470_s5  ;;  %s8388_s10 = smov 9  }
   0x8   :  { %9233 = sst [smem:[#allocation73_spill]] %s8475_s9  ;;  %s8389_s15 = smov 10  }
   0x9   :  { %s8500_s29 = sld [smem:[%s9213_s0 + %s8385_s26]]   ;;  %s8390_s20 = smov 11  }
   0xa   :  { %9234 = sst [smem:[#allocation74_spill]] %s8485_s17  ;;  %s8391_s26 = smov 12  }
   0xb   :  { %s8505_s3 = sld [smem:[%s9213_s0 + %s8386_s30]]   ;;  %s8392_s1 = smov 13  }
   0xc   :  { %9235 = sst [smem:[#allocation75_spill]] %s8495_s25  ;;  %s8393_s7 = smov 14  }
   0xd   :  { %s8510_s8 = sld [smem:[%s9213_s0 + %s8387_s4]]   ;;  %s8395_s22 = smov 16  }
   0xe   :  { %s8515_s14 = sld [smem:[%s9213_s0 + %s8388_s10]]   ;;  %s8396_s28 = smov 17  }
   0xf   :  { %s8520_s19 = sld [smem:[%s9213_s0 + %s8389_s15]]   ;;  %s8394_s15 = smov 15  }
  0x10   :  { %s8525_s24 = sld [smem:[%s9213_s0 + %s8390_s20]]  }
  0x11   :  { %9236 = sst [smem:[#allocation76_spill]] %s8505_s3 }
  0x12   :  { %s8530_s30 = sld [smem:[%s9213_s0 + %s8391_s26]]  }
  0x13   :  { %s8535_s6 = sld [smem:[%s9213_s0 + %s8392_s1]]  }
  0x14   :  { %9237 = sst [smem:[#allocation77_spill]] %s8515_s14 }
  0x15   :  { %s8540_s12 = sld [smem:[%s9213_s0 + %s8393_s7]]   ;;  %s8397_s7 = smov 18  }
  0x16   :  { %9238 = sst [smem:[#allocation78_spill]] %s8525_s24 }
  0x17   :  { %s8545_s20 = sld [smem:[%s9213_s0 + %s8394_s15]]   ;;  %s8398_s15 = smov 19  }
  0x18   :  { %s8550_s27 = sld [smem:[%s9213_s0 + %s8395_s22]]   ;;  %s8399_s22 = smov 20  }
  0x19   :  { %9239 = sst [smem:[#allocation79_spill]] %s8535_s6 }
  0x1a   :  { %s8555_s4 = sld [smem:[%s9213_s0 + %s8396_s28]]   ;;  %s8400_s28 = smov 21  }
  0x1b   :  { %s8560_s9 = sld [smem:[%s9213_s0 + %s8397_s7]]   ;;  %s8401_s7 = smov 22  }
  0x1c   :  { %s8570_s6 = sld [smem:[%s9213_s0 + %s8399_s22]]   ;;  %s8403_s22 = smov 24  }
  0x1d   :  { %9240 = sst [smem:[#allocation80_spill]] %s8545_s20 }
  0x1e   :  { %s8565_s20 = sld [smem:[%s9213_s0 + %s8398_s15]]   ;;  %s8402_s15 = smov 23  }
  0x1f   :  { %s8580_s24 = sld [smem:[%s9213_s0 + %s8401_s7]]   ;;  %s8405_s7 = smov 26  }
  0x20   :  { %9241 = sst [smem:[#allocation81_spill]] %s8555_s4 }
  0x21   :  { %s8575_s4 = sld [smem:[%s9213_s0 + %s8400_s28]]   ;;  %s8404_s28 = smov 25  }
  0x22   :  { %s8590_s14 = sld [smem:[%s9213_s0 + %s8403_s22]]   ;;  %s8407_s22 = smov 28  }
  0x23   :  { %s8600_s3 = sld [smem:[%s9213_s0 + %s8405_s7]]   ;;  %s8409_s7 = smov 30  }
  0x24   :  { %9242 = sst [smem:[#allocation82_spill]] %s8565_s20 }
  0x25   :  { %s8585_s20 = sld [smem:[%s9213_s0 + %s8402_s15]]   ;;  %s8406_s15 = smov 27  }
  0x26   :  { %s8610_s25 = sld [smem:[%s9213_s0 + %s8407_s22]]   ;;  %s8411_s22 = smov 32  }
  0x27   :  { %9243 = sst [smem:[#allocation83_spill]] %s8575_s4 }
  0x28   :  { %s8595_s4 = sld [smem:[%s9213_s0 + %s8404_s28]]   ;;  %s8408_s28 = smov 29  }
  0x29   :  { %s8620_s17 = sld [smem:[%s9213_s0 + %s8409_s7]]   ;;  %s8413_s7 = smov 34  }
  0x2a   :  { %s8630_s5 = sld [smem:[%s9213_s0 + %s8411_s22]]  }
  0x2b   :  { %9244 = sst [smem:[#allocation84_spill]] %s8585_s20 }
  0x2c   :  { %s8605_s20 = sld [smem:[%s9213_s0 + %s8406_s15]]   ;;  %s8410_s15 = smov 31  }
  0x2e   :  { %9245 = sst [smem:[#allocation85_spill]] %s8595_s4 }
  0x2f   :  { %s8615_s4 = sld [smem:[%s9213_s0 + %s8408_s28]]   ;;  %s8412_s28 = smov 33  }
  0x30   :  { %9248 = sst [smem:[#allocation88_spill]] %s8620_s17 }
  0x31   :  { %s8640_s17 = sld [smem:[%s9213_s0 + %s8413_s7]]  }
  0x32   :  { %9246 = sst [smem:[#allocation86_spill]] %s8605_s20 }
  0x33   :  { %s8625_s20 = sld [smem:[%s9213_s0 + %s8410_s15]]   ;;  %s8414_s15 = smov 35  }
  0x35   :  { %9247 = sst [smem:[#allocation87_spill]] %s8615_s4 }
  0x36   :  { %s8635_s4 = sld [smem:[%s9213_s0 + %s8412_s28]]  }
  0x39   :  { %9249 = sst [smem:[#allocation89_spill]] %s8625_s20 }
  0x3a   :  { %s8645_s20 = sld [smem:[%s9213_s0 + %s8414_s15]]  }
  0x3b   :  { %76 = vsyncpa [#allocation3], 0 }
  0x3c   :  { %77 = vsyncpa [#allocation5], 0 }
  0x3d   :  { %78 = vsyncpa [#allocation8], 0 }
  0x3e   :  { %79 = vsyncpa [#allocation11], 0 }
  0x3f   :  { %80 = vsyncpa [#allocation14], 0 }
  0x40   :  { %81 = vsyncpa [#allocation17], 0 }
  0x41   :  { %82 = vsyncpa [#allocation20], 0 }
  0x42   :  { %83 = vsyncpa [#allocation23], 0 }
  0x43   :  { %84 = vsyncpa [#allocation26], 0 }
  0x44   :  { %85 = vsyncpa [#allocation29], 0 }
  0x45   :  { %86 = vsyncpa [#allocation32], 0 }
  0x46   :  { %87 = vsyncpa [#allocation35], 0 }
  0x47   :  { %88 = vsyncpa [#allocation38], 0 }
  0x48   :  { %89 = vsyncpa [#allocation41], 0 }
  0x49   :  { %90 = vsyncpa [#allocation44], 0 }
  0x4a   :  { %91 = vsyncpa [#allocation47], 0 }
  0x4b   :  { %92 = vsyncpa [#allocation50], 0 }
  0x4c   :  { %93 = vsyncpa [#allocation53], 0  ;;  %s8415_s0 = smov [#allocation4]   ;;  %s8416_s23 = smov [#allocation7]  }
  0x4d   :  { %s112_s22 = sshll.u32 %s8415_s0, 4  ;;  %s133_s26 = sshll.u32 %s8416_s23, 4  ;;  %s113_s22 = int_to_ptr.vmem [resolvable:$true] %s112_s22  ;;  %s8647_s26 = int_to_ptr.vmem [resolvable:$true] %s133_s26 }
  0x4e   :  { %s7596_s28 = scalar_lea.hbm %s8480_s13, 16 }
  0x4f   :  { %p7597_p0 = scmp.ne.s32.totalorder %s8480_s13, %s7596_s28  ;;  %p7600_p1 = scmp.lt.u32.totalorder %s7596_s28, %s8480_s13 }
  0x51   :  { %p7602_p2 = pnand %p7600_p1, %p7597_p0 }
  0x53   :  { %7605 = shalt.err (!%p7602_p2)
}
  0x54   :  { %s7606_s1 = scalar_lea.vmem %s113_s22, 16  ;;  %s7610_s2 = scalar_lea.vmem %s113_s22, 32 }
  0x55   :  { %p7607_p3 = scmp.ne.s32.totalorder %s113_s22, %s7606_s1  ;;  %p7611_p4 = scmp.lt.s32.totalorder %s113_s22, %s113_s22 }
  0x56   :  { %p7612_p5 = scmp.lt.s32.totalorder %s7610_s2, %s7606_s1 }
  0x58   :  { %p7613_p6 = por %p7612_p5, %p7611_p4 }
  0x5a   :  { %p7614_p7 = pnand %p7613_p6, %p7607_p3 }
  0x5c   :  { %7617 = shalt.err (!%p7614_p7)
}
  0x5d   :  { %115 = dma.hbm_to_vmem [thread:$0]  %s8480_s13, 16, %s113_s22, [#allocation5]  }
  0x5e   :  { %s7618_s7 = scalar_lea.hbm %s8490_s21, 256 }
  0x5f   :  { %p7619_p8 = scmp.ne.s32.totalorder %s8490_s21, %s7618_s7  ;;  %p7622_p9 = scmp.lt.u32.totalorder %s7618_s7, %s8490_s21 }
  0x61   :  { %p7624_p10 = pnand %p7622_p9, %p7619_p8 }
  0x63   :  { %7627 = shalt.err (!%p7624_p10)
}
  0x64   :  { %s7628_s10 = scalar_lea.vmem %s8647_s26, 256  ;;  %p7633_p12 = scmp.lt.s32.totalorder %s8647_s26, %s8647_s26 }
  0x65   :  { %p7629_p11 = scmp.ne.s32.totalorder %s8647_s26, %s7628_s10  ;;  %p7634_p13 = scmp.lt.s32.totalorder %s7628_s10, %s7628_s10 }
  0x67   :  { %p7635_p0 = por %p7634_p13, %p7633_p12 }
  0x69   :  { %p7636_p1 = pnand %p7635_p0, %p7629_p11 }
  0x6b   :  { %7639 = shalt.err (!%p7636_p1)
}
  0x6c   :  { %s8417_s11 = smov 64   ;;  %s8418_s13 = smov 4  }
  0x6d   :  { %139 = dma.hbm_to_vmem [thread:$0]  %s8490_s21, 256, %s8647_s26, [#allocation8], %s8417_s11, %s8417_s11, %s8418_s13  }
  0x6e   :  { %s8419_s15 = smov [#allocation10]   ;;  %s8420_s18 = smov [#allocation13]  }
  0x6f   :  { %s156_s16 = sshll.u32 %s8419_s15, 4  ;;  %s178_s0 = sshll.u32 %s8420_s18, 4  ;;  %s157_s16 = int_to_ptr.vmem [resolvable:$true] %s156_s16  ;;  %s179_s0 = int_to_ptr.vmem [resolvable:$true] %s178_s0 }
  0x70   :  { %s7640_s22 = scalar_lea.hbm %s8500_s29, 16 }
  0x71   :  { %p7641_p2 = scmp.ne.s32.totalorder %s8500_s29, %s7640_s22  ;;  %p7644_p3 = scmp.lt.u32.totalorder %s7640_s22, %s8500_s29 }
  0x73   :  { %p7646_p4 = pnand %p7644_p3, %p7641_p2 }
  0x75   :  { %7649 = shalt.err (!%p7646_p4)
}
  0x76   :  { %s7650_s23 = scalar_lea.vmem %s157_s16, 16  ;;  %s7654_s28 = scalar_lea.vmem %s157_s16, 32 }
  0x77   :  { %p7651_p5 = scmp.ne.s32.totalorder %s157_s16, %s7650_s23  ;;  %p7655_p6 = scmp.lt.s32.totalorder %s157_s16, %s157_s16 }
  0x78   :  { %p7656_p7 = scmp.lt.s32.totalorder %s7654_s28, %s7650_s23 }
  0x7a   :  { %p7657_p8 = por %p7656_p7, %p7655_p6 }
  0x7c   :  { %p7658_p9 = pnand %p7657_p8, %p7651_p5 }
  0x7e   :  { %7661 = shalt.err (!%p7658_p9)
}
  0x7f   :  { %159 = dma.hbm_to_vmem [thread:$0]  %s8500_s29, 16, %s157_s16, [#allocation11]  }
  0x80   :  { %s7662_s21 = scalar_lea.hbm %s8510_s8, 16 }
  0x81   :  { %p7663_p10 = scmp.ne.s32.totalorder %s8510_s8, %s7662_s21  ;;  %p7666_p11 = scmp.lt.u32.totalorder %s7662_s21, %s8510_s8 }
  0x83   :  { %p7668_p12 = pnand %p7666_p11, %p7663_p10 }
  0x85   :  { %7671 = shalt.err (!%p7668_p12)
}
  0x86   :  { %s7672_s26 = scalar_lea.vmem %s179_s0, 16  ;;  %s7676_s1 = scalar_lea.vmem %s179_s0, 32 }
  0x87   :  { %p7673_p13 = scmp.ne.s32.totalorder %s179_s0, %s7672_s26  ;;  %p7677_p0 = scmp.lt.s32.totalorder %s179_s0, %s179_s0 }
  0x88   :  { %p7678_p1 = scmp.lt.s32.totalorder %s7676_s1, %s7672_s26 }
  0x8a   :  { %p7679_p2 = por %p7678_p1, %p7677_p0 }
  0x8c   :  { %p7680_p3 = pnand %p7679_p2, %p7673_p13 }
  0x8e   :  { %7683 = shalt.err (!%p7680_p3)
}
  0x8f   :  { %181 = dma.hbm_to_vmem [thread:$0]  %s8510_s8, 16, %s179_s0, [#allocation14]  }
  0x90   :  { %s8421_s2 = smov [#allocation16]   ;;  %s8422_s7 = smov [#allocation19]  }
  0x91   :  { %s197_s29 = sshll.u32 %s8421_s2, 4  ;;  %s220_s10 = sshll.u32 %s8422_s7, 4  ;;  %s198_s29 = int_to_ptr.vmem [resolvable:$true] %s197_s29  ;;  %s221_s10 = int_to_ptr.vmem [resolvable:$true] %s220_s10 }
  0x92   :  { %s7684_s15 = scalar_lea.hbm %s8520_s19, 256 }
  0x93   :  { %p7685_p4 = scmp.ne.s32.totalorder %s8520_s19, %s7684_s15  ;;  %p7688_p5 = scmp.lt.u32.totalorder %s7684_s15, %s8520_s19 }
  0x95   :  { %p7690_p6 = pnand %p7688_p5, %p7685_p4 }
  0x97   :  { %7693 = shalt.err (!%p7690_p6)
}
  0x98   :  { %s7694_s16 = scalar_lea.vmem %s198_s29, 256  ;;  %p7699_p8 = scmp.lt.s32.totalorder %s198_s29, %s198_s29 }
  0x99   :  { %p7695_p7 = scmp.ne.s32.totalorder %s198_s29, %s7694_s16  ;;  %p7700_p9 = scmp.lt.s32.totalorder %s7694_s16, %s7694_s16 }
  0x9b   :  { %p7701_p10 = por %p7700_p9, %p7699_p8 }
  0x9d   :  { %p7702_p11 = pnand %p7701_p10, %p7695_p7 }
  0x9f   :  { %7705 = shalt.err (!%p7702_p11)
}
  0xa0   :  { %203 = dma.hbm_to_vmem [thread:$0]  %s8520_s19, 256, %s198_s29, [#allocation17], %s8417_s11, %s8417_s11, %s8418_s13  }
  0xa1   :  { %s7706_s8 = scalar_lea.hbm %s8530_s30, 16 }
  0xa2   :  { %p7707_p12 = scmp.ne.s32.totalorder %s8530_s30, %s7706_s8  ;;  %p7710_p13 = scmp.lt.u32.totalorder %s7706_s8, %s8530_s30 }
  0xa4   :  { %p7712_p0 = pnand %p7710_p13, %p7707_p12 }
  0xa6   :  { %7715 = shalt.err (!%p7712_p0)
}
  0xa7   :  { %s7716_s18 = scalar_lea.vmem %s221_s10, 16  ;;  %s7720_s0 = scalar_lea.vmem %s221_s10, 32 }
  0xa8   :  { %p7717_p1 = scmp.ne.s32.totalorder %s221_s10, %s7716_s18  ;;  %p7721_p2 = scmp.lt.s32.totalorder %s221_s10, %s221_s10 }
  0xa9   :  { %p7722_p3 = scmp.lt.s32.totalorder %s7720_s0, %s7716_s18 }
  0xab   :  { %p7723_p4 = por %p7722_p3, %p7721_p2 }
  0xad   :  { %p7724_p5 = pnand %p7723_p4, %p7717_p1 }
  0xaf   :  { %7727 = shalt.err (!%p7724_p5)
}
  0xb0   :  { %223 = dma.hbm_to_vmem [thread:$0]  %s8530_s30, 16, %s221_s10, [#allocation20]  }
  0xb1   :  { %s8423_s22 = smov [#allocation22]   ;;  %s8424_s23 = smov [#allocation25]  }
  0xb2   :  { %s242_s19 = sshll.u32 %s8423_s22, 4  ;;  %s261_s28 = sshll.u32 %s8424_s23, 4  ;;  %s243_s19 = int_to_ptr.vmem [resolvable:$true] %s242_s19  ;;  %s8684_s28 = int_to_ptr.vmem [resolvable:$true] %s261_s28 }
  0xb3   :  { %s7728_s21 = scalar_lea.hbm %s8540_s12, 16 }
  0xb4   :  { %p7729_p6 = scmp.ne.s32.totalorder %s8540_s12, %s7728_s21  ;;  %p7732_p7 = scmp.lt.u32.totalorder %s7728_s21, %s8540_s12 }
  0xb6   :  { %p7734_p8 = pnand %p7732_p7, %p7729_p6 }
  0xb8   :  { %7737 = shalt.err (!%p7734_p8)
}
  0xb9   :  { %s7738_s26 = scalar_lea.vmem %s243_s19, 16  ;;  %s7742_s1 = scalar_lea.vmem %s243_s19, 32 }
  0xba   :  { %p7739_p9 = scmp.ne.s32.totalorder %s243_s19, %s7738_s26  ;;  %p7743_p10 = scmp.lt.s32.totalorder %s243_s19, %s243_s19 }
  0xbb   :  { %p7744_p11 = scmp.lt.s32.totalorder %s7742_s1, %s7738_s26 }
  0xbd   :  { %p7745_p12 = por %p7744_p11, %p7743_p10 }
  0xbf   :  { %p7746_p13 = pnand %p7745_p12, %p7739_p9 }
  0xc1   :  { %7749 = shalt.err (!%p7746_p13)
}
  0xc2   :  { %245 = dma.hbm_to_vmem [thread:$0]  %s8540_s12, 16, %s243_s19, [#allocation23]  }
  0xc3   :  { %s7750_s30 = scalar_lea.hbm %s8550_s27, 256 }
  0xc4   :  { %p7751_p0 = scmp.ne.s32.totalorder %s8550_s27, %s7750_s30  ;;  %p7754_p1 = scmp.lt.u32.totalorder %s7750_s30, %s8550_s27 }
  0xc6   :  { %p7756_p2 = pnand %p7754_p1, %p7751_p0 }
  0xc8   :  { %7759 = shalt.err (!%p7756_p2)
}
  0xc9   :  { %s7760_s2 = scalar_lea.vmem %s8684_s28, 256  ;;  %p7765_p4 = scmp.lt.s32.totalorder %s8684_s28, %s8684_s28 }
  0xca   :  { %p7761_p3 = scmp.ne.s32.totalorder %s8684_s28, %s7760_s2  ;;  %p7766_p5 = scmp.lt.s32.totalorder %s7760_s2, %s7760_s2 }
  0xcc   :  { %p7767_p6 = por %p7766_p5, %p7765_p4 }
  0xce   :  { %p7768_p7 = pnand %p7767_p6, %p7761_p3 }
  0xd0   :  { %7771 = shalt.err (!%p7768_p7)
}
  0xd1   :  { %267 = dma.hbm_to_vmem [thread:$0]  %s8550_s27, 256, %s8684_s28, [#allocation26], %s8417_s11, %s8417_s11, %s8418_s13  }
  0xd2   :  { %s8425_s12 = smov [#allocation28]   ;;  %s8426_s7 = smov [#allocation31]  }
  0xd3   :  { %s284_s29 = sshll.u32 %s8425_s12, 4  ;;  %s306_s10 = sshll.u32 %s8426_s7, 4  ;;  %s285_s29 = int_to_ptr.vmem [resolvable:$true] %s284_s29  ;;  %s307_s10 = int_to_ptr.vmem [resolvable:$true] %s306_s10 }
  0xd4   :  { %s7772_s15 = scalar_lea.hbm %s8560_s9, 16 }
  0xd5   :  { %p7773_p8 = scmp.ne.s32.totalorder %s8560_s9, %s7772_s15  ;;  %p7776_p9 = scmp.lt.u32.totalorder %s7772_s15, %s8560_s9 }
  0xd7   :  { %p7778_p10 = pnand %p7776_p9, %p7773_p8 }
  0xd9   :  { %7781 = shalt.err (!%p7778_p10)
}
  0xda   :  { %s7782_s16 = scalar_lea.vmem %s285_s29, 16  ;;  %s7786_s8 = scalar_lea.vmem %s285_s29, 32 }
  0xdb   :  { %p7783_p11 = scmp.ne.s32.totalorder %s285_s29, %s7782_s16  ;;  %p7787_p12 = scmp.lt.s32.totalorder %s285_s29, %s285_s29 }
  0xdc   :  { %p7788_p13 = scmp.lt.s32.totalorder %s7786_s8, %s7782_s16 }
  0xde   :  { %p7789_p0 = por %p7788_p13, %p7787_p12 }
  0xe0   :  { %p7790_p1 = pnand %p7789_p0, %p7783_p11 }
  0xe2   :  { %7793 = shalt.err (!%p7790_p1)
}
  0xe3   :  { %287 = dma.hbm_to_vmem [thread:$0]  %s8560_s9, 16, %s285_s29, [#allocation29]  }
  0xe4   :  { %s7794_s27 = scalar_lea.hbm %s8570_s6, 16 }
  0xe5   :  { %p7795_p2 = scmp.ne.s32.totalorder %s8570_s6, %s7794_s27  ;;  %p7798_p3 = scmp.lt.u32.totalorder %s7794_s27, %s8570_s6 }
  0xe7   :  { %p7800_p4 = pnand %p7798_p3, %p7795_p2 }
  0xe9   :  { %7803 = shalt.err (!%p7800_p4)
}
  0xea   :  { %s7804_s18 = scalar_lea.vmem %s307_s10, 16  ;;  %s7808_s0 = scalar_lea.vmem %s307_s10, 32 }
  0xeb   :  { %p7805_p5 = scmp.ne.s32.totalorder %s307_s10, %s7804_s18  ;;  %p7809_p6 = scmp.lt.s32.totalorder %s307_s10, %s307_s10 }
  0xec   :  { %p7810_p7 = scmp.lt.s32.totalorder %s7808_s0, %s7804_s18 }
  0xee   :  { %p7811_p8 = por %p7810_p7, %p7809_p6 }
  0xf0   :  { %p7812_p9 = pnand %p7811_p8, %p7805_p5 }
  0xf2   :  { %7815 = shalt.err (!%p7812_p9)
}
  0xf3   :  { %309 = dma.hbm_to_vmem [thread:$0]  %s8570_s6, 16, %s307_s10, [#allocation32]  }
  0xf4   :  { %s8427_s22 = smov [#allocation34]   ;;  %s8428_s19 = smov [#allocation37]  }
  0xf5   :  { %s325_s9 = sshll.u32 %s8427_s22, 4  ;;  %s348_s23 = sshll.u32 %s8428_s19, 4  ;;  %s326_s9 = int_to_ptr.vmem [resolvable:$true] %s325_s9  ;;  %s349_s23 = int_to_ptr.vmem [resolvable:$true] %s348_s23 }
  0xf6   :  { %s7816_s28 = scalar_lea.hbm %s8580_s24, 256 }
  0xf7   :  { %p7817_p10 = scmp.ne.s32.totalorder %s8580_s24, %s7816_s28  ;;  %p7820_p11 = scmp.lt.u32.totalorder %s7816_s28, %s8580_s24 }
  0xf9   :  { %p7822_p12 = pnand %p7820_p11, %p7817_p10 }
  0xfb   :  { %7825 = shalt.err (!%p7822_p12)
}
  0xfc   :  { %s7826_s21 = scalar_lea.vmem %s326_s9, 256  ;;  %p7831_p0 = scmp.lt.s32.totalorder %s326_s9, %s326_s9 }
  0xfd   :  { %p7827_p13 = scmp.ne.s32.totalorder %s326_s9, %s7826_s21  ;;  %p7832_p1 = scmp.lt.s32.totalorder %s7826_s21, %s7826_s21 }
  0xff   :  { %p7833_p2 = por %p7832_p1, %p7831_p0 }
 0x101   :  { %p7834_p3 = pnand %p7833_p2, %p7827_p13 }
 0x103   :  { %7837 = shalt.err (!%p7834_p3)
}
 0x104   :  { %331 = dma.hbm_to_vmem [thread:$0]  %s8580_s24, 256, %s326_s9, [#allocation35], %s8417_s11, %s8417_s11, %s8418_s13  }
 0x105   :  { %s7838_s6 = scalar_lea.hbm %s8590_s14, 16 }
 0x106   :  { %p7839_p4 = scmp.ne.s32.totalorder %s8590_s14, %s7838_s6  ;;  %p7842_p5 = scmp.lt.u32.totalorder %s7838_s6, %s8590_s14 }
 0x108   :  { %p7844_p6 = pnand %p7842_p5, %p7839_p4 }
 0x10a   :  { %7847 = shalt.err (!%p7844_p6)
}
 0x10b   :  { %s7848_s26 = scalar_lea.vmem %s349_s23, 16  ;;  %s7852_s1 = scalar_lea.vmem %s349_s23, 32 }
 0x10c   :  { %p7849_p7 = scmp.ne.s32.totalorder %s349_s23, %s7848_s26  ;;  %p7853_p8 = scmp.lt.s32.totalorder %s349_s23, %s349_s23 }
 0x10d   :  { %p7854_p9 = scmp.lt.s32.totalorder %s7852_s1, %s7848_s26 }
 0x10f   :  { %p7855_p10 = por %p7854_p9, %p7853_p8 }
 0x111   :  { %p7856_p11 = pnand %p7855_p10, %p7849_p7 }
 0x113   :  { %7859 = shalt.err (!%p7856_p11)
}
 0x114   :  { %351 = dma.hbm_to_vmem [thread:$0]  %s8590_s14, 16, %s349_s23, [#allocation38]  }
 0x115   :  { %s8429_s30 = smov [#allocation40]   ;;  %s8430_s2 = smov [#allocation43]  }
 0x116   :  { %s369_s24 = sshll.u32 %s8429_s30, 4  ;;  %s392_s12 = sshll.u32 %s8430_s2, 4  ;;  %s370_s24 = int_to_ptr.vmem [resolvable:$true] %s369_s24  ;;  %s393_s12 = int_to_ptr.vmem [resolvable:$true] %s392_s12 }
 0x117   :  { %s7860_s29 = scalar_lea.hbm %s8600_s3, 512 }
 0x118   :  { %p7861_p12 = scmp.ne.s32.totalorder %s8600_s3, %s7860_s29  ;;  %p7864_p13 = scmp.lt.u32.totalorder %s7860_s29, %s8600_s3 }
 0x11a   :  { %p7866_p0 = pnand %p7864_p13, %p7861_p12 }
 0x11c   :  { %7869 = shalt.err (!%p7866_p0)
}
 0x11d   :  { %s7870_s7 = scalar_lea.vmem %s370_s24, 512  ;;  %p7875_p2 = scmp.lt.s32.totalorder %s370_s24, %s370_s24 }
 0x11e   :  { %p7871_p1 = scmp.ne.s32.totalorder %s370_s24, %s7870_s7  ;;  %p7876_p3 = scmp.lt.s32.totalorder %s7870_s7, %s7870_s7 }
 0x120   :  { %p7877_p4 = por %p7876_p3, %p7875_p2 }
 0x122   :  { %p7878_p5 = pnand %p7877_p4, %p7871_p1 }
 0x124   :  { %7881 = shalt.err (!%p7878_p5)
}
 0x125   :  { %375 = dma.hbm_to_vmem [thread:$0]  %s8600_s3, 512, %s370_s24, [#allocation41], %s8417_s11, %s8417_s11, %s8418_s13  }
 0x126   :  { %s7882_s14 = scalar_lea.hbm %s8610_s25, 16 }
 0x127   :  { %p7883_p6 = scmp.ne.s32.totalorder %s8610_s25, %s7882_s14  ;;  %p7886_p7 = scmp.lt.u32.totalorder %s7882_s14, %s8610_s25 }
 0x129   :  { %p7888_p8 = pnand %p7886_p7, %p7883_p6 }
 0x12b   :  { %7891 = shalt.err (!%p7888_p8)
}
 0x12c   :  { %s7892_s10 = scalar_lea.vmem %s393_s12, 16  ;;  %s7896_s15 = scalar_lea.vmem %s393_s12, 32 }
 0x12d   :  { %p7893_p9 = scmp.ne.s32.totalorder %s393_s12, %s7892_s10  ;;  %p7897_p10 = scmp.lt.s32.totalorder %s393_s12, %s393_s12 }
 0x12e   :  { %p7898_p11 = scmp.lt.s32.totalorder %s7896_s15, %s7892_s10 }
 0x130   :  { %p7899_p12 = por %p7898_p11, %p7897_p10 }
 0x132   :  { %p7900_p13 = pnand %p7899_p12, %p7893_p9 }
 0x134   :  { %7903 = shalt.err (!%p7900_p13)
}
 0x135   :  { %s9250_s16 = sld [smem:[#allocation88_spill]]  ;;  %s8431_s8 = smov [#allocation46]  }
 0x136   :  { %395 = dma.hbm_to_vmem [thread:$0]  %s8610_s25, 16, %s393_s12, [#allocation44]  }
 0x137   :  { %s413_s3 = sshll.u32 %s8431_s8, 4  ;;  %s8432_s27 = smov [#allocation49]   ;;  %s414_s3 = int_to_ptr.vmem [resolvable:$true] %s413_s3 }
 0x138   :  { %s436_s18 = sshll.u32 %s8432_s27, 4  ;;  %s437_s18 = int_to_ptr.vmem [resolvable:$true] %s436_s18 }
 0x13b   :  { %s7904_s0 = scalar_lea.hbm %s9250_s16, 2048 }
 0x13c   :  { %p7905_p0 = scmp.ne.s32.totalorder %s9250_s16, %s7904_s0  ;;  %p7908_p1 = scmp.lt.u32.totalorder %s7904_s0, %s9250_s16 }
 0x13e   :  { %p7910_p2 = pnand %p7908_p1, %p7905_p0 }
 0x140   :  { %7913 = shalt.err (!%p7910_p2)
}
 0x141   :  { %s7914_s22 = scalar_lea.vmem %s414_s3, 2048  ;;  %p7919_p4 = scmp.lt.s32.totalorder %s414_s3, %s414_s3 }
 0x142   :  { %p7915_p3 = scmp.ne.s32.totalorder %s414_s3, %s7914_s22  ;;  %p7920_p5 = scmp.lt.s32.totalorder %s7914_s22, %s7914_s22 }
 0x144   :  { %p7921_p6 = por %p7920_p5, %p7919_p4 }
 0x146   :  { %p7922_p7 = pnand %p7921_p6, %p7915_p3 }
 0x148   :  { %7925 = shalt.err (!%p7922_p7)
}
 0x149   :  { %s8433_s9 = smov 128   ;;  %s8434_s25 = smov 8  }
 0x14a   :  { %419 = dma.hbm_to_vmem [thread:$0]  %s9250_s16, 2048, %s414_s3, [#allocation47], %s8433_s9, %s8433_s9, %s8434_s25  }
 0x14b   :  { %s7926_s19 = scalar_lea.hbm %s8630_s5, 32 }
 0x14c   :  { %p7927_p8 = scmp.ne.s32.totalorder %s8630_s5, %s7926_s19  ;;  %p7930_p9 = scmp.lt.u32.totalorder %s7926_s19, %s8630_s5 }
 0x14e   :  { %p7932_p10 = pnand %p7930_p9, %p7927_p8 }
 0x150   :  { %7935 = shalt.err (!%p7932_p10)
}
 0x151   :  { %s7936_s23 = scalar_lea.vmem %s437_s18, 32  ;;  %p7941_p12 = scmp.lt.s32.totalorder %s437_s18, %s437_s18 }
 0x152   :  { %p7937_p11 = scmp.ne.s32.totalorder %s437_s18, %s7936_s23  ;;  %p7942_p13 = scmp.lt.s32.totalorder %s7936_s23, %s7936_s23 }
 0x154   :  { %p7943_p0 = por %p7942_p13, %p7941_p12 }
 0x156   :  { %p7944_p1 = pnand %p7943_p0, %p7937_p11 }
 0x158   :  { %7947 = shalt.err (!%p7944_p1)
}
 0x159   :  { %s9251_s28 = sld [smem:[#allocation72_spill]]  ;;  %s8435_s21 = smov [#allocation2]  }
 0x15a   :  { %439 = dma.hbm_to_vmem [thread:$0]  %s8630_s5, 32, %s437_s18, [#allocation50]  }
 0x15b   :  { %s100_s6 = sshll.u32 %s8435_s21, 4  ;;  %s8436_s26 = smov [#allocation6]   ;;  %s101_s6 = int_to_ptr.vmem [resolvable:$true] %s100_s6 }
 0x15c   :  { %s121_s1 = sshll.u32 %s8436_s26, 4  ;;  %s8743_s1 = int_to_ptr.vmem [resolvable:$true] %s121_s1 }
 0x15f   :  { %s7948_s30 = scalar_lea.hbm %s9251_s28, 32 }
 0x160   :  { %p7949_p2 = scmp.ne.s32.totalorder %s9251_s28, %s7948_s30  ;;  %p7952_p3 = scmp.lt.u32.totalorder %s7948_s30, %s9251_s28 }
 0x162   :  { %p7954_p4 = pnand %p7952_p3, %p7949_p2 }
 0x164   :  { %7957 = shalt.err (!%p7954_p4)
}
 0x165   :  { %s7958_s24 = scalar_lea.vmem %s101_s6, 32  ;;  %p7963_p6 = scmp.lt.s32.totalorder %s101_s6, %s101_s6 }
 0x166   :  { %p7959_p5 = scmp.ne.s32.totalorder %s101_s6, %s7958_s24  ;;  %p7964_p7 = scmp.lt.s32.totalorder %s7958_s24, %s7958_s24 }
 0x168   :  { %p7965_p8 = por %p7964_p7, %p7963_p6 }
 0x16a   :  { %p7966_p9 = pnand %p7965_p8, %p7959_p5 }
 0x16c   :  { %7969 = shalt.err (!%p7966_p9)
}
 0x16d   :  { %s9252_s5 = sld [smem:[#allocation74_spill]] }
 0x16e   :  { %103 = dma.hbm_to_vmem [thread:$0]  %s9251_s28, 32, %s101_s6, [#allocation3]  }
 0x173   :  { %s7970_s2 = scalar_lea.hbm %s9252_s5, 512 }
 0x174   :  { %p7971_p10 = scmp.ne.s32.totalorder %s9252_s5, %s7970_s2  ;;  %p7974_p11 = scmp.lt.u32.totalorder %s7970_s2, %s9252_s5 }
 0x176   :  { %p7976_p12 = pnand %p7974_p11, %p7971_p10 }
 0x178   :  { %7979 = shalt.err (!%p7976_p12)
}
 0x179   :  { %s7980_s12 = scalar_lea.vmem %s8743_s1, 512  ;;  %p7985_p0 = scmp.lt.s32.totalorder %s8743_s1, %s8743_s1 }
 0x17a   :  { %p7981_p13 = scmp.ne.s32.totalorder %s8743_s1, %s7980_s12  ;;  %p7986_p1 = scmp.lt.s32.totalorder %s7980_s12, %s7980_s12 }
 0x17c   :  { %p7987_p2 = por %p7986_p1, %p7985_p0 }
 0x17e   :  { %p7988_p3 = pnand %p7987_p2, %p7981_p13 }
 0x180   :  { %7991 = shalt.err (!%p7988_p3)
}
 0x181   :  { %s9253_s29 = sld [smem:[#allocation75_spill]]  ;;  %s8437_s7 = smov [#allocation9]  }
 0x182   :  { %127 = dma.hbm_to_vmem [thread:$0]  %s9252_s5, 512, %s8743_s1, [#allocation5], %s8433_s9, %s8433_s9, %s8434_s25  }
 0x183   :  { %s146_s14 = sshll.u32 %s8437_s7, 4  ;;  %s8438_s10 = smov [#allocation12]   ;;  %s147_s14 = int_to_ptr.vmem [resolvable:$true] %s146_s14 }
 0x184   :  { %s165_s15 = sshll.u32 %s8438_s10, 4  ;;  %s8761_s15 = int_to_ptr.vmem [resolvable:$true] %s165_s15 }
 0x187   :  { %s7992_s16 = scalar_lea.hbm %s9253_s29, 16 }
 0x188   :  { %p7993_p4 = scmp.ne.s32.totalorder %s9253_s29, %s7992_s16  ;;  %p7996_p5 = scmp.lt.u32.totalorder %s7992_s16, %s9253_s29 }
 0x18a   :  { %p7998_p6 = pnand %p7996_p5, %p7993_p4 }
 0x18c   :  { %8001 = shalt.err (!%p7998_p6)
}
 0x18d   :  { %s8002_s8 = scalar_lea.vmem %s147_s14, 16  ;;  %s8006_s3 = scalar_lea.vmem %s147_s14, 32 }
 0x18e   :  { %p8003_p7 = scmp.ne.s32.totalorder %s147_s14, %s8002_s8  ;;  %p8007_p8 = scmp.lt.s32.totalorder %s147_s14, %s147_s14 }
 0x18f   :  { %p8008_p9 = scmp.lt.s32.totalorder %s8006_s3, %s8002_s8 }
 0x191   :  { %p8009_p10 = por %p8008_p9, %p8007_p8 }
 0x193   :  { %p8010_p11 = pnand %p8009_p10, %p8003_p7 }
 0x195   :  { %8013 = shalt.err (!%p8010_p11)
}
 0x196   :  { %s9254_s27 = sld [smem:[#allocation76_spill]] }
 0x197   :  { %149 = dma.hbm_to_vmem [thread:$0]  %s9253_s29, 16, %s147_s14, [#allocation8]  }
 0x19c   :  { %s8014_s18 = scalar_lea.hbm %s9254_s27, 256 }
 0x19d   :  { %p8015_p12 = scmp.ne.s32.totalorder %s9254_s27, %s8014_s18  ;;  %p8018_p13 = scmp.lt.u32.totalorder %s8014_s18, %s9254_s27 }
 0x19f   :  { %p8020_p0 = pnand %p8018_p13, %p8015_p12 }
 0x1a1   :  { %8023 = shalt.err (!%p8020_p0)
}
 0x1a2   :  { %s8024_s0 = scalar_lea.vmem %s8761_s15, 256  ;;  %p8029_p2 = scmp.lt.s32.totalorder %s8761_s15, %s8761_s15 }
 0x1a3   :  { %p8025_p1 = scmp.ne.s32.totalorder %s8761_s15, %s8024_s0  ;;  %p8030_p3 = scmp.lt.s32.totalorder %s8024_s0, %s8024_s0 }
 0x1a5   :  { %p8031_p4 = por %p8030_p3, %p8029_p2 }
 0x1a7   :  { %p8032_p5 = pnand %p8031_p4, %p8025_p1 }
 0x1a9   :  { %8035 = shalt.err (!%p8032_p5)
}
 0x1aa   :  { %s9255_s22 = sld [smem:[#allocation77_spill]]  ;;  %s8439_s19 = smov [#allocation15]  }
 0x1ab   :  { %171 = dma.hbm_to_vmem [thread:$0]  %s9254_s27, 256, %s8761_s15, [#allocation11], %s8417_s11, %s8417_s11, %s8418_s13  }
 0x1ac   :  { %s188_s23 = sshll.u32 %s8439_s19, 4  ;;  %s8440_s28 = smov [#allocation18]   ;;  %s189_s23 = int_to_ptr.vmem [resolvable:$true] %s188_s23 }
 0x1ad   :  { %s210_s21 = sshll.u32 %s8440_s28, 4  ;;  %s211_s21 = int_to_ptr.vmem [resolvable:$true] %s210_s21 }
 0x1b0   :  { %s8036_s6 = scalar_lea.hbm %s9255_s22, 16 }
 0x1b1   :  { %p8037_p6 = scmp.ne.s32.totalorder %s9255_s22, %s8036_s6  ;;  %p8040_p7 = scmp.lt.u32.totalorder %s8036_s6, %s9255_s22 }
 0x1b3   :  { %p8042_p8 = pnand %p8040_p7, %p8037_p6 }
 0x1b5   :  { %8045 = shalt.err (!%p8042_p8)
}
 0x1b6   :  { %s8046_s26 = scalar_lea.vmem %s189_s23, 16  ;;  %s8050_s1 = scalar_lea.vmem %s189_s23, 32 }
 0x1b7   :  { %p8047_p9 = scmp.ne.s32.totalorder %s189_s23, %s8046_s26  ;;  %p8051_p10 = scmp.lt.s32.totalorder %s189_s23, %s189_s23 }
 0x1b8   :  { %p8052_p11 = scmp.lt.s32.totalorder %s8050_s1, %s8046_s26 }
 0x1ba   :  { %p8053_p12 = por %p8052_p11, %p8051_p10 }
 0x1bc   :  { %p8054_p13 = pnand %p8053_p12, %p8047_p9 }
 0x1be   :  { %8057 = shalt.err (!%p8054_p13)
}
 0x1bf   :  { %s9256_s30 = sld [smem:[#allocation78_spill]] }
 0x1c0   :  { %191 = dma.hbm_to_vmem [thread:$0]  %s9255_s22, 16, %s189_s23, [#allocation14]  }
 0x1c5   :  { %s8058_s24 = scalar_lea.hbm %s9256_s30, 16 }
 0x1c6   :  { %p8059_p0 = scmp.ne.s32.totalorder %s9256_s30, %s8058_s24  ;;  %p8062_p1 = scmp.lt.u32.totalorder %s8058_s24, %s9256_s30 }
 0x1c8   :  { %p8064_p2 = pnand %p8062_p1, %p8059_p0 }
 0x1ca   :  { %8067 = shalt.err (!%p8064_p2)
}
 0x1cb   :  { %s8068_s5 = scalar_lea.vmem %s211_s21, 16  ;;  %s8072_s2 = scalar_lea.vmem %s211_s21, 32 }
 0x1cc   :  { %p8069_p3 = scmp.ne.s32.totalorder %s211_s21, %s8068_s5  ;;  %p8073_p4 = scmp.lt.s32.totalorder %s211_s21, %s211_s21 }
 0x1cd   :  { %p8074_p5 = scmp.lt.s32.totalorder %s8072_s2, %s8068_s5 }
 0x1cf   :  { %p8075_p6 = por %p8074_p5, %p8073_p4 }
 0x1d1   :  { %p8076_p7 = pnand %p8075_p6, %p8069_p3 }
 0x1d3   :  { %8079 = shalt.err (!%p8076_p7)
}
 0x1d4   :  { %s9257_s12 = sld [smem:[#allocation79_spill]]  ;;  %s8441_s29 = smov [#allocation21]  }
 0x1d5   :  { %213 = dma.hbm_to_vmem [thread:$0]  %s9256_s30, 16, %s211_s21, [#allocation17]  }
 0x1d6   :  { %s229_s7 = sshll.u32 %s8441_s29, 4  ;;  %s8442_s14 = smov [#allocation24]   ;;  %s230_s7 = int_to_ptr.vmem [resolvable:$true] %s229_s7 }
 0x1d7   :  { %s252_s10 = sshll.u32 %s8442_s14, 4  ;;  %s253_s10 = int_to_ptr.vmem [resolvable:$true] %s252_s10 }
 0x1da   :  { %s8080_s15 = scalar_lea.hbm %s9257_s12, 256 }
 0x1db   :  { %p8081_p8 = scmp.ne.s32.totalorder %s9257_s12, %s8080_s15  ;;  %p8084_p9 = scmp.lt.u32.totalorder %s8080_s15, %s9257_s12 }
 0x1dd   :  { %p8086_p10 = pnand %p8084_p9, %p8081_p8 }
 0x1df   :  { %8089 = shalt.err (!%p8086_p10)
}
 0x1e0   :  { %s8090_s16 = scalar_lea.vmem %s230_s7, 256  ;;  %p8095_p12 = scmp.lt.s32.totalorder %s230_s7, %s230_s7 }
 0x1e1   :  { %p8091_p11 = scmp.ne.s32.totalorder %s230_s7, %s8090_s16  ;;  %p8096_p13 = scmp.lt.s32.totalorder %s8090_s16, %s8090_s16 }
 0x1e3   :  { %p8097_p0 = por %p8096_p13, %p8095_p12 }
 0x1e5   :  { %p8098_p1 = pnand %p8097_p0, %p8091_p11 }
 0x1e7   :  { %8101 = shalt.err (!%p8098_p1)
}
 0x1e8   :  { %s9258_s8 = sld [smem:[#allocation80_spill]] }
 0x1e9   :  { %235 = dma.hbm_to_vmem [thread:$0]  %s9257_s12, 256, %s230_s7, [#allocation20], %s8417_s11, %s8417_s11, %s8418_s13  }
 0x1ee   :  { %s8102_s3 = scalar_lea.hbm %s9258_s8, 16 }
 0x1ef   :  { %p8103_p2 = scmp.ne.s32.totalorder %s9258_s8, %s8102_s3  ;;  %p8106_p3 = scmp.lt.u32.totalorder %s8102_s3, %s9258_s8 }
 0x1f1   :  { %p8108_p4 = pnand %p8106_p3, %p8103_p2 }
 0x1f3   :  { %8111 = shalt.err (!%p8108_p4)
}
 0x1f4   :  { %s8112_s27 = scalar_lea.vmem %s253_s10, 16  ;;  %s8116_s18 = scalar_lea.vmem %s253_s10, 32 }
 0x1f5   :  { %p8113_p5 = scmp.ne.s32.totalorder %s253_s10, %s8112_s27  ;;  %p8117_p6 = scmp.lt.s32.totalorder %s253_s10, %s253_s10 }
 0x1f6   :  { %p8118_p7 = scmp.lt.s32.totalorder %s8116_s18, %s8112_s27 }
 0x1f8   :  { %p8119_p8 = por %p8118_p7, %p8117_p6 }
 0x1fa   :  { %p8120_p9 = pnand %p8119_p8, %p8113_p5 }
 0x1fc   :  { %8123 = shalt.err (!%p8120_p9)
}
 0x1fd   :  { %s9259_s0 = sld [smem:[#allocation81_spill]]  ;;  %s8443_s22 = smov [#allocation27]  }
 0x1fe   :  { %255 = dma.hbm_to_vmem [thread:$0]  %s9258_s8, 16, %s253_s10, [#allocation23]  }
 0x1ff   :  { %s274_s19 = sshll.u32 %s8443_s22, 4  ;;  %s8444_s23 = smov [#allocation30]   ;;  %s275_s19 = int_to_ptr.vmem [resolvable:$true] %s274_s19 }
 0x200   :  { %s293_s28 = sshll.u32 %s8444_s23, 4  ;;  %s8798_s28 = int_to_ptr.vmem [resolvable:$true] %s293_s28 }
 0x203   :  { %s8124_s21 = scalar_lea.hbm %s9259_s0, 16 }
 0x204   :  { %p8125_p10 = scmp.ne.s32.totalorder %s9259_s0, %s8124_s21  ;;  %p8128_p11 = scmp.lt.u32.totalorder %s8124_s21, %s9259_s0 }
 0x206   :  { %p8130_p12 = pnand %p8128_p11, %p8125_p10 }
 0x208   :  { %8133 = shalt.err (!%p8130_p12)
}
 0x209   :  { %s8134_s6 = scalar_lea.vmem %s275_s19, 16  ;;  %s8138_s26 = scalar_lea.vmem %s275_s19, 32 }
 0x20a   :  { %p8135_p13 = scmp.ne.s32.totalorder %s275_s19, %s8134_s6  ;;  %p8139_p0 = scmp.lt.s32.totalorder %s275_s19, %s275_s19 }
 0x20b   :  { %p8140_p1 = scmp.lt.s32.totalorder %s8138_s26, %s8134_s6 }
 0x20d   :  { %p8141_p2 = por %p8140_p1, %p8139_p0 }
 0x20f   :  { %p8142_p3 = pnand %p8141_p2, %p8135_p13 }
 0x211   :  { %8145 = shalt.err (!%p8142_p3)
}
 0x212   :  { %s9260_s1 = sld [smem:[#allocation82_spill]] }
 0x213   :  { %277 = dma.hbm_to_vmem [thread:$0]  %s9259_s0, 16, %s275_s19, [#allocation26]  }
 0x218   :  { %s8146_s30 = scalar_lea.hbm %s9260_s1, 256 }
 0x219   :  { %p8147_p4 = scmp.ne.s32.totalorder %s9260_s1, %s8146_s30  ;;  %p8150_p5 = scmp.lt.u32.totalorder %s8146_s30, %s9260_s1 }
 0x21b   :  { %p8152_p6 = pnand %p8150_p5, %p8147_p4 }
 0x21d   :  { %8155 = shalt.err (!%p8152_p6)
}
 0x21e   :  { %s8156_s24 = scalar_lea.vmem %s8798_s28, 256  ;;  %p8161_p8 = scmp.lt.s32.totalorder %s8798_s28, %s8798_s28 }
 0x21f   :  { %p8157_p7 = scmp.ne.s32.totalorder %s8798_s28, %s8156_s24  ;;  %p8162_p9 = scmp.lt.s32.totalorder %s8156_s24, %s8156_s24 }
 0x221   :  { %p8163_p10 = por %p8162_p9, %p8161_p8 }
 0x223   :  { %p8164_p11 = pnand %p8163_p10, %p8157_p7 }
 0x225   :  { %8167 = shalt.err (!%p8164_p11)
}
 0x226   :  { %s9261_s5 = sld [smem:[#allocation83_spill]]  ;;  %s8445_s2 = smov [#allocation33]  }
 0x227   :  { %299 = dma.hbm_to_vmem [thread:$0]  %s9260_s1, 256, %s8798_s28, [#allocation29], %s8417_s11, %s8417_s11, %s8418_s13  }
 0x228   :  { %s316_s12 = sshll.u32 %s8445_s2, 4  ;;  %s8446_s29 = smov [#allocation36]   ;;  %s317_s12 = int_to_ptr.vmem [resolvable:$true] %s316_s12 }
 0x229   :  { %s338_s7 = sshll.u32 %s8446_s29, 4  ;;  %s339_s7 = int_to_ptr.vmem [resolvable:$true] %s338_s7 }
 0x22c   :  { %s8168_s14 = scalar_lea.hbm %s9261_s5, 16 }
 0x22d   :  { %p8169_p12 = scmp.ne.s32.totalorder %s9261_s5, %s8168_s14  ;;  %p8172_p13 = scmp.lt.u32.totalorder %s8168_s14, %s9261_s5 }
 0x22f   :  { %p8174_p0 = pnand %p8172_p13, %p8169_p12 }
 0x231   :  { %8177 = shalt.err (!%p8174_p0)
}
 0x232   :  { %s8178_s10 = scalar_lea.vmem %s317_s12, 16  ;;  %s8182_s15 = scalar_lea.vmem %s317_s12, 32 }
 0x233   :  { %p8179_p1 = scmp.ne.s32.totalorder %s317_s12, %s8178_s10  ;;  %p8183_p2 = scmp.lt.s32.totalorder %s317_s12, %s317_s12 }
 0x234   :  { %p8184_p3 = scmp.lt.s32.totalorder %s8182_s15, %s8178_s10 }
 0x236   :  { %p8185_p4 = por %p8184_p3, %p8183_p2 }
 0x238   :  { %p8186_p5 = pnand %p8185_p4, %p8179_p1 }
 0x23a   :  { %8189 = shalt.err (!%p8186_p5)
}
 0x23b   :  { %s9262_s11 = sld [smem:[#allocation84_spill]] }
 0x23c   :  { %319 = dma.hbm_to_vmem [thread:$0]  %s9261_s5, 16, %s317_s12, [#allocation32]  }
 0x241   :  { %s8190_s13 = scalar_lea.hbm %s9262_s11, 16 }
 0x242   :  { %p8191_p6 = scmp.ne.s32.totalorder %s9262_s11, %s8190_s13  ;;  %p8194_p7 = scmp.lt.u32.totalorder %s8190_s13, %s9262_s11 }
 0x244   :  { %p8196_p8 = pnand %p8194_p7, %p8191_p6 }
 0x246   :  { %8199 = shalt.err (!%p8196_p8)
}
 0x247   :  { %s8200_s16 = scalar_lea.vmem %s339_s7, 16  ;;  %s8204_s8 = scalar_lea.vmem %s339_s7, 32 }
 0x248   :  { %p8201_p9 = scmp.ne.s32.totalorder %s339_s7, %s8200_s16  ;;  %p8205_p10 = scmp.lt.s32.totalorder %s339_s7, %s339_s7 }
 0x249   :  { %p8206_p11 = scmp.lt.s32.totalorder %s8204_s8, %s8200_s16 }
 0x24b   :  { %p8207_p12 = por %p8206_p11, %p8205_p10 }
 0x24d   :  { %p8208_p13 = pnand %p8207_p12, %p8201_p9 }
 0x24f   :  { %8211 = shalt.err (!%p8208_p13)
}
 0x250   :  { %s9263_s3 = sld [smem:[#allocation85_spill]]  ;;  %s8447_s27 = smov [#allocation39]  }
 0x251   :  { %341 = dma.hbm_to_vmem [thread:$0]  %s9262_s11, 16, %s339_s7, [#allocation35]  }
 0x252   :  { %s357_s18 = sshll.u32 %s8447_s27, 4  ;;  %s8448_s0 = smov [#allocation42]   ;;  %s358_s18 = int_to_ptr.vmem [resolvable:$true] %s357_s18 }
 0x253   :  { %s382_s22 = sshll.u32 %s8448_s0, 4  ;;  %s383_s22 = int_to_ptr.vmem [resolvable:$true] %s382_s22 }
 0x256   :  { %s8212_s19 = scalar_lea.hbm %s9263_s3, 1024 }
 0x257   :  { %p8213_p0 = scmp.ne.s32.totalorder %s9263_s3, %s8212_s19  ;;  %p8216_p1 = scmp.lt.u32.totalorder %s8212_s19, %s9263_s3 }
 0x259   :  { %p8218_p2 = pnand %p8216_p1, %p8213_p0 }
 0x25b   :  { %8221 = shalt.err (!%p8218_p2)
}
 0x25c   :  { %s8222_s23 = scalar_lea.vmem %s358_s18, 1024  ;;  %p8227_p4 = scmp.lt.s32.totalorder %s358_s18, %s358_s18 }
 0x25d   :  { %p8223_p3 = scmp.ne.s32.totalorder %s358_s18, %s8222_s23  ;;  %p8228_p5 = scmp.lt.s32.totalorder %s8222_s23, %s8222_s23 }
 0x25f   :  { %p8229_p6 = por %p8228_p5, %p8227_p4 }
 0x261   :  { %p8230_p7 = pnand %p8229_p6, %p8223_p3 }
 0x263   :  { %8233 = shalt.err (!%p8230_p7)
}
 0x264   :  { %s9264_s28 = sld [smem:[#allocation86_spill]] }
 0x265   :  { %363 = dma.hbm_to_vmem [thread:$0]  %s9263_s3, 1024, %s358_s18, [#allocation38], %s8433_s9, %s8433_s9, %s8434_s25  }
 0x26a   :  { %s8234_s21 = scalar_lea.hbm %s9264_s28, 16 }
 0x26b   :  { %p8235_p8 = scmp.ne.s32.totalorder %s9264_s28, %s8234_s21  ;;  %p8238_p9 = scmp.lt.u32.totalorder %s8234_s21, %s9264_s28 }
 0x26d   :  { %p8240_p10 = pnand %p8238_p9, %p8235_p8 }
 0x26f   :  { %8243 = shalt.err (!%p8240_p10)
}
 0x270   :  { %s8244_s6 = scalar_lea.vmem %s383_s22, 16  ;;  %s8248_s26 = scalar_lea.vmem %s383_s22, 32 }
 0x271   :  { %p8245_p11 = scmp.ne.s32.totalorder %s383_s22, %s8244_s6  ;;  %p8249_p12 = scmp.lt.s32.totalorder %s383_s22, %s383_s22 }
 0x272   :  { %p8250_p13 = scmp.lt.s32.totalorder %s8248_s26, %s8244_s6 }
 0x274   :  { %p8251_p0 = por %p8250_p13, %p8249_p12 }
 0x276   :  { %p8252_p1 = pnand %p8251_p0, %p8245_p11 }
 0x278   :  { %8255 = shalt.err (!%p8252_p1)
}
 0x279   :  { %s9265_s1 = sld [smem:[#allocation87_spill]]  ;;  %s8449_s30 = smov [#allocation45]  }
 0x27a   :  { %385 = dma.hbm_to_vmem [thread:$0]  %s9264_s28, 16, %s383_s22, [#allocation41]  }
 0x27b   :  { %s401_s24 = sshll.u32 %s8449_s30, 4  ;;  %s8450_s5 = smov [#allocation48]   ;;  %s402_s24 = int_to_ptr.vmem [resolvable:$true] %s401_s24 }
 0x27c   :  { %s426_s2 = sshll.u32 %s8450_s5, 4  ;;  %s427_s2 = int_to_ptr.vmem [resolvable:$true] %s426_s2 }
 0x27f   :  { %s8256_s12 = scalar_lea.hbm %s9265_s1, 2048 }
 0x280   :  { %p8257_p2 = scmp.ne.s32.totalorder %s9265_s1, %s8256_s12  ;;  %p8260_p3 = scmp.lt.u32.totalorder %s8256_s12, %s9265_s1 }
 0x282   :  { %p8262_p4 = pnand %p8260_p3, %p8257_p2 }
 0x284   :  { %8265 = shalt.err (!%p8262_p4)
}
 0x285   :  { %s8266_s29 = scalar_lea.vmem %s402_s24, 2048  ;;  %p8271_p6 = scmp.lt.s32.totalorder %s402_s24, %s402_s24 }
 0x286   :  { %p8267_p5 = scmp.ne.s32.totalorder %s402_s24, %s8266_s29  ;;  %p8272_p7 = scmp.lt.s32.totalorder %s8266_s29, %s8266_s29 }
 0x288   :  { %p8273_p8 = por %p8272_p7, %p8271_p6 }
 0x28a   :  { %p8274_p9 = pnand %p8273_p8, %p8267_p5 }
 0x28c   :  { %8277 = shalt.err (!%p8274_p9)
}
 0x28d   :  { %s9266_s7 = sld [smem:[#allocation89_spill]] }
 0x28e   :  { %407 = dma.hbm_to_vmem [thread:$0]  %s9265_s1, 2048, %s402_s24, [#allocation44], %s8433_s9, %s8433_s9, %s8434_s25  }
 0x293   :  { %s8278_s14 = scalar_lea.hbm %s9266_s7, 32 }
 0x294   :  { %p8279_p10 = scmp.ne.s32.totalorder %s9266_s7, %s8278_s14  ;;  %p8282_p11 = scmp.lt.u32.totalorder %s8278_s14, %s9266_s7 }
 0x296   :  { %p8284_p12 = pnand %p8282_p11, %p8279_p10 }
 0x298   :  { %8287 = shalt.err (!%p8284_p12)
}
 0x299   :  { %s8288_s10 = scalar_lea.vmem %s427_s2, 32  ;;  %p8293_p0 = scmp.lt.s32.totalorder %s427_s2, %s427_s2 }
 0x29a   :  { %p8289_p13 = scmp.ne.s32.totalorder %s427_s2, %s8288_s10  ;;  %p8294_p1 = scmp.lt.s32.totalorder %s8288_s10, %s8288_s10 }
 0x29c   :  { %p8295_p2 = por %p8294_p1, %p8293_p0 }
 0x29e   :  { %p8296_p3 = pnand %p8295_p2, %p8289_p13 }
 0x2a0   :  { %8299 = shalt.err (!%p8296_p3)
}
 0x2a1   :  { %429 = dma.hbm_to_vmem [thread:$0]  %s9266_s7, 32, %s427_s2, [#allocation47]  }
 0x2a2   :  { %s8451_s15 = smov [#allocation51]   ;;  %s8300_s9 = scalar_lea.hbm %s8635_s4, 8192 }
 0x2a3   :  { %s445_s11 = sshll.u32 %s8451_s15, 4  ;;  %p8301_p4 = scmp.ne.s32.totalorder %s8635_s4, %s8300_s9  ;;  %s446_s11 = int_to_ptr.vmem [resolvable:$true] %s445_s11 }
 0x2a4   :  { %p8304_p5 = scmp.lt.u32.totalorder %s8300_s9, %s8635_s4 }
 0x2a6   :  { %p8306_p6 = pnand %p8304_p5, %p8301_p4 }
 0x2a8   :  { %8309 = shalt.err (!%p8306_p6)
}
 0x2a9   :  { %s8310_s25 = scalar_lea.vmem %s446_s11, 8192  ;;  %p8315_p8 = scmp.lt.s32.totalorder %s446_s11, %s446_s11 }
 0x2aa   :  { %p8311_p7 = scmp.ne.s32.totalorder %s446_s11, %s8310_s25  ;;  %p8316_p9 = scmp.lt.s32.totalorder %s8310_s25, %s8310_s25 }
 0x2ac   :  { %p8317_p10 = por %p8316_p9, %p8315_p8 }
 0x2ae   :  { %p8318_p11 = pnand %p8317_p10, %p8311_p7 }
 0x2b0   :  { %8321 = shalt.err (!%p8318_p11)
}
 0x2b1   :  { %s8452_s13 = smov 256   ;;  %s8453_s16 = smov 16  }
 0x2b2   :  { %451 = dma.hbm_to_vmem [thread:$0]  %s8635_s4, 8192, %s446_s11, [#allocation50], %s8452_s13, %s8452_s13, %s8453_s16  }
 0x2b3   :  { %s8454_s8 = smov [#allocation52]   ;;  %s8322_s27 = scalar_lea.hbm %s8640_s17, 49152 }
 0x2b4   :  { %s457_s3 = sshll.u32 %s8454_s8, 4  ;;  %p8323_p12 = scmp.ne.s32.totalorder %s8640_s17, %s8322_s27  ;;  %s458_s3 = int_to_ptr.vmem [resolvable:$true] %s457_s3 }
 0x2b5   :  { %p8326_p13 = scmp.lt.u32.totalorder %s8322_s27, %s8640_s17 }
 0x2b7   :  { %p8328_p0 = pnand %p8326_p13, %p8323_p12 }
 0x2b9   :  { %8331 = shalt.err (!%p8328_p0)
}
 0x2ba   :  { %s8332_s18 = scalar_lea.vmem %s458_s3, 49152  ;;  %p8337_p2 = scmp.lt.s32.totalorder %s458_s3, %s458_s3 }
 0x2bb   :  { %p8333_p1 = scmp.ne.s32.totalorder %s458_s3, %s8332_s18  ;;  %p8338_p3 = scmp.lt.s32.totalorder %s8332_s18, %s8332_s18 }
 0x2bd   :  { %p8339_p4 = por %p8338_p3, %p8337_p2 }
 0x2bf   :  { %p8340_p5 = pnand %p8339_p4, %p8333_p1 }
 0x2c1   :  { %8343 = shalt.err (!%p8340_p5)
}
 0x2c2   :  { %s8455_s0 = smov 1536   ;;  %s8456_s22 = smov 96  }
 0x2c3   :  { %463 = dma.hbm_to_vmem [thread:$0]  %s8640_s17, 49152, %s458_s3, [#allocation53], %s8455_s0, %s8455_s0, %s8456_s22  }
 0x2c4   :  { %8344 = dma.done.wait [#allocation3], 32  }
 0x2c5   :  { %8345 = vsyncadd [#allocation3], 4294967264 }
 0x2c6   :  { %8346 = dma.done.wait [#allocation5], 528  }
 0x2c7   :  { %8347 = vsyncadd [#allocation5], 4294966768 }
 0x2c8   :  { %8348 = dma.done.wait [#allocation8], 272  }
 0x2c9   :  { %8349 = vsyncadd [#allocation8], 4294967024 }
 0x2ca   :  { %8350 = dma.done.wait [#allocation11], 272  }
 0x2cb   :  { %8351 = vsyncadd [#allocation11], 4294967024 }
 0x2cc   :  { %8352 = dma.done.wait [#allocation14], 32  }
 0x2cd   :  { %8353 = vsyncadd [#allocation14], 4294967264 }
 0x2ce   :  { %8354 = dma.done.wait [#allocation17], 272  }
 0x2cf   :  { %8355 = vsyncadd [#allocation17], 4294967024 }
 0x2d0   :  { %8356 = dma.done.wait [#allocation20], 272  }
 0x2d1   :  { %8357 = vsyncadd [#allocation20], 4294967024 }
 0x2d2   :  { %8358 = dma.done.wait [#allocation23], 32  }
 0x2d3   :  { %8359 = vsyncadd [#allocation23], 4294967264 }
 0x2d4   :  { %8360 = dma.done.wait [#allocation26], 272  }
 0x2d5   :  { %8361 = vsyncadd [#allocation26], 4294967024 }
 0x2d6   :  { %8362 = dma.done.wait [#allocation29], 272  }
 0x2d7   :  { %8363 = vsyncadd [#allocation29], 4294967024 }
 0x2d8   :  { %8364 = dma.done.wait [#allocation32], 32  }
 0x2d9   :  { %8365 = vsyncadd [#allocation32], 4294967264 }
 0x2da   :  { %8366 = dma.done.wait [#allocation35], 272  }
 0x2db   :  { %8367 = vsyncadd [#allocation35], 4294967024 }
 0x2dc   :  { %8368 = dma.done.wait [#allocation38], 1040  }
 0x2dd   :  { %8369 = vsyncadd [#allocation38], 4294966256 }
 0x2de   :  { %8370 = dma.done.wait [#allocation41], 528  }
 0x2df   :  { %8371 = vsyncadd [#allocation41], 4294966768 }
 0x2e0   :  { %8372 = dma.done.wait [#allocation44], 2064  }
 0x2e1   :  { %8373 = vsyncadd [#allocation44], 4294965232 }
 0x2e2   :  { %8374 = dma.done.wait [#allocation47], 2080  }
 0x2e3   :  { %8375 = vsyncadd [#allocation47], 4294965216 }
 0x2e4   :  { %8376 = dma.done.wait [#allocation50], 8224  }
 0x2e5   :  { %8377 = vsyncadd [#allocation50], 4294959072 }
 0x2e6   :  { %8378 = dma.done.wait [#allocation53], 49152  }
 0x2e7   :  { %8379 = vsyncadd [#allocation53], 4294918144  ;;  %s9267_s17 = sld [smem:[#allocation73_spill]]  ;;  %v8457_v0 = vmov 0.0   ;;  %vm8458_vm0 = vmmov 0   ;;  %v7482_v4 = vld [vmem:[#allocation7] sm:$0xff]   ;;  %v827_v38 = vlaneseq }
 0x2e8   :  { %6795 = vmatprep.subr.bf16.mxu0 %v8457_v0  ;;  %6809 = vmatprep.mubr.msk.bf16.mxu0 %vm8458_vm0, %v8457_v0  ;;  %vm636_vm1 = vcmask 1041408   ;;  %v567_v9 = vld [vmem:[#allocation2] sm:$0x3]  ;;  %vm632_vm2 = vcmask 818176   ;;  %v7483_v12 = vld [vmem:[#allocation7 + $0x8] sm:$0xff]   ;;  %vm701_vm3 = vcmask 261120  }
 0x2e9   :  { %6813 = vmatprep.subr.bf16.mxu1 %v8457_v0  ;;  %6817 = vmatprep.mubr.msk.bf16.mxu1 %vm8458_vm0, %v8457_v0  ;;  %v573_v11 = vpack.c.bf16 %v567_v9, %v567_v9  ;;  %v6184_v13 = vld [vmem:[#allocation4] ss:$0 sm:$0xff]  ;;  %v569_v20 = vld [vmem:[#allocation6] sm:$0xff]  ;;  %v570_v21 = vld [vmem:[#allocation6 + $0x8] sm:$0xff]  ;;  %v8459_v23 = vmov 0.0|0.0   ;;  %vm745_vm4 = vcmask 254976  }
 0x2ea   :  { %6814 = vmatpush3.bf16.msra.mxu1 %v7482_v4  ;;  %v8885_v22 = vpack.c.bf16 %v570_v21, %v569_v20  ;;  %v571_v24 = vld [vmem:[#allocation6 + $0x10] sm:$0xff]  ;;  %v572_v25 = vld [vmem:[#allocation6 + $0x18] sm:$0xff]  ;;  %v8902_v39 = vshrl.u32 %v827_v38, 7  ;;  %vm2265_vm5 = vcmask 517120   ;;  %vm2273_vm6 = vcmask 523264  }
 0x2eb   :  { %6815 = vmatprep.subr.bf16.mxu1 %v8457_v0  ;;  %v8890_v26 = vpack.c.bf16 %v572_v25, %v571_v24  ;;  %v7484_v54 = vld [vmem:[#allocation12] sm:$0xff]   ;;  %v7485_v55 = vld [vmem:[#allocation12 + $0x8] sm:$0xff]   ;;  %v6198_v62 = vld [vmem:[#allocation9] ss:$0 sm:$0xff] }
 0x2ec   :  { %v8905_v40 = vsub.s32 0, %v8902_v39 }
 0x2ed   :  { %v7475_v1 = vld [vmem:[%s9267_s17] sm:$0xff]   ;;  %v7476_v2 = vld [vmem:[%s9267_s17 + $0x8] sm:$0xff]   ;;  %v7477_v3 = vld [vmem:[%s9267_s17 + $0x10] sm:$0xff]  }
 0x2ee   :  { %6796 = vmatpush3.bf16.msra.mxu0 %v7475_v1  ;;  %v7478_v5 = vld [vmem:[%s9267_s17 + $0x18] sm:$0xff]   ;;  %v7479_v6 = vld [vmem:[%s9267_s17 + $0x20] sm:$0xff]   ;;  %v7480_v7 = vld [vmem:[%s9267_s17 + $0x28] sm:$0xff]   ;;  %6816 = vmatpush3.bf16.msra.mxu1 %v7483_v12 }
 0x2ef   :  { %6797 = vmatprep.subr.bf16.mxu0 %v8457_v0  ;;  %v7481_v8 = vld [vmem:[%s9267_s17 + $0x30] ss:$0 sps:$4 sm:$0x33]   ;;  %7121 = vmatprep.subr.bf16.mxu1 %v8459_v23  ;;  %v6199_v1 = vld [vmem:[#allocation10] ss:$0 sm:$0xff] }
 0x2f0   :  { %v638_v10 = vsel %vm636_vm1, %v7481_v8, 0 }
 0x2f2   :  { %6798 = vmatpush3.bf16.msra.mxu0 %v7476_v2 }
 0x2f3   :  { %6799 = vmatprep.subr.bf16.mxu0 %v8457_v0 }
 0x2f6   :  { %6800 = vmatpush3.bf16.msra.mxu0 %v7477_v3 }
 0x2f7   :  { %6801 = vmatprep.subr.bf16.mxu0 %v8457_v0 }
 0x2fa   :  { %6802 = vmatpush3.bf16.msra.mxu0 %v7478_v5 }
 0x2fb   :  { %6803 = vmatprep.subr.bf16.mxu0 %v8457_v0 }
 0x2fe   :  { %6804 = vmatpush3.bf16.msra.mxu0 %v7479_v6 }
 0x2ff   :  { %6805 = vmatprep.subr.bf16.mxu0 %v8457_v0 }
 0x302   :  { %6806 = vmatpush3.bf16.msra.mxu0 %v7480_v7 }
 0x303   :  { %6807 = vmatprep.subr.bf16.mxu0 %v8457_v0 }
 0x306   :  { %6808 = vmatpush3.bf16.msra.mxu0 %v638_v10 }
 0x307   :  { %6873 = vmatprep.subr.bf16.mxu0 %v8457_v0 }
 0x309   :  { %6810 = vmatmul.mubr.msk.bf16.vlgmr.msra.gmra.mrb[0].mxu0 %vm632_vm2, %v573_v11 }
 0x30a   :  { %6877 = vmatprep.mubr.msk.bf16.mxu0 %vm8458_vm0, %v8457_v0 }
 0x3dc   :  { %v674_v14 = vpop.f32.mrb[0].mxu0 }
 0x3dd   :  { %v8878_v15 = vadd.f32 %v6184_v13, %v674_v14  ;;  %v6811_v16 = vpop.f32.mrb[1].mxu0 }
 0x3de   :  { %v677_v17 = vpop.f32.mrb[2].mxu0 }
 0x3df   :  { %v684_v18 = vpack.c.bf16 %v8878_v15, %v8878_v15  ;;  %v6812_v19 = vpop.f32.mrb[3].mxu0 }
 0x3e1   :  { %6818 = vmatmul.mubr.msk.bf16.vlgmr.msra.gmra.mrb[0].mxu1 %vm701_vm3, %v684_v18 }
 0x3e2   :  { %6829 = vmatprep.mubr.msk.f32.mxu1 %vm8458_vm0, %v8457_v0  ;;  %7123 = vmatpush3.bf16.msra.mxu1 %v8885_v22 }
 0x3e3   :  { %7124 = vmatprep.subr.bf16.mxu1 %v8459_v23 }
 0x3e6   :  { %7126 = vmatpush3.bf16.msra.mxu1 %v8890_v26 }
 0x3e7   :  { %7127 = vmatprep.subr.bf16.mxu1 %v8459_v23 }
 0x4b4   :  { %v739_v27 = vpop.f32.mrb[0].mxu1 }
 0x4b5   :  { %v746_v28 = vsel %vm745_vm4, %v739_v27, 0.0  ;;  %v6819_v29 = vpop.f32.mrb[1].mxu1 }
 0x4b6   :  { %v747_v30 = vrot.slane %v746_v28, 4  ;;  %v742_v31 = vpop.f32.mrb[2].mxu1 }
 0x4b7   :  { %v6820_v32 = vpop.f32.mrb[3].mxu1 }
 0x4b8   :  { %v748_v33 = vadd.f32 %v747_v30, %v746_v28 }
 0x4ba   :  { %v749_v34 = vrot.slane %v748_v33, 2 }
 0x4bc   :  { %v750_v35 = vadd.f32 %v749_v34, %v748_v33  ;;  %v7486_v34 = vld [vmem:[#allocation16] sm:$0xff]  }
 0x4bd   :  { %6874 = vmatpush3.bf16.msra.mxu0 %v7486_v34 }
 0x4be   :  { %v751_v36 = vrot.slane %v750_v35, 1  ;;  %6875 = vmatprep.subr.bf16.mxu0 %v8457_v0 }
 0x4c0   :  { %v752_v37 = vadd.f32 %v751_v36, %v750_v35  ;;  %v7487_v35 = vld [vmem:[#allocation16 + $0x8] sm:$0xff]  }
 0x4c1   :  { %6876 = vmatpush3.bf16.msra.mxu0 %v7487_v35 }
 0x4c2   :  { %6830 = vmatmul.mubr.msk.f32.vlgmr.msra.gmra.mrb[4].mxu1 %vm701_vm3, %v752_v37  ;;  %7151 = vmatprep.subr.bf16.mxu0 %v8459_v23 }
 0x4c3   :  { %7129 = vmatpush3.bf16.msra.mxu1 %v8885_v22  ;;  %6840 = vmatprep.mubr.msk.f32.mxu1 %vm8458_vm0, %v8457_v0 }
 0x4c4   :  { %7130 = vmatprep.subr.bf16.mxu1 %v8459_v23 }
 0x4c7   :  { %7132 = vmatpush3.bf16.msra.mxu1 %v8890_v26 }
 0x4c8   :  { %6843 = vmatprep.subr.bf16.mxu1 %v8457_v0 }
 0x595   :  { %v822_v41 = vpop.f32.mrb[4].mxu1 }
 0x596   :  { %v826_v42 = vmul.f32 0.5, %v822_v41  ;;  %v6831_v43 = vpop.f32.mrb[5].mxu1 }
 0x598   :  { %v830_v44 = vrot.slane %v826_v42, %v8905_v40 }
 0x59a   :  { %v831_v45 = vsub.f32 %v739_v27, %v830_v44  ;;  %v6205_v44 = vld [vmem:[#allocation13] ss:$0 sm:$0xff] }
 0x59c   :  { %v832_v46 = vmul.f32 %v831_v45, %v831_v45 }
 0x59e   :  { %v833_v47 = vsel %vm745_vm4, %v832_v46, 0.0  ;;  %v6206_v46 = vld [vmem:[#allocation15] ss:$0 sm:$0xff] }
 0x59f   :  { %v834_v48 = vrot.slane %v833_v47, 4 }
 0x5a1   :  { %v835_v49 = vadd.f32 %v834_v48, %v833_v47 }
 0x5a3   :  { %v836_v50 = vrot.slane %v835_v49, 2 }
 0x5a5   :  { %v837_v51 = vadd.f32 %v836_v50, %v835_v49 }
 0x5a7   :  { %v838_v52 = vrot.slane %v837_v51, 1 }
 0x5a9   :  { %v839_v53 = vadd.f32 %v838_v52, %v837_v51 }
 0x5ab   :  { %6841 = vmatmul.mubr.msk.f32.vlgmr.msra.gmra.mrb[6].mxu1 %vm701_vm3, %v839_v53 }
 0x5ac   :  { %6847 = vmatprep.mubr.msk.bf16.mxu1 %vm8458_vm0, %v8457_v0  ;;  %6844 = vmatpush3.bf16.msra.mxu1 %v7484_v54 }
 0x5ad   :  { %6845 = vmatprep.subr.bf16.mxu1 %v8457_v0 }
 0x5b0   :  { %6846 = vmatpush3.bf16.msra.mxu1 %v7485_v55 }
 0x5b1   :  { %7133 = vmatprep.subr.bf16.mxu1 %v8459_v23 }
 0x67e   :  { %v909_v56 = vpop.f32.mrb[6].mxu1 }
 0x67f   :  { %v913_v57 = vmul.f32 0.5, %v909_v56  ;;  %v6842_v58 = vpop.f32.mrb[7].mxu1 }
 0x681   :  { %v914_v59 = vadd.f32 1e-05, %v913_v57 }
 0x683   :  { %7524 = vrsqrt.f32 %v914_v59 }
 0x68d   :  { %v7525_v60 = vpop.eup %7524 }
 0x68e   :  { %v919_v61 = vrot.slane %v7525_v60, %v8905_v40 }
 0x690   :  { %v920_v63 = vmul.f32 %v919_v61, %v831_v45 }
 0x692   :  { %v927_v2 = vmul.f32 %v6198_v62, %v920_v63 }
 0x694   :  { %v934_v3 = vadd.f32 %v6199_v1, %v927_v2 }
 0x696   :  { %v935_v4 = vmax.f32 %v934_v3, 0.0 }
 0x698   :  { %v936_v5 = vpack.c.bf16 %v935_v4, %v935_v4 }
 0x69a   :  { %6848 = vmatmul.mubr.msk.bf16.vlgmr.msra.gmra.mrb[8].mxu1 %vm701_vm3, %v936_v5 }
 0x69b   :  { %7135 = vmatpush3.bf16.msra.mxu1 %v8885_v22  ;;  %6859 = vmatprep.mubr.msk.f32.mxu1 %vm8458_vm0, %v8457_v0 }
 0x69c   :  { %7136 = vmatprep.subr.bf16.mxu1 %v8459_v23 }
 0x69f   :  { %7138 = vmatpush3.bf16.msra.mxu1 %v8890_v26 }
 0x6a0   :  { %7139 = vmatprep.subr.bf16.mxu1 %v8459_v23 }
 0x76d   :  { %v990_v6 = vpop.f32.mrb[8].mxu1 }
 0x76e   :  { %v996_v7 = vsel %vm745_vm4, %v990_v6, 0.0  ;;  %v6849_v8 = vpop.f32.mrb[9].mxu1 }
 0x76f   :  { %v997_v9 = vrot.slane %v996_v7, 4  ;;  %v993_v10 = vpop.f32.mrb[10].mxu1 }
 0x770   :  { %v6850_v11 = vpop.f32.mrb[11].mxu1 }
 0x771   :  { %v998_v12 = vadd.f32 %v997_v9, %v996_v7  ;;  %v7488_v11 = vld [vmem:[#allocation21] sm:$0xff]  }
 0x773   :  { %v999_v13 = vrot.slane %v998_v12, 2 }
 0x775   :  { %v1000_v14 = vadd.f32 %v999_v13, %v998_v12  ;;  %v7489_v12 = vld [vmem:[#allocation21 + $0x8] sm:$0xff]  }
 0x777   :  { %v1001_v16 = vrot.slane %v1000_v14, 1 }
 0x779   :  { %v1002_v17 = vadd.f32 %v1001_v16, %v1000_v14 }
 0x77b   :  { %6860 = vmatmul.mubr.msk.f32.vlgmr.msra.gmra.mrb[12].mxu1 %vm701_vm3, %v1002_v17 }
 0x77c   :  { %7141 = vmatpush3.bf16.msra.mxu1 %v8885_v22  ;;  %6870 = vmatprep.mubr.msk.f32.mxu1 %vm8458_vm0, %v8457_v0 }
 0x77d   :  { %7142 = vmatprep.subr.bf16.mxu1 %v8459_v23 }
 0x780   :  { %7144 = vmatpush3.bf16.msra.mxu1 %v8890_v26 }
 0x781   :  { %7145 = vmatprep.subr.bf16.mxu1 %v8459_v23 }
 0x84e   :  { %v1072_v18 = vpop.f32.mrb[12].mxu1 }
 0x84f   :  { %v1076_v19 = vmul.f32 0.5, %v1072_v18  ;;  %v6861_v20 = vpop.f32.mrb[13].mxu1 }
 0x850   :  { %v6212_v20 = vld [vmem:[#allocation18] ss:$0 sm:$0xff] }
 0x851   :  { %v1080_v21 = vrot.slane %v1076_v19, %v8905_v40 }
 0x853   :  { %v1081_v24 = vsub.f32 %v990_v6, %v1080_v21 }
 0x855   :  { %v1082_v25 = vmul.f32 %v1081_v24, %v1081_v24 }
 0x857   :  { %v1083_v27 = vsel %vm745_vm4, %v1082_v25, 0.0 }
 0x858   :  { %v1084_v28 = vrot.slane %v1083_v27, 4 }
 0x85a   :  { %v1085_v29 = vadd.f32 %v1084_v28, %v1083_v27 }
 0x85c   :  { %v1086_v30 = vrot.slane %v1085_v29, 2 }
 0x85e   :  { %v1087_v31 = vadd.f32 %v1086_v30, %v1085_v29 }
 0x860   :  { %v1088_v32 = vrot.slane %v1087_v31, 1 }
 0x862   :  { %v1089_v33 = vadd.f32 %v1088_v32, %v1087_v31 }
 0x864   :  { %6871 = vmatmul.mubr.msk.f32.vlgmr.msra.gmra.mrb[14].mxu1 %vm701_vm3, %v1089_v33 }
 0x865   :  { %7147 = vmatpush3.bf16.msra.mxu1 %v8885_v22  ;;  %6889 = vmatprep.mubr.msk.f32.mxu1 %vm8458_vm0, %v8457_v0 }
 0x866   :  { %7148 = vmatprep.subr.bf16.mxu1 %v8459_v23 }
 0x869   :  { %7150 = vmatpush3.bf16.msra.mxu1 %v8890_v26 }
 0x86a   :  { %6903 = vmatprep.subr.bf16.mxu1 %v8457_v0 }
 0x937   :  { %v1159_v36 = vpop.f32.mrb[14].mxu1 }
 0x938   :  { %v1163_v37 = vmul.f32 0.5, %v1159_v36  ;;  %v6872_v38 = vpop.f32.mrb[15].mxu1 }
 0x93a   :  { %v1164_v41 = vadd.f32 1e-05, %v1163_v37 }
 0x93c   :  { %7526 = vrsqrt.f32 %v1164_v41 }
 0x946   :  { %v7527_v42 = vpop.eup %7526 }
 0x947   :  { %v1169_v43 = vrot.slane %v7527_v42, %v8905_v40 }
 0x949   :  { %v1170_v45 = vmul.f32 %v1169_v43, %v1081_v24  ;;  %v6213_v24 = vld [vmem:[#allocation19] ss:$0 sm:$0xff] }
 0x94b   :  { %v1177_v47 = vmul.f32 %v6205_v44, %v1170_v45 }
 0x94d   :  { %v1184_v48 = vadd.f32 %v6206_v46, %v1177_v47 }
 0x94f   :  { %v8943_v49 = vadd.f32 %v1184_v48, %v8878_v15 }
 0x951   :  { %v1190_v50 = vpack.c.bf16 %v8943_v49, %v8943_v49 }
 0x953   :  { %6878 = vmatmul.mubr.msk.bf16.vlgmr.msra.gmra.mrb[4].mxu0 %vm701_vm3, %v1190_v50 }
 0x954   :  { %7153 = vmatpush3.bf16.msra.mxu0 %v8885_v22  ;;  %6900 = vmatprep.mubr.msk.f32.mxu0 %vm8458_vm0, %v8457_v0 }
 0x955   :  { %7154 = vmatprep.subr.bf16.mxu0 %v8459_v23 }
 0x958   :  { %7156 = vmatpush3.bf16.msra.mxu0 %v8890_v26 }
 0x959   :  { %7157 = vmatprep.subr.bf16.mxu0 %v8459_v23 }
 0xa26   :  { %v1244_v51 = vpop.f32.mrb[4].mxu0 }
 0xa27   :  { %v1250_v15 = vsel %vm745_vm4, %v1244_v51, 0.0  ;;  %v6879_v52 = vpop.f32.mrb[5].mxu0 }
 0xa28   :  { %v1251_v53 = vrot.slane %v1250_v15, 4  ;;  %v1247_v54 = vpop.f32.mrb[6].mxu0 }
 0xa29   :  { %v6880_v55 = vpop.f32.mrb[7].mxu0 }
 0xa2a   :  { %v1252_v56 = vadd.f32 %v1251_v53, %v1250_v15 }
 0xa2c   :  { %v1253_v57 = vrot.slane %v1252_v56, 2 }
 0xa2e   :  { %v1254_v58 = vadd.f32 %v1253_v57, %v1252_v56  ;;  %v7490_v56 = vld [vmem:[#allocation25] sm:$0xff]   ;;  %v7491_v57 = vld [vmem:[#allocation25 + $0x8] sm:$0xff]  }
 0xa30   :  { %v1255_v59 = vrot.slane %v1254_v58, 1 }
 0xa32   :  { %v1256_v60 = vadd.f32 %v1255_v59, %v1254_v58 }
 0xa34   :  { %6890 = vmatmul.mubr.msk.f32.vlgmr.msra.gmra.mrb[16].mxu1 %vm701_vm3, %v1256_v60 }
 0xa35   :  { %6907 = vmatprep.mubr.msk.bf16.mxu1 %vm8458_vm0, %v8457_v0  ;;  %6904 = vmatpush3.bf16.msra.mxu1 %v7488_v11 }
 0xa36   :  { %6905 = vmatprep.subr.bf16.mxu1 %v8457_v0 }
 0xa39   :  { %6906 = vmatpush3.bf16.msra.mxu1 %v7489_v12 }
 0xa3a   :  { %7163 = vmatprep.subr.bf16.mxu1 %v8459_v23 }
 0xb07   :  { %v1326_v61 = vpop.f32.mrb[16].mxu1 }
 0xb08   :  { %v1330_v62 = vmul.f32 0.5, %v1326_v61  ;;  %v6891_v63 = vpop.f32.mrb[17].mxu1 }
 0xb0a   :  { %v1334_v1 = vrot.slane %v1330_v62, %v8905_v40 }
 0xb0c   :  { %v1335_v2 = vsub.f32 %v1244_v51, %v1334_v1  ;;  %v6219_v1 = vld [vmem:[#allocation22] ss:$0 sm:$0xff] }
 0xb0e   :  { %v1336_v3 = vmul.f32 %v1335_v2, %v1335_v2 }
 0xb10   :  { %v1337_v4 = vsel %vm745_vm4, %v1336_v3, 0.0  ;;  %v6220_v3 = vld [vmem:[#allocation24] ss:$0 sm:$0xff] }
 0xb11   :  { %v1338_v5 = vrot.slane %v1337_v4, 4 }
 0xb13   :  { %v1339_v6 = vadd.f32 %v1338_v5, %v1337_v4 }
 0xb15   :  { %v1340_v7 = vrot.slane %v1339_v6, 2 }
 0xb17   :  { %v1341_v8 = vadd.f32 %v1340_v7, %v1339_v6 }
 0xb19   :  { %v1342_v9 = vrot.slane %v1341_v8, 1 }
 0xb1b   :  { %v1343_v10 = vadd.f32 %v1342_v9, %v1341_v8 }
 0xb1d   :  { %6901 = vmatmul.mubr.msk.f32.vlgmr.msra.gmra.mrb[8].mxu0 %vm701_vm3, %v1343_v10 }
 0xb1e   :  { %7159 = vmatpush3.bf16.msra.mxu0 %v8885_v22  ;;  %6919 = vmatprep.mubr.msk.f32.mxu0 %vm8458_vm0, %v8457_v0 }
 0xb1f   :  { %7160 = vmatprep.subr.bf16.mxu0 %v8459_v23 }
 0xb22   :  { %7162 = vmatpush3.bf16.msra.mxu0 %v8890_v26 }
 0xb23   :  { %6933 = vmatprep.subr.bf16.mxu0 %v8457_v0 }
 0xbf0   :  { %v1413_v13 = vpop.f32.mrb[8].mxu0 }
 0xbf1   :  { %v1417_v14 = vmul.f32 0.5, %v1413_v13  ;;  %v6902_v16 = vpop.f32.mrb[9].mxu0 }
 0xbf3   :  { %v1418_v17 = vadd.f32 1e-05, %v1417_v14 }
 0xbf5   :  { %7528 = vrsqrt.f32 %v1418_v17 }
 0xbff   :  { %v7529_v18 = vpop.eup %7528 }
 0xc00   :  { %v1423_v19 = vrot.slane %v7529_v18, %v8905_v40 }
 0xc02   :  { %v1424_v21 = vmul.f32 %v1423_v19, %v1335_v2 }
 0xc04   :  { %v1431_v25 = vmul.f32 %v6212_v20, %v1424_v21 }
 0xc06   :  { %v1438_v27 = vadd.f32 %v6213_v24, %v1431_v25 }
 0xc08   :  { %v1439_v28 = vmax.f32 %v1438_v27, 0.0 }
 0xc0a   :  { %v1440_v29 = vpack.c.bf16 %v1439_v28, %v1439_v28 }
 0xc0c   :  { %6908 = vmatmul.mubr.msk.bf16.vlgmr.msra.gmra.mrb[20].mxu1 %vm701_vm3, %v1440_v29 }
 0xc0d   :  { %7165 = vmatpush3.bf16.msra.mxu1 %v8885_v22  ;;  %6930 = vmatprep.mubr.msk.f32.mxu1 %vm8458_vm0, %v8457_v0 }
 0xc0e   :  { %7166 = vmatprep.subr.bf16.mxu1 %v8459_v23 }
 0xc11   :  { %7168 = vmatpush3.bf16.msra.mxu1 %v8890_v26 }
 0xc12   :  { %7169 = vmatprep.subr.bf16.mxu1 %v8459_v23 }
 0xcdf   :  { %v1494_v30 = vpop.f32.mrb[20].mxu1 }
 0xce0   :  { %v1500_v31 = vsel %vm745_vm4, %v1494_v30, 0.0  ;;  %v6909_v32 = vpop.f32.mrb[21].mxu1 }
 0xce1   :  { %v1501_v33 = vrot.slane %v1500_v31, 4  ;;  %v1497_v34 = vpop.f32.mrb[22].mxu1 }
 0xce2   :  { %v6910_v35 = vpop.f32.mrb[23].mxu1 }
 0xce3   :  { %v1502_v36 = vadd.f32 %v1501_v33, %v1500_v31  ;;  %v7492_v35 = vld [vmem:[#allocation30] sm:$0xff]  }
 0xce5   :  { %v1503_v37 = vrot.slane %v1502_v36, 2 }
 0xce7   :  { %v1504_v38 = vadd.f32 %v1503_v37, %v1502_v36  ;;  %v7493_v36 = vld [vmem:[#allocation30 + $0x8] sm:$0xff]  }
 0xce9   :  { %v1505_v41 = vrot.slane %v1504_v38, 1 }
 0xceb   :  { %v1506_v42 = vadd.f32 %v1505_v41, %v1504_v38 }
 0xced   :  { %6920 = vmatmul.mubr.msk.f32.vlgmr.msra.gmra.mrb[10].mxu0 %vm701_vm3, %v1506_v42 }
 0xcee   :  { %6937 = vmatprep.mubr.msk.bf16.mxu0 %vm8458_vm0, %v8457_v0  ;;  %6934 = vmatpush3.bf16.msra.mxu0 %v7490_v56 }
 0xcef   :  { %6935 = vmatprep.subr.bf16.mxu0 %v8457_v0 }
 0xcf2   :  { %6936 = vmatpush3.bf16.msra.mxu0 %v7491_v57 }
 0xcf3   :  { %7175 = vmatprep.subr.bf16.mxu0 %v8459_v23 }
 0xdc0   :  { %v1576_v43 = vpop.f32.mrb[10].mxu0 }
 0xdc1   :  { %v1580_v44 = vmul.f32 0.5, %v1576_v43  ;;  %v6921_v45 = vpop.f32.mrb[11].mxu0 }
 0xdc2   :  { %v6226_v45 = vld [vmem:[#allocation27] ss:$0 sm:$0xff] }
 0xdc3   :  { %v1584_v46 = vrot.slane %v1580_v44, %v8905_v40 }
 0xdc5   :  { %v1585_v47 = vsub.f32 %v1494_v30, %v1584_v46 }
 0xdc7   :  { %v1586_v48 = vmul.f32 %v1585_v47, %v1585_v47 }
 0xdc9   :  { %v1587_v50 = vsel %vm745_vm4, %v1586_v48, 0.0 }
 0xdca   :  { %v1588_v51 = vrot.slane %v1587_v50, 4 }
 0xdcc   :  { %v1589_v15 = vadd.f32 %v1588_v51, %v1587_v50 }
 0xdce   :  { %v1590_v52 = vrot.slane %v1589_v15, 2 }
 0xdd0   :  { %v1591_v53 = vadd.f32 %v1590_v52, %v1589_v15 }
 0xdd2   :  { %v1592_v54 = vrot.slane %v1591_v53, 1 }
 0xdd4   :  { %v1593_v55 = vadd.f32 %v1592_v54, %v1591_v53 }
 0xdd6   :  { %6931 = vmatmul.mubr.msk.f32.vlgmr.msra.gmra.mrb[18].mxu1 %vm701_vm3, %v1593_v55 }
 0xdd7   :  { %7171 = vmatpush3.bf16.msra.mxu1 %v8885_v22  ;;  %6949 = vmatprep.mubr.msk.f32.mxu1 %vm8458_vm0, %v8457_v0 }
 0xdd8   :  { %7172 = vmatprep.subr.bf16.mxu1 %v8459_v23 }
 0xddb   :  { %7174 = vmatpush3.bf16.msra.mxu1 %v8890_v26 }
 0xddc   :  { %6963 = vmatprep.subr.bf16.mxu1 %v8457_v0 }
 0xea9   :  { %v1663_v58 = vpop.f32.mrb[18].mxu1 }
 0xeaa   :  { %v1667_v59 = vmul.f32 0.5, %v1663_v58  ;;  %v6932_v60 = vpop.f32.mrb[19].mxu1 }
 0xeac   :  { %v1668_v61 = vadd.f32 1e-05, %v1667_v59 }
 0xeae   :  { %7530 = vrsqrt.f32 %v1668_v61 }
 0xeb8   :  { %v7531_v62 = vpop.eup %7530 }
 0xeb9   :  { %v1673_v63 = vrot.slane %v7531_v62, %v8905_v40 }
 0xebb   :  { %v1674_v2 = vmul.f32 %v1673_v63, %v1585_v47  ;;  %v6227_v47 = vld [vmem:[#allocation28] ss:$0 sm:$0xff] }
 0xebd   :  { %v1681_v4 = vmul.f32 %v6219_v1, %v1674_v2 }
 0xebf   :  { %v1688_v5 = vadd.f32 %v6220_v3, %v1681_v4 }
 0xec1   :  { %v8994_v6 = vadd.f32 %v1688_v5, %v8943_v49 }
 0xec3   :  { %v1694_v7 = vpack.c.bf16 %v8994_v6, %v8994_v6 }
 0xec5   :  { %6938 = vmatmul.mubr.msk.bf16.vlgmr.msra.gmra.mrb[12].mxu0 %vm701_vm3, %v1694_v7 }
 0xec6   :  { %7177 = vmatpush3.bf16.msra.mxu0 %v8885_v22  ;;  %6960 = vmatprep.mubr.msk.f32.mxu0 %vm8458_vm0, %v8457_v0 }
 0xec7   :  { %7178 = vmatprep.subr.bf16.mxu0 %v8459_v23 }
 0xeca   :  { %7180 = vmatpush3.bf16.msra.mxu0 %v8890_v26 }
 0xecb   :  { %7181 = vmatprep.subr.bf16.mxu0 %v8459_v23 }
 0xf98   :  { %v1748_v8 = vpop.f32.mrb[12].mxu0 }
 0xf99   :  { %v1754_v49 = vsel %vm745_vm4, %v1748_v8, 0.0  ;;  %v6939_v9 = vpop.f32.mrb[13].mxu0 }
 0xf9a   :  { %v1755_v10 = vrot.slane %v1754_v49, 4  ;;  %v1751_v11 = vpop.f32.mrb[14].mxu0 }
 0xf9b   :  { %v6940_v12 = vpop.f32.mrb[15].mxu0  ;;  %v7494_v11 = vld [vmem:[#allocation34] sm:$0xff]  }
 0xf9c   :  { %v1756_v13 = vadd.f32 %v1755_v10, %v1754_v49  ;;  %v7495_v12 = vld [vmem:[#allocation34 + $0x8] sm:$0xff]  }
 0xf9e   :  { %v1757_v14 = vrot.slane %v1756_v13, 2 }
 0xfa0   :  { %v1758_v16 = vadd.f32 %v1757_v14, %v1756_v13 }
 0xfa2   :  { %v1759_v17 = vrot.slane %v1758_v16, 1 }
 0xfa4   :  { %v1760_v18 = vadd.f32 %v1759_v17, %v1758_v16 }
 0xfa6   :  { %6950 = vmatmul.mubr.msk.f32.vlgmr.msra.gmra.mrb[24].mxu1 %vm701_vm3, %v1760_v18 }
 0xfa7   :  { %6967 = vmatprep.mubr.msk.bf16.mxu1 %vm8458_vm0, %v8457_v0  ;;  %6964 = vmatpush3.bf16.msra.mxu1 %v7492_v35 }
 0xfa8   :  { %6965 = vmatprep.subr.bf16.mxu1 %v8457_v0 }
 0xfab   :  { %6966 = vmatpush3.bf16.msra.mxu1 %v7493_v36  ;;  %v2201_v36 = vld [vmem:[#allocation39 + $0x28] sm:$0xff] }
 0xfac   :  { %7187 = vmatprep.subr.bf16.mxu1 %v8459_v23 }
0x1079   :  { %v1830_v19 = vpop.f32.mrb[24].mxu1 }
0x107a   :  { %v1834_v20 = vmul.f32 0.5, %v1830_v19  ;;  %v6951_v21 = vpop.f32.mrb[25].mxu1 }
0x107c   :  { %v1838_v24 = vrot.slane %v1834_v20, %v8905_v40  ;;  %v6233_v20 = vld [vmem:[#allocation31] ss:$0 sm:$0xff] }
0x107e   :  { %v1839_v25 = vsub.f32 %v1748_v8, %v1838_v24  ;;  %v6234_v24 = vld [vmem:[#allocation33] ss:$0 sm:$0xff] }
0x1080   :  { %v1840_v27 = vmul.f32 %v1839_v25, %v1839_v25 }
0x1082   :  { %v1841_v28 = vsel %vm745_vm4, %v1840_v27, 0.0 }
0x1083   :  { %v1842_v29 = vrot.slane %v1841_v28, 4 }
0x1085   :  { %v1843_v30 = vadd.f32 %v1842_v29, %v1841_v28 }
0x1087   :  { %v1844_v31 = vrot.slane %v1843_v30, 2 }
0x1089   :  { %v1845_v32 = vadd.f32 %v1844_v31, %v1843_v30  ;;  %v2196_v30 = vld [vmem:[#allocation39] sm:$0xff]  ;;  %v2197_v31 = vld [vmem:[#allocation39 + $0x8] sm:$0xff] }
0x108b   :  { %v1846_v33 = vrot.slane %v1845_v32, 1 }
0x108d   :  { %v1847_v34 = vadd.f32 %v1846_v33, %v1845_v32  ;;  %v7194_v32 = vpack.c.bf16 %v2197_v31, %v2196_v30  ;;  %v2198_v33 = vld [vmem:[#allocation39 + $0x10] sm:$0xff]  ;;  %v6241_v31 = vld [vmem:[#allocation37] ss:$0 sm:$0xff] }
0x108f   :  { %6961 = vmatmul.mubr.msk.f32.vlgmr.msra.gmra.mrb[16].mxu0 %vm701_vm3, %v1847_v34  ;;  %v2199_v34 = vld [vmem:[#allocation39 + $0x18] sm:$0xff] }
0x1090   :  { %7183 = vmatpush3.bf16.msra.mxu0 %v8885_v22  ;;  %6979 = vmatprep.mubr.msk.f32.mxu0 %vm8458_vm0, %v8457_v0  ;;  %v7197_v35 = vpack.c.bf16 %v2199_v34, %v2198_v33 }
0x1091   :  { %7184 = vmatprep.subr.bf16.mxu0 %v8459_v23 }
0x1094   :  { %7186 = vmatpush3.bf16.msra.mxu0 %v8890_v26 }
0x1095   :  { %6993 = vmatprep.subr.bf16.mxu0 %v8457_v0 }
0x1162   :  { %v1917_v37 = vpop.f32.mrb[16].mxu0 }
0x1163   :  { %v1921_v38 = vmul.f32 0.5, %v1917_v37  ;;  %v6962_v41 = vpop.f32.mrb[17].mxu0 }
0x1164   :  { %v2203_v41 = vld [vmem:[#allocation39 + $0x38] sm:$0xff] }
0x1165   :  { %v1922_v42 = vadd.f32 1e-05, %v1921_v38  ;;  %v2202_v38 = vld [vmem:[#allocation39 + $0x30] sm:$0xff] }
0x1167   :  { %7532 = vrsqrt.f32 %v1922_v42  ;;  %v7203_v42 = vpack.c.bf16 %v2203_v41, %v2202_v38  ;;  %v2469_v38 = vld [vmem:[#allocation45 + $0x50] sm:$0xff] }
0x1171   :  { %v7533_v43 = vpop.eup %7532 }
0x1172   :  { %v1927_v44 = vrot.slane %v7533_v43, %v8905_v40 }
0x1174   :  { %v1928_v46 = vmul.f32 %v1927_v44, %v1839_v25 }
0x1176   :  { %v1935_v48 = vmul.f32 %v6226_v45, %v1928_v46 }
0x1178   :  { %v1942_v50 = vadd.f32 %v6227_v47, %v1935_v48 }
0x117a   :  { %v1943_v51 = vmax.f32 %v1942_v50, 0.0 }
0x117c   :  { %v1944_v15 = vpack.c.bf16 %v1943_v51, %v1943_v51 }
0x117e   :  { %6968 = vmatmul.mubr.msk.bf16.vlgmr.msra.gmra.mrb[28].mxu1 %vm701_vm3, %v1944_v15 }
0x117f   :  { %7189 = vmatpush3.bf16.msra.mxu1 %v8885_v22  ;;  %6990 = vmatprep.mubr.msk.f32.mxu1 %vm8458_vm0, %v8457_v0 }
0x1180   :  { %7190 = vmatprep.subr.bf16.mxu1 %v8459_v23 }
0x1183   :  { %7192 = vmatpush3.bf16.msra.mxu1 %v8890_v26 }
0x1184   :  { %7193 = vmatprep.subr.bf16.mxu1 %v8459_v23 }
0x1251   :  { %v1998_v52 = vpop.f32.mrb[28].mxu1 }
0x1252   :  { %v2004_v53 = vsel %vm745_vm4, %v1998_v52, 0.0  ;;  %v6969_v54 = vpop.f32.mrb[29].mxu1 }
0x1253   :  { %v2005_v55 = vrot.slane %v2004_v53, 4  ;;  %v2001_v56 = vpop.f32.mrb[30].mxu1 }
0x1254   :  { %v6970_v57 = vpop.f32.mrb[31].mxu1 }
0x1255   :  { %v2006_v58 = vadd.f32 %v2005_v55, %v2004_v53 }
0x1257   :  { %v2007_v59 = vrot.slane %v2006_v58, 2 }
0x1259   :  { %v2008_v60 = vadd.f32 %v2007_v59, %v2006_v58 }
0x125b   :  { %v2009_v22 = vrot.slane %v2008_v60, 1 }
0x125d   :  { %v2010_v61 = vadd.f32 %v2009_v22, %v2008_v60 }
0x125f   :  { %6980 = vmatmul.mubr.msk.f32.vlgmr.msra.gmra.mrb[18].mxu0 %vm701_vm3, %v2010_v61 }
0x1260   :  { %6997 = vmatprep.mubr.msk.bf16.mxu0 %vm8458_vm0, %v8457_v0  ;;  %6994 = vmatpush3.bf16.msra.mxu0 %v7494_v11  ;;  %v2462_v11 = vld [vmem:[#allocation45 + $0x18] sm:$0xff] }
0x1261   :  { %6995 = vmatprep.subr.bf16.mxu0 %v8457_v0 }
0x1264   :  { %6996 = vmatpush3.bf16.msra.mxu0 %v7495_v12 }
0x1265   :  { %7205 = vmatprep.subr.bf16.mxu0 %v8459_v23 }
0x1332   :  { %v2080_v26 = vpop.f32.mrb[18].mxu0 }
0x1333   :  { %v2084_v62 = vmul.f32 0.5, %v2080_v26  ;;  %v6981_v63 = vpop.f32.mrb[19].mxu0 }
0x1335   :  { %v2088_v1 = vrot.slane %v2084_v62, %v8905_v40 }
0x1337   :  { %v2089_v2 = vsub.f32 %v1998_v52, %v2088_v1 }
0x1339   :  { %v2090_v3 = vmul.f32 %v2089_v2, %v2089_v2 }
0x133b   :  { %v2091_v4 = vsel %vm745_vm4, %v2090_v3, 0.0  ;;  %v7496_v3 = vld [vmem:[#allocation40] sm:$0xff]  }
0x133c   :  { %v2092_v5 = vrot.slane %v2091_v4, 4 }
0x133e   :  { %v2093_v7 = vadd.f32 %v2092_v5, %v2091_v4  ;;  %v7497_v4 = vld [vmem:[#allocation40 + $0x8] sm:$0xff]   ;;  %v7498_v5 = vld [vmem:[#allocation40 + $0x10] sm:$0xff]  }
0x1340   :  { %v2094_v8 = vrot.slane %v2093_v7, 2 }
0x1342   :  { %v2095_v49 = vadd.f32 %v2094_v8, %v2093_v7  ;;  %v7499_v7 = vld [vmem:[#allocation40 + $0x18] sm:$0xff]   ;;  %v2459_v8 = vld [vmem:[#allocation45] sm:$0xff] }
0x1344   :  { %v2096_v9 = vrot.slane %v2095_v49, 1 }
0x1346   :  { %v2097_v10 = vadd.f32 %v2096_v9, %v2095_v49  ;;  %v2460_v49 = vld [vmem:[#allocation45 + $0x8] sm:$0xff]  ;;  %v2461_v9 = vld [vmem:[#allocation45 + $0x10] sm:$0xff] }
0x1347   :  { %v7221_v12 = vpack.c.bf16 %v2462_v11, %v2461_v9  ;;  %v7508_v11 = vld [vmem:[#allocation46 + $0x24] ss:$8 sps:$4 sm:$0xff]  }
0x1348   :  { %6991 = vmatmul.mubr.msk.f32.vlgmr.msra.gmra.mrb[26].mxu1 %vm701_vm3, %v2097_v10  ;;  %v7218_v10 = vpack.c.bf16 %v2460_v49, %v2459_v8 }
0x1349   :  { %7017 = vmatprep.mubr.msk.f32.mxu1 %vm8458_vm0, %v8457_v0  ;;  %7195 = vmatpush3.bf16.msra.mxu1 %v7194_v32 }
0x134a   :  { %7196 = vmatprep.subr.bf16.mxu1 %v8459_v23 }
0x134d   :  { %7198 = vmatpush3.bf16.msra.mxu1 %v7197_v35 }
0x134e   :  { %7199 = vmatprep.subr.bf16.mxu1 %v8459_v23 }
0x141b   :  { %v2167_v13 = vpop.f32.mrb[26].mxu1 }
0x141c   :  { %v2171_v14 = vmul.f32 0.5, %v2167_v13  ;;  %v6992_v16 = vpop.f32.mrb[27].mxu1  ;;  %v2463_v13 = vld [vmem:[#allocation45 + $0x20] sm:$0xff] }
0x141e   :  { %v2172_v17 = vadd.f32 1e-05, %v2171_v14  ;;  %v2464_v14 = vld [vmem:[#allocation45 + $0x28] sm:$0xff] }
0x141f   :  { %v7224_v16 = vpack.c.bf16 %v2464_v14, %v2463_v13  ;;  %v7511_v13 = vld [vmem:[#allocation46 + $0x34] ss:$8 sps:$4 sm:$0xff]   ;;  %v7509_v14 = vld [vmem:[#allocation46 + $0x30] ss:$8 sps:$4 sm:$0xff]  }
0x1420   :  { %7534 = vrsqrt.f32 %v2172_v17  ;;  %v2465_v17 = vld [vmem:[#allocation45 + $0x30] sm:$0xff] }
0x142a   :  { %v7535_v18 = vpop.eup %7534 }
0x142b   :  { %v2177_v19 = vrot.slane %v7535_v18, %v8905_v40  ;;  %v2466_v18 = vld [vmem:[#allocation45 + $0x38] sm:$0xff] }
0x142d   :  { %v2178_v21 = vmul.f32 %v2177_v19, %v2089_v2  ;;  %v7227_v19 = vpack.c.bf16 %v2466_v18, %v2465_v17  ;;  %v7512_v17 = vld [vmem:[#allocation46 + $0x40] ss:$8 sps:$4 sm:$0xff]   ;;  %v7517_v18 = vld [vmem:[#allocation46 + $0x54] ss:$8 sps:$4 sm:$0xff]  }
0x142f   :  { %v2185_v25 = vmul.f32 %v6233_v20, %v2178_v21 }
0x1431   :  { %v2192_v27 = vadd.f32 %v6234_v24, %v2185_v25 }
0x1433   :  { %v2193_v28 = vadd.f32 %v2192_v27, %v8994_v6  ;;  %v2200_v6 = vld [vmem:[#allocation39 + $0x20] sm:$0xff] }
0x1434   :  { %v7200_v37 = vpack.c.bf16 %v2201_v36, %v2200_v6  ;;  %v2467_v6 = vld [vmem:[#allocation45 + $0x40] sm:$0xff]  ;;  %v2468_v36 = vld [vmem:[#allocation45 + $0x48] sm:$0xff] }
0x1435   :  { %v2204_v29 = vpack.c.bf16 %v2193_v28, %v2193_v28 }
0x1436   :  { %7201 = vmatpush3.bf16.msra.mxu1 %v7200_v37 }
0x1437   :  { %6998 = vmatmul.mubr.msk.bf16.vlgmr.msra.gmra.mrb[20].mxu0 %vm701_vm3, %v2204_v29  ;;  %7202 = vmatprep.subr.bf16.mxu1 %v8459_v23  ;;  %v6240_v29 = vld [vmem:[#allocation36] ss:$0 sm:$0xff] }
0x1438   :  { %7036 = vmatprep.mubr.msk.f32.mxu0 %vm8458_vm0, %v8457_v0  ;;  %7207 = vmatpush3.bf16.msra.mxu0 %v7194_v32 }
0x1439   :  { %7208 = vmatprep.subr.bf16.mxu0 %v8459_v23 }
0x143a   :  { %7204 = vmatpush3.bf16.msra.mxu1 %v7203_v42 }
0x143b   :  { %7039 = vmatprep.subr.bf16.mxu1 %v8457_v0 }
0x143c   :  { %7210 = vmatpush3.bf16.msra.mxu0 %v7197_v35 }
0x143d   :  { %7211 = vmatprep.subr.bf16.mxu0 %v8459_v23 }
0x1440   :  { %7213 = vmatpush3.bf16.msra.mxu0 %v7200_v37  ;;  %v7230_v37 = vpack.c.bf16 %v2468_v36, %v2467_v6  ;;  %v2741_v36 = vld [vmem:[#allocation51 + $0x20] sm:$0xff] }
0x1441   :  { %7214 = vmatprep.subr.bf16.mxu0 %v8459_v23 }
0x1444   :  { %7216 = vmatpush3.bf16.msra.mxu0 %v7203_v42  ;;  %v2471_v42 = vld [vmem:[#allocation45 + $0x60] sm:$0xff] }
0x1445   :  { %7217 = vmatprep.subr.bf16.mxu0 %v8459_v23 }
0x150a   :  { %v2258_v43 = vpop.f32.mrb[20].mxu0 }
0x150b   :  { %v2264_v44 = vmax.f32 %v2258_v43, 0.0  ;;  %v6999_v45 = vpop.f32.mrb[21].mxu0  ;;  %v2472_v43 = vld [vmem:[#allocation45 + $0x68] sm:$0xff] }
0x150c   :  { %v2261_v46 = vpop.f32.mrb[22].mxu0  ;;  %v2473_v45 = vld [vmem:[#allocation45 + $0x70] sm:$0xff] }
0x150d   :  { %v2266_v47 = vsel %vm2265_vm5, %v2264_v44, 0.0  ;;  %v7000_v48 = vpop.f32.mrb[23].mxu0  ;;  %v2474_v46 = vld [vmem:[#allocation45 + $0x78] sm:$0xff] }
0x150e   :  { %v2267_v50 = vrot.slane %v2266_v47, 4 }
0x1510   :  { %v2268_v51 = vadd.f32 %v2267_v50, %v2266_v47  ;;  %v7239_v47 = vpack.c.bf16 %v2474_v46, %v2473_v45  ;;  %v2750_v45 = vld [vmem:[#allocation51 + $0x68] sm:$0xff]  ;;  %v2752_v46 = vld [vmem:[#allocation51 + $0x78] sm:$0xff] }
0x1512   :  { %v2269_v15 = vrot.slane %v2268_v51, 2 }
0x1514   :  { %v2270_v52 = vadd.f32 %v2269_v15, %v2268_v51 }
0x1516   :  { %v2271_v53 = vrot.slane %v2270_v52, 1 }
0x1518   :  { %v2272_v54 = vadd.f32 %v2271_v53, %v2270_v52 }
0x151a   :  { %7018 = vmatmul.mubr.msk.f32.vlgmr.msra.gmra.mrb[32].mxu1 %vm2273_vm6, %v2272_v54 }
0x151b   :  { %7047 = vmatprep.mubr.msk.bf16.mxu1 %vm8458_vm0, %v8457_v0  ;;  %7040 = vmatpush3.bf16.msra.mxu1 %v7496_v3 }
0x151c   :  { %7041 = vmatprep.subr.bf16.mxu1 %v8457_v0 }
0x151f   :  { %7042 = vmatpush3.bf16.msra.mxu1 %v7497_v4 }
0x1520   :  { %7043 = vmatprep.subr.bf16.mxu1 %v8457_v0 }
0x1523   :  { %7044 = vmatpush3.bf16.msra.mxu1 %v7498_v5 }
0x1524   :  { %7045 = vmatprep.subr.bf16.mxu1 %v8457_v0 }
0x1527   :  { %7046 = vmatpush3.bf16.msra.mxu1 %v7499_v7 }
0x1528   :  { %7241 = vmatprep.subr.bf16.mxu1 %v8459_v23 }
0x15ed   :  { %v2343_v55 = vpop.f32.mrb[32].mxu1 }
0x15ee   :  { %v2347_v56 = vmul.f32 0.5, %v2343_v55  ;;  %v7019_v57 = vpop.f32.mrb[33].mxu1 }
0x15f0   :  { %v2351_v58 = vrot.slane %v2347_v56, %v8905_v40 }
0x15f2   :  { %v2352_v59 = vsub.f32 %v2264_v44, %v2351_v58  ;;  %v7236_v44 = vpack.c.bf16 %v2472_v43, %v2471_v42  ;;  %v2745_v43 = vld [vmem:[#allocation51 + $0x40] sm:$0xff] }
0x15f4   :  { %v2353_v60 = vmul.f32 %v2352_v59, %v2352_v59 }
0x15f6   :  { %v2354_v22 = vsel %vm2265_vm5, %v2353_v60, 0.0  ;;  %v7500_v60 = vld [vmem:[#allocation46] ss:$8 sps:$4 sm:$0xff]  }
0x15f7   :  { %v2355_v61 = vrot.slane %v2354_v22, 4 }
0x15f9   :  { %v2356_v26 = vadd.f32 %v2355_v61, %v2354_v22  ;;  %v7502_v22 = vld [vmem:[#allocation46 + $0x4] ss:$8 sps:$4 sm:$0xff]   ;;  %v7503_v61 = vld [vmem:[#allocation46 + $0x10] ss:$8 sps:$4 sm:$0xff]  }
0x15fb   :  { %v2357_v62 = vrot.slane %v2356_v26, 2 }
0x15fd   :  { %v2358_v63 = vadd.f32 %v2357_v62, %v2356_v26 }
0x15ff   :  { %v2359_v1 = vrot.slane %v2358_v63, 1 }
0x1601   :  { %v2360_v2 = vadd.f32 %v2359_v1, %v2358_v63 }
0x1603   :  { %7037 = vmatmul.mubr.msk.f32.vlgmr.msra.gmra.mrb[24].mxu0 %vm2273_vm6, %v2360_v2 }
0x1604   :  { %7083 = vmatprep.mubr.msk.f32.mxu0 %vm8458_vm0, %v8457_v0  ;;  %7219 = vmatpush3.bf16.msra.mxu0 %v7218_v10 }
0x1605   :  { %7220 = vmatprep.subr.bf16.mxu0 %v8459_v23 }
0x1608   :  { %7222 = vmatpush3.bf16.msra.mxu0 %v7221_v12 }
0x1609   :  { %7223 = vmatprep.subr.bf16.mxu0 %v8459_v23 }
0x160c   :  { %7225 = vmatpush3.bf16.msra.mxu0 %v7224_v16 }
0x160d   :  { %7226 = vmatprep.subr.bf16.mxu0 %v8459_v23 }
0x1610   :  { %7228 = vmatpush3.bf16.msra.mxu0 %v7227_v19 }
0x1611   :  { %7229 = vmatprep.subr.bf16.mxu0 %v8459_v23 }
0x1614   :  { %7231 = vmatpush3.bf16.msra.mxu0 %v7230_v37 }
0x1615   :  { %7232 = vmatprep.subr.bf16.mxu0 %v8459_v23 }
0x16d6   :  { %v2430_v20 = vpop.f32.mrb[24].mxu0 }
0x16d7   :  { %v2434_v21 = vmul.f32 0.5, %v2430_v20  ;;  %v7038_v24 = vpop.f32.mrb[25].mxu0  ;;  %v7518_v20 = vld [vmem:[#allocation46 + $0x60] ss:$8 sps:$4 sm:$0xff]  }
0x16d8   :  { %v7523_v24 = vld [vmem:[#allocation46 + $0x74] ss:$8 sps:$4 sm:$0xff]  }
0x16d9   :  { %v2435_v25 = vadd.f32 1e-05, %v2434_v21  ;;  %v7520_v21 = vld [vmem:[#allocation46 + $0x64] ss:$8 sps:$4 sm:$0xff]  }
0x16db   :  { %7536 = vrsqrt.f32 %v2435_v25  ;;  %v8460_v25 = vmov 0  }
0x16e5   :  { %v7537_v27 = vpop.eup %7536 }
0x16e6   :  { %v2440_v28 = vrot.slane %v7537_v27, %v8905_v40  ;;  %v7521_v27 = vld [vmem:[#allocation46 + $0x70] ss:$8 sps:$4 sm:$0xff]  }
0x16e8   :  { %v2441_v30 = vmul.f32 %v2440_v28, %v2352_v59  ;;  %v2738_v28 = vld [vmem:[#allocation51 + $0x8] sm:$0xff] }
0x16ea   :  { %v2448_v32 = vmul.f32 %v6240_v29, %v2441_v30  ;;  %v2740_v29 = vld [vmem:[#allocation51 + $0x18] sm:$0xff]  ;;  %v2737_v30 = vld [vmem:[#allocation51] sm:$0xff] }
0x16ec   :  { %v2455_v33 = vadd.f32 %v6241_v31, %v2448_v32  ;;  %v7265_v31 = vpack.c.bf16 %v2740_v29, %v2738_v28  ;;  %v2739_v32 = vld [vmem:[#allocation51 + $0x10] sm:$0xff] }
0x16ee   :  { %v2456_v34 = vmax.f32 %v2455_v33, 0.0  ;;  %v2742_v33 = vld [vmem:[#allocation51 + $0x28] sm:$0xff] }
0x16f0   :  { %v2475_v35 = vpack.c.bf16 %v2456_v34, %v2456_v34  ;;  %v2744_v34 = vld [vmem:[#allocation51 + $0x38] sm:$0xff] }
0x16f1   :  { %v9092_v6 = vpack.c.bf16 %v2744_v34, %v2742_v33 }
0x16f2   :  { %7048 = vmatmul.mubr.msk.bf16.vlgmr.msra.gmra.mrb[36].mxu1 %vm2273_vm6, %v2475_v35  ;;  %v9090_v35 = vpack.c.bf16 %v2739_v32, %v2737_v30  ;;  %v6247_v30 = vld [vmem:[#allocation42] ss:$0 sm:$0xff]  ;;  %v6248_v32 = vld [vmem:[#allocation43] ss:$0 sm:$0xff] }
0x16f3   :  { %7243 = vmatpush3.bf16.msra.mxu1 %v7218_v10  ;;  %7118 = vmatprep.mubr.msk.f32.mxu1 %vm8458_vm0, %v8457_v0  ;;  %v2470_v0 = vld [vmem:[#allocation45 + $0x58] sm:$0xff] }
0x16f4   :  { %7244 = vmatprep.subr.bf16.mxu1 %v8459_v23  ;;  %v7233_v41 = vpack.c.bf16 %v2470_v0, %v2469_v38  ;;  %v2746_v38 = vld [vmem:[#allocation51 + $0x48] sm:$0xff]  ;;  %v2748_v0 = vld [vmem:[#allocation51 + $0x58] sm:$0xff] }
0x16f5   :  { %v9098_v42 = vpack.c.bf16 %v2748_v0, %v2746_v38  ;;  %v2780_v38 = vld [vmem:[#allocation51 + $0x158] sm:$0xff] }
0x16f6   :  { %7234 = vmatpush3.bf16.msra.mxu0 %v7233_v41 }
0x16f7   :  { %7246 = vmatpush3.bf16.msra.mxu1 %v7221_v12  ;;  %7235 = vmatprep.subr.bf16.mxu0 %v8459_v23  ;;  %v7506_v12 = vld [vmem:[#allocation46 + $0x20] ss:$8 sps:$4 sm:$0xff]  }
0x16f8   :  { %7247 = vmatprep.subr.bf16.mxu1 %v8459_v23 }
0x16fa   :  { %7237 = vmatpush3.bf16.msra.mxu0 %v7236_v44 }
0x16fb   :  { %7249 = vmatpush3.bf16.msra.mxu1 %v7224_v16  ;;  %7238 = vmatprep.subr.bf16.mxu0 %v8459_v23  ;;  %v7514_v16 = vld [vmem:[#allocation46 + $0x44] ss:$8 sps:$4 sm:$0xff]  }
0x16fc   :  { %7250 = vmatprep.subr.bf16.mxu1 %v8459_v23 }
0x16fe   :  { %7240 = vmatpush3.bf16.msra.mxu0 %v7239_v47 }
0x16ff   :  { %7252 = vmatpush3.bf16.msra.mxu1 %v7227_v19  ;;  %2898 = vmatprep.subr.bf16.mxu0 %v7502_v22  ;;  %v7515_v19 = vld [vmem:[#allocation46 + $0x50] ss:$8 sps:$4 sm:$0xff]   ;;  %v2757_v22 = vld [vmem:[#allocation51 + $0xa0] sm:$0xff] }
0x1700   :  { %7253 = vmatprep.subr.bf16.mxu1 %v8459_v23 }
0x1703   :  { %7255 = vmatpush3.bf16.msra.mxu1 %v7230_v37  ;;  %v2743_v37 = vld [vmem:[#allocation51 + $0x30] sm:$0xff] }
0x1704   :  { %7256 = vmatprep.subr.bf16.mxu1 %v8459_v23 }
0x1707   :  { %7258 = vmatpush3.bf16.msra.mxu1 %v7233_v41  ;;  %v9095_v41 = vpack.c.bf16 %v2743_v37, %v2741_v36  ;;  %v2778_v37 = vld [vmem:[#allocation51 + $0x148] sm:$0xff] }
0x1708   :  { %7259 = vmatprep.subr.bf16.mxu1 %v8459_v23  ;;  %v7305_v0 = vpack.c.bf16 %v2780_v38, %v2778_v37  ;;  %v3193_v37 = vld [vmem:[#allocation52 + $0xc0] sm:$0xff] }
0x1709   :  { %v3205_v38 = vld [vmem:[#allocation52 + $0x120] sm:$0xff] }
0x170b   :  { %7261 = vmatpush3.bf16.msra.mxu1 %v7236_v44  ;;  %v2747_v44 = vld [vmem:[#allocation51 + $0x50] sm:$0xff] }
0x170c   :  { %7262 = vmatprep.subr.bf16.mxu1 %v8459_v23  ;;  %v7505_v23 = vld [vmem:[#allocation46 + $0x14] ss:$8 sps:$4 sm:$0xff]  }
0x170f   :  { %7264 = vmatpush3.bf16.msra.mxu1 %v7239_v47  ;;  %v9101_v47 = vpack.c.bf16 %v2747_v44, %v2745_v43  ;;  %v2782_v44 = vld [vmem:[#allocation51 + $0x168] sm:$0xff] }
0x1710   :  { %7266 = vmatprep.subr.bf16.mxu1 %v7265_v31 }
0x17c5   :  { %v2545_v48 = vpop.f32.mrb[36].mxu1 }
0x17c6   :  { %v2551_v50 = vmax.f32 %v2545_v48, 0.0  ;;  %v7049_v51 = vpop.f32.mrb[37].mxu1  ;;  %v9104_v48 = vpack.c.bf16 %v2752_v46, %v2750_v45  ;;  %v2784_v45 = vld [vmem:[#allocation51 + $0x178] sm:$0xff] }
0x17c7   :  { %v2548_v15 = vpop.f32.mrb[38].mxu1  ;;  %v2751_v51 = vld [vmem:[#allocation51 + $0x70] sm:$0xff]  ;;  %v7309_v46 = vpack.c.bf16 %v2784_v45, %v2782_v44  ;;  %v3217_v44 = vld [vmem:[#allocation52 + $0x180] sm:$0xff] }
0x17c8   :  { %v2552_v52 = vsel %vm636_vm1, %v2551_v50, 0.0  ;;  %v7050_v53 = vpop.f32.mrb[39].mxu1  ;;  %v2754_v15 = vld [vmem:[#allocation51 + $0x88] sm:$0xff]  ;;  %v3229_v45 = vld [vmem:[#allocation52 + $0x1e0] sm:$0xff] }
0x17c9   :  { %v2553_v54 = vrot.slane %v2552_v52, 4 }
0x17cb   :  { %v2554_v55 = vadd.f32 %v2553_v54, %v2552_v52  ;;  %v2756_v52 = vld [vmem:[#allocation51 + $0x98] sm:$0xff] }
0x17cc   :  { %v9110_v54 = vpack.c.bf16 %v2756_v52, %v2754_v15  ;;  %v2788_v15 = vld [vmem:[#allocation51 + $0x198] sm:$0xff] }
0x17cd   :  { %v2555_v56 = vrot.slane %v2554_v55, 2 }
0x17cf   :  { %v2556_v57 = vadd.f32 %v2555_v56, %v2554_v55  ;;  %v2753_v55 = vld [vmem:[#allocation51 + $0x80] sm:$0xff]  ;;  %v2755_v56 = vld [vmem:[#allocation51 + $0x90] sm:$0xff] }
0x17d1   :  { %v2557_v58 = vrot.slane %v2556_v57, 1 }
0x17d3   :  { %v2558_v59 = vadd.f32 %v2557_v58, %v2556_v57  ;;  %v2758_v57 = vld [vmem:[#allocation51 + $0xa8] sm:$0xff]  ;;  %v2760_v58 = vld [vmem:[#allocation51 + $0xb8] sm:$0xff] }
0x17d5   :  { %7084 = vmatmul.mubr.f32.vlgmr.msra.gmra.mrb[26].mxu0 %v2558_v59  ;;  %v7283_v59 = vpack.c.bf16 %v2755_v56, %v2753_v55  ;;  %v2790_v56 = vld [vmem:[#allocation51 + $0x1a8] sm:$0xff] }
0x17d6   :  { %2899 = vmatpush1.bf16.msra.mxu0 %v7500_v60  ;;  %2930 = vmatprep.mubr.bf16.mxu0 %v8460_v25  ;;  %v7285_v60 = vpack.c.bf16 %v2760_v58, %v2758_v57  ;;  %v2792_v57 = vld [vmem:[#allocation51 + $0x1b8] sm:$0xff] }
0x17d7   :  { %2900 = vmatprep.subr.bf16.mxu0 %v7505_v23  ;;  %v2759_v23 = vld [vmem:[#allocation51 + $0xb0] sm:$0xff]  ;;  %v7317_v58 = vpack.c.bf16 %v2792_v57, %v2790_v56  ;;  %v3289_v56 = vld [vmem:[#allocation52 + $0x3c0] sm:$0xff] }
0x17d8   :  { %v3301_v57 = vld [vmem:[#allocation52 + $0x420] sm:$0xff] }
0x17da   :  { %2901 = vmatpush1.bf16.msra.mxu0 %v7503_v61  ;;  %v2762_v61 = vld [vmem:[#allocation51 + $0xc8] sm:$0xff] }
0x17db   :  { %2902 = vmatprep.subr.bf16.mxu0 %v7508_v11  ;;  %v2772_v11 = vld [vmem:[#allocation51 + $0x118] sm:$0xff] }
0x17de   :  { %2903 = vmatpush1.bf16.msra.mxu0 %v7506_v12 }
0x17df   :  { %2904 = vmatprep.subr.bf16.mxu0 %v7511_v13 }
0x17e2   :  { %2905 = vmatpush1.bf16.msra.mxu0 %v7509_v14  ;;  %v2769_v14 = vld [vmem:[#allocation51 + $0x100] sm:$0xff] }
0x17e3   :  { %2906 = vmatprep.subr.bf16.mxu0 %v7514_v16  ;;  %v2771_v16 = vld [vmem:[#allocation51 + $0x110] sm:$0xff] }
0x17e6   :  { %2907 = vmatpush1.bf16.msra.mxu0 %v7512_v17  ;;  %v2774_v17 = vld [vmem:[#allocation51 + $0x128] sm:$0xff] }
0x17e7   :  { %2908 = vmatprep.subr.bf16.mxu0 %v7517_v18  ;;  %v2776_v18 = vld [vmem:[#allocation51 + $0x138] sm:$0xff] }
0x17ea   :  { %2909 = vmatpush1.bf16.msra.mxu0 %v7515_v19  ;;  %v7299_v19 = vpack.c.bf16 %v2771_v16, %v2769_v14 }
0x17eb   :  { %2910 = vmatprep.subr.bf16.mxu0 %v7520_v21 }
0x17ee   :  { %2911 = vmatpush1.bf16.msra.mxu0 %v7518_v20  ;;  %v7301_v20 = vpack.c.bf16 %v2776_v18, %v2774_v17 }
0x17ef   :  { %2912 = vmatprep.subr.bf16.mxu0 %v7523_v24 }
0x17f2   :  { %2913 = vmatpush1.bf16.msra.mxu0 %v7521_v27 }
0x17f3   :  { %7330 = vmatprep.subr.bf16.mxu0 %v7265_v31 }
0x18a8   :  { %v2625_v26 = vpop.f32.mrb[26].mxu0 }
0x18a9   :  { %v2629_v62 = vmul.f32 0.5, %v2625_v26  ;;  %v7085_v63 = vpop.f32.mrb[27].mxu0  ;;  %v2764_v26 = vld [vmem:[#allocation51 + $0xd8] sm:$0xff] }
0x18aa   :  { %v7289_v63 = vpack.c.bf16 %v2764_v26, %v2762_v61  ;;  %v2796_v61 = vld [vmem:[#allocation51 + $0x1d8] sm:$0xff]  ;;  %v2793_v26 = vld [vmem:[#allocation51 + $0x1c0] sm:$0xff] }
0x18ab   :  { %v2633_v1 = vrot.slane %v2629_v62, %v8905_v40  ;;  %v7287_v62 = vpack.c.bf16 %v2759_v23, %v2757_v22  ;;  %v2794_v22 = vld [vmem:[#allocation51 + $0x1c8] sm:$0xff] }
0x18ad   :  { %v9085_v2 = vsub.f32 %v2551_v50, %v2633_v1  ;;  %v2749_v50 = vld [vmem:[#allocation51 + $0x60] sm:$0xff] }
0x18ae   :  { %v9107_v53 = vpack.c.bf16 %v2751_v51, %v2749_v50  ;;  %v2761_v1 = vld [vmem:[#allocation51 + $0xc0] sm:$0xff]  ;;  %v2786_v51 = vld [vmem:[#allocation51 + $0x188] sm:$0xff] }
0x18af   :  { %v2635_v3 = vmul.f32 %v9085_v2, %v9085_v2  ;;  %v7313_v52 = vpack.c.bf16 %v2788_v15, %v2786_v51 }
0x18b1   :  { %v2636_v4 = vsel %vm636_vm1, %v2635_v3, 0.0  ;;  %v2763_v3 = vld [vmem:[#allocation51 + $0xd0] sm:$0xff] }
0x18b2   :  { %v2637_v5 = vrot.slane %v2636_v4, 4 }
0x18b4   :  { %v2638_v7 = vadd.f32 %v2637_v5, %v2636_v4  ;;  %v2766_v4 = vld [vmem:[#allocation51 + $0xe8] sm:$0xff]  ;;  %v2768_v5 = vld [vmem:[#allocation51 + $0xf8] sm:$0xff] }
0x18b6   :  { %v2639_v8 = vrot.slane %v2638_v7, 2 }
0x18b8   :  { %v2640_v49 = vadd.f32 %v2639_v8, %v2638_v7  ;;  %v7291_v7 = vpack.c.bf16 %v2763_v3, %v2761_v1  ;;  %v7293_v8 = vpack.c.bf16 %v2768_v5, %v2766_v4  ;;  %v2798_v1 = vld [vmem:[#allocation51 + $0x1e8] sm:$0xff]  ;;  %v2800_v3 = vld [vmem:[#allocation51 + $0x1f8] sm:$0xff] }
0x18b9   :  { %v7325_v5 = vpack.c.bf16 %v2800_v3, %v2798_v1  ;;  %v3361_v3 = vld [vmem:[#allocation52 + $0x600] sm:$0xff] }
0x18ba   :  { %v2641_v9 = vrot.slane %v2640_v49, 1 }
0x18bc   :  { %v2642_v10 = vadd.f32 %v2641_v9, %v2640_v49  ;;  %v2765_v49 = vld [vmem:[#allocation51 + $0xe0] sm:$0xff]  ;;  %v2767_v9 = vld [vmem:[#allocation51 + $0xf0] sm:$0xff] }
0x18bd   :  { %v7295_v12 = vpack.c.bf16 %v2767_v9, %v2765_v49 }
0x18be   :  { %7119 = vmatmul.mubr.f32.vlgmr.msra.gmra.mrb[34].mxu1 %v2642_v10  ;;  %v2770_v10 = vld [vmem:[#allocation51 + $0x108] sm:$0xff] }
0x18bf   :  { %7268 = vmatpush1.bf16.msra.mxu1 %v9090_v35  ;;  %v7297_v13 = vpack.c.bf16 %v2772_v11, %v2770_v10 }
0x18c0   :  { %7270 = vmatprep.subr.bf16.mxu1 %v9092_v6 }
0x18c3   :  { %7272 = vmatpush1.bf16.msra.mxu1 %v9095_v41 }
0x18c4   :  { %7274 = vmatprep.subr.bf16.mxu1 %v9098_v42 }
0x18c7   :  { %7276 = vmatpush1.bf16.msra.mxu1 %v9101_v47 }
0x18c8   :  { %7278 = vmatprep.subr.bf16.mxu1 %v9104_v48 }
0x18cb   :  { %7280 = vmatpush1.bf16.msra.mxu1 %v9107_v53 }
0x18cc   :  { %7282 = vmatprep.subr.bf16.mxu1 %v9110_v54 }
0x18cf   :  { %7284 = vmatpush1.bf16.msra.mxu1 %v7283_v59 }
0x18d0   :  { %7286 = vmatprep.subr.bf16.mxu1 %v7285_v60 }
0x18d3   :  { %7288 = vmatpush1.bf16.msra.mxu1 %v7287_v62 }
0x18d4   :  { %7290 = vmatprep.subr.bf16.mxu1 %v7289_v63 }
0x18d7   :  { %7292 = vmatpush1.bf16.msra.mxu1 %v7291_v7 }
0x18d8   :  { %7294 = vmatprep.subr.bf16.mxu1 %v7293_v8 }
0x18db   :  { %7296 = vmatpush1.bf16.msra.mxu1 %v7295_v12 }
0x18dc   :  { %7298 = vmatprep.subr.bf16.mxu1 %v7297_v13 }
0x18df   :  { %7300 = vmatpush1.bf16.msra.mxu1 %v7299_v19 }
0x18e0   :  { %7302 = vmatprep.subr.bf16.mxu1 %v7301_v20 }
0x1991   :  { %v2709_v21 = vpop.f32.mrb[34].mxu1 }
0x1992   :  { %v2713_v24 = vmul.f32 0.5, %v2709_v21  ;;  %v7120_v25 = vpop.f32.mrb[35].mxu1 }
0x1994   :  { %v2714_v27 = vadd.f32 1e-05, %v2713_v24 }
0x1996   :  { %7538 = vrsqrt.f32 %v2714_v27 }
0x19a0   :  { %v7539_v28 = vpop.eup %7538 }
0x19a1   :  { %v2719_v29 = vrot.slane %v7539_v28, %v8905_v40 }
0x19a3   :  { %v2720_v31 = vmul.f32 %v2719_v29, %v9085_v2  ;;  %v2773_v2 = vld [vmem:[#allocation51 + $0x120] sm:$0xff] }
0x19a5   :  { %v2727_v33 = vmul.f32 %v6247_v30, %v2720_v31 }
0x19a7   :  { %v2734_v34 = vadd.f32 %v6248_v32, %v2727_v33  ;;  %v3169_v33 = vld [vmem:[#allocation52] sm:$0xff] }
0x19a9   :  { %v2801_v36 = vpack.c.bf16 %v2734_v34, %v2734_v34  ;;  %v3181_v34 = vld [vmem:[#allocation52 + $0x60] sm:$0xff] }
0x19ab   :  { %2931 = vmatmul.mubr.bf16.vlgmr.msra.gmra.mrb[28].mxu0 %v2801_v36  ;;  %v9132_v36 = vld [vmem:[#allocation52 + $0x8] sm:$0xff] }
0x19ac   :  { %7332 = vmatpush1.bf16.msra.mxu0 %v9090_v35  ;;  %v2775_v35 = vld [vmem:[#allocation51 + $0x130] sm:$0xff] }
0x19ad   :  { %7334 = vmatprep.subr.bf16.mxu0 %v9092_v6  ;;  %v7303_v6 = vpack.c.bf16 %v2775_v35, %v2773_v2  ;;  %v6265_v2 = vcombine.low %v3169_v33, %v3181_v34  ;;  %v6266_v35 = vcombine.high %v3169_v33, %v3181_v34 }
0x19af   :  { %7304 = vmatpush1.bf16.msra.mxu1 %v7303_v6 }
0x19b0   :  { %7336 = vmatpush1.bf16.msra.mxu0 %v9095_v41  ;;  %v2777_v41 = vld [vmem:[#allocation51 + $0x140] sm:$0xff]  ;;  %7306 = vmatprep.subr.bf16.mxu1 %v7305_v0 }
0x19b1   :  { %7338 = vmatprep.subr.bf16.mxu0 %v9098_v42  ;;  %v2779_v42 = vld [vmem:[#allocation51 + $0x150] sm:$0xff] }
0x19b2   :  { %v7307_v43 = vpack.c.bf16 %v2779_v42, %v2777_v41  ;;  %v6290_v42 = vcombine.high %v3193_v37, %v3205_v38 }
0x19b4   :  { %7340 = vmatpush1.bf16.msra.mxu0 %v9101_v47  ;;  %7308 = vmatpush1.bf16.msra.mxu1 %v7307_v43  ;;  %v2781_v47 = vld [vmem:[#allocation51 + $0x160] sm:$0xff] }
0x19b5   :  { %7342 = vmatprep.subr.bf16.mxu0 %v9104_v48  ;;  %v2783_v48 = vld [vmem:[#allocation51 + $0x170] sm:$0xff]  ;;  %7310 = vmatprep.subr.bf16.mxu1 %v7309_v46 }
0x19b6   :  { %v7311_v50 = vpack.c.bf16 %v2783_v48, %v2781_v47  ;;  %v6313_v47 = vcombine.low %v3217_v44, %v3229_v45  ;;  %v3241_v48 = vld [vmem:[#allocation52 + $0x240] sm:$0xff] }
0x19b8   :  { %7344 = vmatpush1.bf16.msra.mxu0 %v9107_v53  ;;  %7312 = vmatpush1.bf16.msra.mxu1 %v7311_v50  ;;  %v2785_v53 = vld [vmem:[#allocation51 + $0x180] sm:$0xff] }
0x19b9   :  { %7346 = vmatprep.subr.bf16.mxu0 %v9110_v54  ;;  %v2787_v54 = vld [vmem:[#allocation51 + $0x190] sm:$0xff]  ;;  %7314 = vmatprep.subr.bf16.mxu1 %v7313_v52 }
0x19ba   :  { %v7315_v55 = vpack.c.bf16 %v2787_v54, %v2785_v53  ;;  %v3277_v53 = vld [vmem:[#allocation52 + $0x360] sm:$0xff] }
0x19bc   :  { %7348 = vmatpush1.bf16.msra.mxu0 %v7283_v59  ;;  %7316 = vmatpush1.bf16.msra.mxu1 %v7315_v55  ;;  %v2789_v59 = vld [vmem:[#allocation51 + $0x1a0] sm:$0xff] }
0x19bd   :  { %7350 = vmatprep.subr.bf16.mxu0 %v7285_v60  ;;  %v2791_v60 = vld [vmem:[#allocation51 + $0x1b0] sm:$0xff]  ;;  %7318 = vmatprep.subr.bf16.mxu1 %v7317_v58 }
0x19be   :  { %v7319_v23 = vpack.c.bf16 %v2791_v60, %v2789_v59  ;;  %v6385_v59 = vcombine.low %v3289_v56, %v3301_v57  ;;  %v3313_v60 = vld [vmem:[#allocation52 + $0x480] sm:$0xff] }
0x19c0   :  { %7352 = vmatpush1.bf16.msra.mxu0 %v7287_v62  ;;  %v2795_v62 = vld [vmem:[#allocation51 + $0x1d0] sm:$0xff]  ;;  %7320 = vmatpush1.bf16.msra.mxu1 %v7319_v23 }
0x19c1   :  { %7354 = vmatprep.subr.bf16.mxu0 %v7289_v63  ;;  %v7321_v63 = vpack.c.bf16 %v2796_v61, %v2794_v22  ;;  %v7323_v4 = vpack.c.bf16 %v2795_v62, %v2793_v26  ;;  %v3325_v22 = vld [vmem:[#allocation52 + $0x4e0] sm:$0xff] }
0x19c2   :  { %v6409_v61 = vcombine.low %v3313_v60, %v3325_v22  ;;  %v3337_v26 = vld [vmem:[#allocation52 + $0x540] sm:$0xff] }
0x19c3   :  { %7322 = vmatprep.subr.bf16.mxu1 %v7321_v63  ;;  %v3349_v62 = vld [vmem:[#allocation52 + $0x5a0] sm:$0xff] }
0x19c4   :  { %7356 = vmatpush1.bf16.msra.mxu0 %v7291_v7  ;;  %v2797_v7 = vld [vmem:[#allocation51 + $0x1e0] sm:$0xff]  ;;  %7324 = vmatpush1.bf16.msra.mxu1 %v7323_v4  ;;  %v6433_v1 = vcombine.low %v3337_v26, %v3349_v62 }
0x19c5   :  { %7358 = vmatprep.subr.bf16.mxu0 %v7293_v8  ;;  %v2799_v8 = vld [vmem:[#allocation51 + $0x1f0] sm:$0xff]  ;;  %7326 = vmatprep.subr.bf16.mxu1 %v7325_v5 }
0x19c6   :  { %v7327_v49 = vpack.c.bf16 %v2799_v8, %v2797_v7  ;;  %v3385_v8 = vld [vmem:[#allocation52 + $0x6c0] sm:$0xff] }
0x19c8   :  { %7360 = vmatpush1.bf16.msra.mxu0 %v7295_v12  ;;  %7328 = vmatpush1.bf16.msra.mxu1 %v7327_v49 }
0x19c9   :  { %7362 = vmatprep.subr.bf16.mxu0 %v7297_v13  ;;  %5473 = vmatprep.subr.bf16.mxu1 %v6266_v35 }
0x19cc   :  { %7364 = vmatpush1.bf16.msra.mxu0 %v7299_v19 }
0x19cd   :  { %7366 = vmatprep.subr.bf16.mxu0 %v7301_v20 }
0x19d0   :  { %7368 = vmatpush1.bf16.msra.mxu0 %v7303_v6  ;;  %v9134_v6 = vld [vmem:[#allocation52 + $0x68] sm:$0xff] }
0x19d1   :  { %7370 = vmatprep.subr.bf16.mxu0 %v7305_v0  ;;  %v6267_v0 = vcombine.low %v9132_v36, %v9134_v6  ;;  %v6268_v41 = vcombine.high %v9132_v36, %v9134_v6 }
0x19d4   :  { %7372 = vmatpush1.bf16.msra.mxu0 %v7307_v43  ;;  %v6289_v43 = vcombine.low %v3193_v37, %v3205_v38  ;;  %v3194_v37 = vld [vmem:[#allocation52 + $0xc8] sm:$0xff] }
0x19d5   :  { %7374 = vmatprep.subr.bf16.mxu0 %v7309_v46  ;;  %v6314_v46 = vcombine.high %v3217_v44, %v3229_v45  ;;  %v3206_v38 = vld [vmem:[#allocation52 + $0x128] sm:$0xff] }
0x19d6   :  { %v3218_v44 = vld [vmem:[#allocation52 + $0x188] sm:$0xff] }
0x19d7   :  { %v3230_v45 = vld [vmem:[#allocation52 + $0x1e8] sm:$0xff] }
0x19d8   :  { %7376 = vmatpush1.bf16.msra.mxu0 %v7311_v50  ;;  %v3253_v50 = vld [vmem:[#allocation52 + $0x2a0] sm:$0xff] }
0x19d9   :  { %7378 = vmatprep.subr.bf16.mxu0 %v7313_v52  ;;  %v6338_v51 = vcombine.high %v3241_v48, %v3253_v50  ;;  %v6337_v15 = vcombine.low %v3241_v48, %v3253_v50  ;;  %v3265_v52 = vld [vmem:[#allocation52 + $0x300] sm:$0xff]  ;;  %v3242_v48 = vld [vmem:[#allocation52 + $0x248] sm:$0xff] }
0x19da   :  { %v6362_v54 = vcombine.high %v3265_v52, %v3277_v53  ;;  %v3254_v50 = vld [vmem:[#allocation52 + $0x2a8] sm:$0xff] }
0x19dc   :  { %7380 = vmatpush1.bf16.msra.mxu0 %v7315_v55  ;;  %v6361_v55 = vcombine.low %v3265_v52, %v3277_v53  ;;  %v3266_v52 = vld [vmem:[#allocation52 + $0x308] sm:$0xff] }
0x19dd   :  { %7382 = vmatprep.subr.bf16.mxu0 %v7317_v58  ;;  %v6386_v58 = vcombine.high %v3289_v56, %v3301_v57  ;;  %v3278_v53 = vld [vmem:[#allocation52 + $0x368] sm:$0xff] }
0x19de   :  { %v3290_v56 = vld [vmem:[#allocation52 + $0x3c8] sm:$0xff]  ;;  %v6363_v36 = vcombine.low %v3266_v52, %v3278_v53 }
0x19df   :  { %v3302_v57 = vld [vmem:[#allocation52 + $0x428] sm:$0xff] }
0x19e0   :  { %7384 = vmatpush1.bf16.msra.mxu0 %v7319_v23  ;;  %v6410_v23 = vcombine.high %v3313_v60, %v3325_v22  ;;  %v6388_v6 = vcombine.high %v3290_v56, %v3302_v57  ;;  %v3338_v22 = vld [vmem:[#allocation52 + $0x548] sm:$0xff] }
0x19e1   :  { %7386 = vmatprep.subr.bf16.mxu0 %v7321_v63  ;;  %v6434_v63 = vcombine.high %v3337_v26, %v3349_v62  ;;  %v3362_v62 = vld [vmem:[#allocation52 + $0x608] sm:$0xff] }
0x19e4   :  { %7388 = vmatpush1.bf16.msra.mxu0 %v7323_v4  ;;  %v3373_v4 = vld [vmem:[#allocation52 + $0x660] sm:$0xff] }
0x19e5   :  { %7390 = vmatprep.subr.bf16.mxu0 %v7325_v5  ;;  %v6458_v5 = vcombine.high %v3361_v3, %v3373_v4  ;;  %v6457_v7 = vcombine.low %v3361_v3, %v3373_v4  ;;  %v3386_v4 = vld [vmem:[#allocation52 + $0x6c8] sm:$0xff] }
0x19e8   :  { %7392 = vmatpush1.bf16.msra.mxu0 %v7327_v49  ;;  %v3397_v49 = vld [vmem:[#allocation52 + $0x720] sm:$0xff] }
0x19e9   :  { %5514 = vmatprep.subr.bf16.mxu0 %v6268_v41 }
0x1a7e   :  { %v2932_v9 = vpop.f32.mrb[28].mxu0 }
0x1a7f   :  { %7540 = vtanh.f32 %v2932_v9  ;;  %v2934_v10 = vpop.f32.mrb[29].mxu0  ;;  %v6482_v9 = vcombine.high %v3385_v8, %v3397_v49 }
0x1a80   :  { %7542 = vtanh.f32 %v2934_v10  ;;  %v2936_v11 = vpop.f32.mrb[30].mxu0  ;;  %v6481_v10 = vcombine.low %v3385_v8, %v3397_v49 }
0x1a81   :  { %v2937_v12 = vpop.f32.mrb[31].mxu0 }
0x1a89   :  { %v9124_v13 = vpop.eup %7540 }
0x1a8a   :  { %v9126_v14 = vpop.eup %7542  ;;  %v2941_v16 = vsel %vm636_vm1, %v9124_v13, 0.0 }
0x1a8b   :  { %v2942_v17 = vrot.slane %v2941_v16, 4  ;;  %v2948_v18 = vsel %vm636_vm1, %v9126_v14, 0.0 }
0x1a8c   :  { %v2949_v19 = vrot.slane %v2948_v18, 4 }
0x1a8d   :  { %v2943_v20 = vadd.f32 %v2942_v17, %v2941_v16 }
0x1a8e   :  { %v2950_v21 = vadd.f32 %v2949_v19, %v2948_v18 }
0x1a8f   :  { %v2944_v24 = vrot.slane %v2943_v20, 2 }
0x1a90   :  { %v2951_v25 = vrot.slane %v2950_v21, 2 }
0x1a91   :  { %v2945_v27 = vadd.f32 %v2944_v24, %v2943_v20 }
0x1a92   :  { %v2952_v28 = vadd.f32 %v2951_v25, %v2950_v21 }
0x1a93   :  { %v2946_v29 = vrot.slane %v2945_v27, 1 }
0x1a94   :  { %v2953_v30 = vrot.slane %v2952_v28, 1 }
0x1a95   :  { %v2947_v32 = vadd.f32 %v2946_v29, %v2945_v27 }
0x1a96   :  { %v2954_v31 = vadd.f32 %v2953_v30, %v2952_v28 }
0x1a98   :  { %3019 = vmatprep.mubr.f32.mxu1 %v2954_v31 }
0x1a99   :  { %3020 = vmatmul.mubr.f32.vlgmr.msra.gmra.mrb[40].mxu1 %v2947_v32 }
0x1a9a   :  { %5474 = vmatpush1.bf16.msra.mxu1 %v6265_v2 }
0x1a9b   :  { %5475 = vmatprep.subr.bf16.mxu1 %v6290_v42 }
0x1a9e   :  { %5476 = vmatpush1.bf16.msra.mxu1 %v6289_v43  ;;  %v6292_v43 = vcombine.high %v3194_v37, %v3206_v38 }
0x1a9f   :  { %5477 = vmatprep.subr.bf16.mxu1 %v6314_v46  ;;  %v6291_v46 = vcombine.low %v3194_v37, %v3206_v38 }
0x1aa2   :  { %5478 = vmatpush1.bf16.msra.mxu1 %v6313_v47  ;;  %v6316_v47 = vcombine.high %v3218_v44, %v3230_v45 }
0x1aa3   :  { %5479 = vmatprep.subr.bf16.mxu1 %v6338_v51  ;;  %v6315_v51 = vcombine.low %v3218_v44, %v3230_v45  ;;  %v3494_v45 = vld [vmem:[#allocation52 + $0xa28] sm:$0xff] }
0x1aa6   :  { %5480 = vmatpush1.bf16.msra.mxu1 %v6337_v15  ;;  %v6340_v15 = vcombine.high %v3242_v48, %v3254_v50 }
0x1aa7   :  { %5481 = vmatprep.subr.bf16.mxu1 %v6362_v54  ;;  %v6339_v54 = vcombine.low %v3242_v48, %v3254_v50  ;;  %v3505_v50 = vld [vmem:[#allocation52 + $0xa80] sm:$0xff] }
0x1aaa   :  { %5482 = vmatpush1.bf16.msra.mxu1 %v6361_v55  ;;  %v6364_v55 = vcombine.high %v3266_v52, %v3278_v53  ;;  %v3518_v53 = vld [vmem:[#allocation52 + $0xae8] sm:$0xff] }
0x1aab   :  { %5483 = vmatprep.subr.bf16.mxu1 %v6386_v58  ;;  %v3326_v58 = vld [vmem:[#allocation52 + $0x4e8] sm:$0xff] }
0x1aae   :  { %5484 = vmatpush1.bf16.msra.mxu1 %v6385_v59  ;;  %v6387_v59 = vcombine.low %v3290_v56, %v3302_v57  ;;  %v3529_v57 = vld [vmem:[#allocation52 + $0xb40] sm:$0xff] }
0x1aaf   :  { %5485 = vmatprep.subr.bf16.mxu1 %v6410_v23  ;;  %v3350_v23 = vld [vmem:[#allocation52 + $0x5a8] sm:$0xff] }
0x1ab0   :  { %v6436_v26 = vcombine.high %v3338_v22, %v3350_v23 }
0x1ab2   :  { %5486 = vmatpush1.bf16.msra.mxu1 %v6409_v61 }
0x1ab3   :  { %5487 = vmatprep.subr.bf16.mxu1 %v6434_v63  ;;  %v3374_v63 = vld [vmem:[#allocation52 + $0x668] sm:$0xff] }
0x1ab4   :  { %v6460_v3 = vcombine.high %v3362_v62, %v3374_v63 }
0x1ab6   :  { %5488 = vmatpush1.bf16.msra.mxu1 %v6433_v1  ;;  %v6435_v1 = vcombine.low %v3338_v22, %v3350_v23  ;;  %v3171_v23 = vld [vmem:[#allocation52 + $0x10] sm:$0xff] }
0x1ab7   :  { %5489 = vmatprep.subr.bf16.mxu1 %v6458_v5  ;;  %v3398_v5 = vld [vmem:[#allocation52 + $0x728] sm:$0xff] }
0x1ab8   :  { %v6484_v8 = vcombine.high %v3386_v4, %v3398_v5  ;;  %v6483_v49 = vcombine.low %v3386_v4, %v3398_v5 }
0x1aba   :  { %5490 = vmatpush1.bf16.msra.mxu1 %v6457_v7  ;;  %v6459_v7 = vcombine.low %v3362_v62, %v3374_v63  ;;  %v3184_v63 = vld [vmem:[#allocation52 + $0x78] sm:$0xff] }
0x1abb   :  { %5491 = vmatprep.subr.bf16.mxu1 %v6482_v9  ;;  %v3409_v9 = vld [vmem:[#allocation52 + $0x780] sm:$0xff] }
0x1abe   :  { %5492 = vmatpush1.bf16.msra.mxu1 %v6481_v10  ;;  %v3421_v10 = vld [vmem:[#allocation52 + $0x7e0] sm:$0xff] }
0x1b6c   :  { %v3021_v11 = vpop.f32.mrb[40].mxu1 }
0x1b6d   :  { %v3026_v12 = vmul.f32 0.5, %v3021_v11  ;;  %v3023_v16 = vpop.f32.mrb[41].mxu1  ;;  %v3410_v11 = vld [vmem:[#allocation52 + $0x788] sm:$0xff] }
0x1b6e   :  { %v3027_v17 = vmul.f32 0.5, %v3023_v16  ;;  %v3422_v16 = vld [vmem:[#allocation52 + $0x7e8] sm:$0xff] }
0x1b6f   :  { %v3031_v18 = vrot.slane %v3026_v12, %v8905_v40  ;;  %v6506_v12 = vcombine.high %v3409_v9, %v3421_v10 }
0x1b70   :  { %v3035_v19 = vrot.slane %v3027_v17, %v8905_v40  ;;  %v6505_v17 = vcombine.low %v3409_v9, %v3421_v10 }
0x1b71   :  { %v9143_v20 = vsub.f32 %v9124_v13, %v3031_v18  ;;  %v6507_v18 = vcombine.low %v3410_v11, %v3422_v16  ;;  %5493 = vmatprep.subr.bf16.mxu1 %v6506_v12  ;;  %v3148_v12 = vsub.s32 1, %v8902_v39 }
0x1b72   :  { %v9146_v21 = vsub.f32 %v9126_v14, %v3035_v19  ;;  %v6508_v19 = vcombine.high %v3410_v11, %v3422_v16  ;;  %5494 = vmatpush1.bf16.msra.mxu1 %v6505_v17  ;;  %v2735_v11 = vld [vmem:[#allocation48] sm:$0x3]  ;;  %v2736_v17 = vld [vmem:[#allocation49] sm:$0x3] }
0x1b73   :  { %v3038_v24 = vmul.f32 %v9143_v20, %v9143_v20 }
0x1b74   :  { %v3039_v25 = vmul.f32 %v9146_v21, %v9146_v21 }
0x1b75   :  { %v3040_v27 = vsel %vm636_vm1, %v3038_v24, 0.0  ;;  %v3433_v24 = vld [vmem:[#allocation52 + $0x840] sm:$0xff] }
0x1b76   :  { %v3041_v28 = vrot.slane %v3040_v27, 4  ;;  %v3047_v29 = vsel %vm636_vm1, %v3039_v25, 0.0  ;;  %v3445_v25 = vld [vmem:[#allocation52 + $0x8a0] sm:$0xff] }
0x1b77   :  { %v3048_v30 = vrot.slane %v3047_v29, 4 }
0x1b78   :  { %v3042_v31 = vadd.f32 %v3041_v28, %v3040_v27  ;;  %v3434_v27 = vld [vmem:[#allocation52 + $0x848] sm:$0xff]  ;;  %v6530_v28 = vcombine.high %v3433_v24, %v3445_v25 }
0x1b79   :  { %v3049_v32 = vadd.f32 %v3048_v30, %v3047_v29  ;;  %v3446_v29 = vld [vmem:[#allocation52 + $0x8a8] sm:$0xff]  ;;  %v6529_v30 = vcombine.low %v3433_v24, %v3445_v25  ;;  %v3145_v24 = vrot.slane %v2735_v11, %v8905_v40 }
0x1b7a   :  { %v3043_v33 = vrot.slane %v3042_v31, 2  ;;  %5495 = vmatprep.subr.bf16.mxu1 %v6530_v28 }
0x1b7b   :  { %v3050_v13 = vrot.slane %v3049_v32, 2  ;;  %5496 = vmatpush1.bf16.msra.mxu1 %v6529_v30 }
0x1b7c   :  { %v3044_v34 = vadd.f32 %v3043_v33, %v3042_v31  ;;  %v6531_v31 = vcombine.low %v3434_v27, %v3446_v29  ;;  %v3457_v33 = vld [vmem:[#allocation52 + $0x900] sm:$0xff] }
0x1b7d   :  { %v3051_v2 = vadd.f32 %v3050_v13, %v3049_v32  ;;  %v6532_v32 = vcombine.high %v3434_v27, %v3446_v29  ;;  %v3469_v13 = vld [vmem:[#allocation52 + $0x960] sm:$0xff]  ;;  %v3149_v27 = vrot.slane %v2735_v11, %v3148_v12  ;;  %v3158_v29 = vrot.slane %v2736_v17, %v8905_v40 }
0x1b7e   :  { %v3045_v14 = vrot.slane %v3044_v34, 1 }
0x1b7f   :  { %v3052_v35 = vrot.slane %v3051_v2, 1 }
0x1b80   :  { %v3046_v42 = vadd.f32 %v3045_v14, %v3044_v34  ;;  %v3458_v34 = vld [vmem:[#allocation52 + $0x908] sm:$0xff] }
0x1b81   :  { %v3053_v41 = vadd.f32 %v3052_v35, %v3051_v2  ;;  %v6554_v2 = vcombine.high %v3457_v33, %v3469_v13  ;;  %v3470_v14 = vld [vmem:[#allocation52 + $0x968] sm:$0xff]  ;;  %v6553_v35 = vcombine.low %v3457_v33, %v3469_v13 }
0x1b82   :  { %v6555_v37 = vcombine.low %v3458_v34, %v3470_v14  ;;  %v6556_v38 = vcombine.high %v3458_v34, %v3470_v14  ;;  %v3207_v14 = vld [vmem:[#allocation52 + $0x130] sm:$0xff] }
0x1b83   :  { %3118 = vmatprep.mubr.f32.mxu0 %v3053_v41  ;;  %5497 = vmatprep.subr.bf16.mxu1 %v6554_v2  ;;  %v3481_v41 = vld [vmem:[#allocation52 + $0x9c0] sm:$0xff]  ;;  %v3195_v2 = vld [vmem:[#allocation52 + $0xd0] sm:$0xff] }
0x1b84   :  { %3119 = vmatmul.mubr.f32.vlgmr.msra.gmra.mrb[32].mxu0 %v3046_v42  ;;  %5498 = vmatpush1.bf16.msra.mxu1 %v6553_v35  ;;  %v3493_v42 = vld [vmem:[#allocation52 + $0xa20] sm:$0xff]  ;;  %v3196_v35 = vld [vmem:[#allocation52 + $0xd8] sm:$0xff] }
0x1b85   :  { %5515 = vmatpush1.bf16.msra.mxu0 %v6267_v0  ;;  %v3314_v0 = vld [vmem:[#allocation52 + $0x488] sm:$0xff]  ;;  %v6578_v44 = vcombine.high %v3481_v41, %v3493_v42 }
0x1b86   :  { %5516 = vmatprep.subr.bf16.mxu0 %v6292_v43  ;;  %v6412_v60 = vcombine.high %v3314_v0, %v3326_v58  ;;  %v6411_v61 = vcombine.low %v3314_v0, %v3326_v58  ;;  %v3482_v43 = vld [vmem:[#allocation52 + $0x9c8] sm:$0xff] }
0x1b87   :  { %v6580_v48 = vcombine.high %v3482_v43, %v3494_v45  ;;  %5499 = vmatprep.subr.bf16.mxu1 %v6578_v44  ;;  %v3542_v58 = vld [vmem:[#allocation52 + $0xba8] sm:$0xff]  ;;  %v3232_v44 = vld [vmem:[#allocation52 + $0x1f8] sm:$0xff] }
0x1b89   :  { %5517 = vmatpush1.bf16.msra.mxu0 %v6291_v46  ;;  %v6577_v46 = vcombine.low %v3481_v41, %v3493_v42  ;;  %v3219_v42 = vld [vmem:[#allocation52 + $0x190] sm:$0xff] }
0x1b8a   :  { %5518 = vmatprep.subr.bf16.mxu0 %v6316_v47  ;;  %v6579_v47 = vcombine.low %v3482_v43, %v3494_v45  ;;  %v3220_v43 = vld [vmem:[#allocation52 + $0x198] sm:$0xff]  ;;  %v6293_v45 = vcombine.low %v3195_v2, %v3207_v14 }
0x1b8b   :  { %5500 = vmatpush1.bf16.msra.mxu1 %v6577_v46 }
0x1b8d   :  { %5519 = vmatpush1.bf16.msra.mxu0 %v6315_v51  ;;  %v3517_v51 = vld [vmem:[#allocation52 + $0xae0] sm:$0xff] }
0x1b8e   :  { %5520 = vmatprep.subr.bf16.mxu0 %v6340_v15  ;;  %v3506_v15 = vld [vmem:[#allocation52 + $0xa88] sm:$0xff]  ;;  %v6602_v52 = vcombine.high %v3505_v50, %v3517_v51 }
0x1b8f   :  { %v6604_v56 = vcombine.high %v3506_v15, %v3518_v53 }
0x1b90   :  { %5501 = vmatprep.subr.bf16.mxu1 %v6602_v52  ;;  %v3256_v52 = vld [vmem:[#allocation52 + $0x2b8] sm:$0xff] }
0x1b91   :  { %5521 = vmatpush1.bf16.msra.mxu0 %v6339_v54  ;;  %v6601_v54 = vcombine.low %v3505_v50, %v3517_v51  ;;  %v3243_v50 = vld [vmem:[#allocation52 + $0x250] sm:$0xff] }
0x1b92   :  { %5522 = vmatprep.subr.bf16.mxu0 %v6364_v55  ;;  %v6603_v55 = vcombine.low %v3506_v15, %v3518_v53  ;;  %v3255_v51 = vld [vmem:[#allocation52 + $0x2b0] sm:$0xff]  ;;  %v3244_v15 = vld [vmem:[#allocation52 + $0x258] sm:$0xff] }
0x1b93   :  { %5502 = vmatpush1.bf16.msra.mxu1 %v6601_v54  ;;  %v6319_v54 = vcombine.low %v3220_v43, %v3232_v44 }
0x1b95   :  { %5523 = vmatpush1.bf16.msra.mxu0 %v6363_v36  ;;  %v3541_v36 = vld [vmem:[#allocation52 + $0xba0] sm:$0xff] }
0x1b96   :  { %5524 = vmatprep.subr.bf16.mxu0 %v6388_v6  ;;  %v3530_v6 = vld [vmem:[#allocation52 + $0xb48] sm:$0xff]  ;;  %v6626_v0 = vcombine.high %v3529_v57, %v3541_v36 }
0x1b97   :  { %v6628_v22 = vcombine.high %v3530_v6, %v3542_v58 }
0x1b98   :  { %5503 = vmatprep.subr.bf16.mxu1 %v6626_v0  ;;  %v3280_v0 = vld [vmem:[#allocation52 + $0x378] sm:$0xff] }
0x1b99   :  { %5525 = vmatpush1.bf16.msra.mxu0 %v6387_v59  ;;  %v6625_v59 = vcombine.low %v3529_v57, %v3541_v36  ;;  %v3267_v57 = vld [vmem:[#allocation52 + $0x310] sm:$0xff] }
0x1b9a   :  { %5526 = vmatprep.subr.bf16.mxu0 %v6412_v60  ;;  %v6627_v60 = vcombine.low %v3530_v6, %v3542_v58  ;;  %v3279_v36 = vld [vmem:[#allocation52 + $0x370] sm:$0xff]  ;;  %v3268_v6 = vld [vmem:[#allocation52 + $0x318] sm:$0xff]  ;;  %v6341_v58 = vcombine.low %v3243_v50, %v3255_v51 }
0x1b9b   :  { %5504 = vmatpush1.bf16.msra.mxu1 %v6625_v59  ;;  %v6343_v59 = vcombine.low %v3244_v15, %v3256_v52 }
0x1b9d   :  { %5527 = vmatpush1.bf16.msra.mxu0 %v6411_v61  ;;  %v3183_v61 = vld [vmem:[#allocation52 + $0x70] sm:$0xff] }
0x1b9e   :  { %5528 = vmatprep.subr.bf16.mxu0 %v6436_v26  ;;  %v3172_v26 = vld [vmem:[#allocation52 + $0x18] sm:$0xff]  ;;  %v6270_v62 = vcombine.high %v3171_v23, %v3183_v61 }
0x1b9f   :  { %v6272_v4 = vcombine.high %v3172_v26, %v3184_v63 }
0x1ba0   :  { %5555 = vmatprep.subr.bf16.mxu1 %v6270_v62  ;;  %v3304_v62 = vld [vmem:[#allocation52 + $0x438] sm:$0xff] }
0x1ba1   :  { %5529 = vmatpush1.bf16.msra.mxu0 %v6435_v1  ;;  %v6269_v1 = vcombine.low %v3171_v23, %v3183_v61  ;;  %v3291_v23 = vld [vmem:[#allocation52 + $0x3d0] sm:$0xff] }
0x1ba2   :  { %5530 = vmatprep.subr.bf16.mxu0 %v6460_v3  ;;  %v6271_v3 = vcombine.low %v3172_v26, %v3184_v63  ;;  %v3303_v61 = vld [vmem:[#allocation52 + $0x430] sm:$0xff]  ;;  %v3292_v26 = vld [vmem:[#allocation52 + $0x3d8] sm:$0xff]  ;;  %v6365_v63 = vcombine.low %v3267_v57, %v3279_v36 }
0x1ba5   :  { %5531 = vmatpush1.bf16.msra.mxu0 %v6459_v7 }
0x1ba6   :  { %5532 = vmatprep.subr.bf16.mxu0 %v6484_v8 }
0x1ba9   :  { %5533 = vmatpush1.bf16.msra.mxu0 %v6483_v49 }
0x1baa   :  { %5534 = vmatprep.subr.bf16.mxu0 %v6508_v19 }
0x1bad   :  { %5535 = vmatpush1.bf16.msra.mxu0 %v6507_v18 }
0x1bae   :  { %5536 = vmatprep.subr.bf16.mxu0 %v6532_v32 }
0x1bb1   :  { %5537 = vmatpush1.bf16.msra.mxu0 %v6531_v31  ;;  %v3162_v31 = vrot.slane %v2736_v17, %v3148_v12  ;;  %v3351_v17 = vld [vmem:[#allocation52 + $0x5b0] sm:$0xff] }
0x1bb2   :  { %5538 = vmatprep.subr.bf16.mxu0 %v6556_v38 }
0x1bb5   :  { %5539 = vmatpush1.bf16.msra.mxu0 %v6555_v37  ;;  %v3208_v37 = vld [vmem:[#allocation52 + $0x138] sm:$0xff] }
0x1bb6   :  { %5540 = vmatprep.subr.bf16.mxu0 %v6580_v48  ;;  %v6295_v46 = vcombine.low %v3196_v35, %v3208_v37  ;;  %v6320_v48 = vcombine.high %v3220_v43, %v3232_v44  ;;  %v3411_v44 = vld [vmem:[#allocation52 + $0x790] sm:$0xff] }
0x1bb9   :  { %5541 = vmatpush1.bf16.msra.mxu0 %v6579_v47 }
0x1bba   :  { %5542 = vmatprep.subr.bf16.mxu0 %v6604_v56  ;;  %v6344_v56 = vcombine.high %v3244_v15, %v3256_v52  ;;  %v3435_v52 = vld [vmem:[#allocation52 + $0x850] sm:$0xff] }
0x1bbd   :  { %5543 = vmatpush1.bf16.msra.mxu0 %v6603_v55  ;;  %v6342_v55 = vcombine.high %v3243_v50, %v3255_v51 }
0x1bbe   :  { %5544 = vmatprep.subr.bf16.mxu0 %v6628_v22  ;;  %v6368_v22 = vcombine.high %v3268_v6, %v3280_v0 }
0x1bc1   :  { %5545 = vmatpush1.bf16.msra.mxu0 %v6627_v60  ;;  %v6366_v60 = vcombine.high %v3267_v57, %v3279_v36 }
0x1bc2   :  { %5596 = vmatprep.subr.bf16.mxu0 %v6272_v4  ;;  %v6392_v4 = vcombine.high %v3292_v26, %v3304_v62 }
0x1c57   :  { %v3120_v5 = vpop.f32.mrb[32].mxu0 }
0x1c58   :  { %v3125_v7 = vmul.f32 0.5, %v3120_v5  ;;  %v3122_v8 = vpop.f32.mrb[33].mxu0  ;;  %v3315_v5 = vld [vmem:[#allocation52 + $0x490] sm:$0xff] }
0x1c59   :  { %v3126_v49 = vmul.f32 0.5, %v3122_v8  ;;  %v3316_v8 = vld [vmem:[#allocation52 + $0x498] sm:$0xff] }
0x1c5a   :  { %v3127_v9 = vadd.f32 1e-05, %v3125_v7  ;;  %v3327_v7 = vld [vmem:[#allocation52 + $0x4f0] sm:$0xff] }
0x1c5b   :  { %v3128_v10 = vadd.f32 1e-05, %v3126_v49  ;;  %v3328_v49 = vld [vmem:[#allocation52 + $0x4f8] sm:$0xff]  ;;  %v6414_v11 = vcombine.high %v3315_v5, %v3327_v7 }
0x1c5c   :  { %7544 = vrsqrt.f32 %v3127_v9  ;;  %v6389_v9 = vcombine.low %v3291_v23, %v3303_v61  ;;  %v6416_v12 = vcombine.high %v3316_v8, %v3328_v49 }
0x1c5d   :  { %7546 = vrsqrt.f32 %v3128_v10  ;;  %v6391_v10 = vcombine.low %v3292_v26, %v3304_v62  ;;  %v3483_v62 = vld [vmem:[#allocation52 + $0x9d0] sm:$0xff] }
0x1c66   :  { %v7545_v16 = vpop.eup %7544 }
0x1c67   :  { %v7547_v18 = vpop.eup %7546  ;;  %v3134_v19 = vrot.slane %v7545_v16, %v8905_v40  ;;  %v3339_v16 = vld [vmem:[#allocation52 + $0x550] sm:$0xff] }
0x1c68   :  { %v3138_v25 = vrot.slane %v7547_v18, %v8905_v40  ;;  %v6294_v40 = vcombine.high %v3195_v2, %v3207_v14  ;;  %v3340_v18 = vld [vmem:[#allocation52 + $0x558] sm:$0xff]  ;;  %v3387_v14 = vld [vmem:[#allocation52 + $0x6d0] sm:$0xff] }
0x1c69   :  { %v3139_v28 = vmul.f32 %v3134_v19, %v9143_v20  ;;  %v6296_v20 = vcombine.high %v3196_v35, %v3208_v37  ;;  %v3352_v19 = vld [vmem:[#allocation52 + $0x5b8] sm:$0xff]  ;;  %v3399_v35 = vld [vmem:[#allocation52 + $0x730] sm:$0xff] }
0x1c6a   :  { %v3140_v30 = vmul.f32 %v3138_v25, %v9146_v21  ;;  %v3231_v21 = vld [vmem:[#allocation52 + $0x1f0] sm:$0xff]  ;;  %v6415_v25 = vcombine.low %v3316_v8, %v3328_v49  ;;  %v3388_v37 = vld [vmem:[#allocation52 + $0x6d8] sm:$0xff] }
0x1c6b   :  { %v3152_v32 = vmul.f32 %v3145_v24, %v3139_v28  ;;  %v6318_v47 = vcombine.high %v3219_v42, %v3231_v21  ;;  %v6317_v53 = vcombine.low %v3219_v42, %v3231_v21  ;;  %v6413_v24 = vcombine.low %v3315_v5, %v3327_v7  ;;  %v3400_v42 = vld [vmem:[#allocation52 + $0x738] sm:$0xff]  ;;  %v3507_v49 = vld [vmem:[#allocation52 + $0xa90] sm:$0xff] }
0x1c6c   :  { %v3153_v33 = vmul.f32 %v3149_v27, %v3140_v30  ;;  %v6438_v27 = vcombine.high %v3339_v16, %v3351_v17  ;;  %v6440_v28 = vcombine.high %v3340_v18, %v3352_v19  ;;  %v3375_v30 = vld [vmem:[#allocation52 + $0x670] sm:$0xff]  ;;  %v6486_v21 = vcombine.high %v3387_v14, %v3399_v35 }
0x1c6d   :  { %v3165_v13 = vadd.f32 %v3158_v29, %v3152_v32  ;;  %v3363_v29 = vld [vmem:[#allocation52 + $0x610] sm:$0xff]  ;;  %v3376_v32 = vld [vmem:[#allocation52 + $0x678] sm:$0xff]  ;;  %v6488_v43 = vcombine.high %v3388_v37, %v3400_v42  ;;  %v6487_v50 = vcombine.low %v3388_v37, %v3400_v42  ;;  %v3197_v42 = vld [vmem:[#allocation52 + $0xe0] sm:$0xff] }
0x1c6e   :  { %v3166_v34 = vadd.f32 %v3162_v31, %v3153_v33  ;;  %v3364_v31 = vld [vmem:[#allocation52 + $0x618] sm:$0xff]  ;;  %v6437_v33 = vcombine.low %v3339_v16, %v3351_v17 }
0x1c6f   :  { %v9166_v41 = vpack.c.bf16 %v3165_v13, %v3165_v13  ;;  %v6439_v13 = vcombine.low %v3340_v18, %v3352_v19  ;;  %v6464_v2 = vcombine.high %v3364_v31, %v3376_v32  ;;  %v3531_v19 = vld [vmem:[#allocation52 + $0xb50] sm:$0xff] }
0x1c70   :  { %v9164_v38 = vpack.c.bf16 %v3166_v34, %v3166_v34  ;;  %v6462_v34 = vcombine.high %v3363_v29, %v3375_v30 }
0x1c72   :  { %5505 = vmatprep.mubr.bf16.mxu1 %v9164_v38  ;;  %5546 = vmatprep.mubr.bf16.mxu0 %v9164_v38 }
0x1c73   :  { %5506 = vmatmul.mubr.bf16.vlgmr.msra.gmra.mrb[44].mxu1 %v9166_v41  ;;  %5547 = vmatmul.mubr.bf16.vlgmr.msra.gmra.mrb[36].mxu0 %v9166_v41 }
0x1c74   :  { %5556 = vmatpush1.bf16.msra.mxu1 %v6269_v1  ;;  %5597 = vmatpush1.bf16.msra.mxu0 %v6271_v3  ;;  %v6367_v1 = vcombine.low %v3268_v6, %v3280_v0  ;;  %v6390_v3 = vcombine.high %v3291_v23, %v3303_v61  ;;  %v3459_v0 = vld [vmem:[#allocation52 + $0x910] sm:$0xff] }
0x1c75   :  { %5587 = vmatprep.mubr.bf16.mxu1 %v9164_v38  ;;  %5628 = vmatprep.mubr.bf16.mxu0 %v9164_v38 }
0x1c76   :  { %5557 = vmatprep.subr.bf16.mxu1 %v6294_v40  ;;  %5598 = vmatprep.subr.bf16.mxu0 %v6296_v20  ;;  %v6461_v40 = vcombine.low %v3363_v29, %v3375_v30  ;;  %v6463_v20 = vcombine.low %v3364_v31, %v3376_v32  ;;  %v3173_v32 = vld [vmem:[#allocation52 + $0x20] sm:$0xff] }
0x1c78   :  { %5558 = vmatpush1.bf16.msra.mxu1 %v6293_v45  ;;  %5599 = vmatpush1.bf16.msra.mxu0 %v6295_v46  ;;  %v3423_v45 = vld [vmem:[#allocation52 + $0x7f0] sm:$0xff]  ;;  %v3412_v46 = vld [vmem:[#allocation52 + $0x798] sm:$0xff] }
0x1c79   :  { %5559 = vmatprep.subr.bf16.mxu1 %v6318_v47  ;;  %5600 = vmatprep.subr.bf16.mxu0 %v6320_v48  ;;  %v3424_v47 = vld [vmem:[#allocation52 + $0x7f8] sm:$0xff]  ;;  %v6485_v48 = vcombine.low %v3387_v14, %v3399_v35  ;;  %v6510_v51 = vcombine.high %v3411_v44, %v3423_v45 }
0x1c7a   :  { %v6512_v15 = vcombine.high %v3412_v46, %v3424_v47  ;;  %v6511_v57 = vcombine.low %v3412_v46, %v3424_v47  ;;  %v3221_v47 = vld [vmem:[#allocation52 + $0x1a0] sm:$0xff] }
0x1c7c   :  { %5560 = vmatpush1.bf16.msra.mxu1 %v6317_v53  ;;  %5601 = vmatpush1.bf16.msra.mxu0 %v6319_v54  ;;  %v3447_v53 = vld [vmem:[#allocation52 + $0x8b0] sm:$0xff]  ;;  %v3436_v54 = vld [vmem:[#allocation52 + $0x858] sm:$0xff] }
0x1c7d   :  { %5561 = vmatprep.subr.bf16.mxu1 %v6342_v55  ;;  %5602 = vmatprep.subr.bf16.mxu0 %v6344_v56  ;;  %v3448_v55 = vld [vmem:[#allocation52 + $0x8b8] sm:$0xff]  ;;  %v6509_v56 = vcombine.low %v3411_v44, %v3423_v45  ;;  %v6534_v36 = vcombine.high %v3435_v52, %v3447_v53 }
0x1c7e   :  { %v6536_v6 = vcombine.high %v3436_v54, %v3448_v55  ;;  %v6535_v23 = vcombine.low %v3436_v54, %v3448_v55  ;;  %v3245_v55 = vld [vmem:[#allocation52 + $0x260] sm:$0xff] }
0x1c80   :  { %5562 = vmatpush1.bf16.msra.mxu1 %v6341_v58  ;;  %5603 = vmatpush1.bf16.msra.mxu0 %v6343_v59  ;;  %v3471_v58 = vld [vmem:[#allocation52 + $0x970] sm:$0xff]  ;;  %v3460_v59 = vld [vmem:[#allocation52 + $0x918] sm:$0xff] }
0x1c81   :  { %5563 = vmatprep.subr.bf16.mxu1 %v6366_v60  ;;  %5604 = vmatprep.subr.bf16.mxu0 %v6368_v22  ;;  %v3472_v60 = vld [vmem:[#allocation52 + $0x978] sm:$0xff]  ;;  %v6533_v22 = vcombine.low %v3435_v52, %v3447_v53  ;;  %v6558_v61 = vcombine.high %v3459_v0, %v3471_v58 }
0x1c82   :  { %v6560_v26 = vcombine.high %v3460_v59, %v3472_v60  ;;  %v6559_v5 = vcombine.low %v3460_v59, %v3472_v60  ;;  %v3269_v60 = vld [vmem:[#allocation52 + $0x320] sm:$0xff] }
0x1c84   :  { %5564 = vmatpush1.bf16.msra.mxu1 %v6365_v63  ;;  %5605 = vmatpush1.bf16.msra.mxu0 %v6367_v1  ;;  %v3495_v63 = vld [vmem:[#allocation52 + $0xa30] sm:$0xff]  ;;  %v3484_v1 = vld [vmem:[#allocation52 + $0x9d8] sm:$0xff] }
0x1c85   :  { %5565 = vmatprep.subr.bf16.mxu1 %v6390_v3  ;;  %5606 = vmatprep.subr.bf16.mxu0 %v6392_v4  ;;  %v3496_v3 = vld [vmem:[#allocation52 + $0xa38] sm:$0xff]  ;;  %v6557_v4 = vcombine.low %v3459_v0, %v3471_v58  ;;  %v6582_v7 = vcombine.high %v3483_v62, %v3495_v63 }
0x1c86   :  { %v6584_v8 = vcombine.high %v3484_v1, %v3496_v3  ;;  %v6583_v16 = vcombine.low %v3484_v1, %v3496_v3  ;;  %v3293_v3 = vld [vmem:[#allocation52 + $0x3e0] sm:$0xff] }
0x1c88   :  { %5566 = vmatpush1.bf16.msra.mxu1 %v6389_v9  ;;  %5607 = vmatpush1.bf16.msra.mxu0 %v6391_v10  ;;  %v3519_v9 = vld [vmem:[#allocation52 + $0xaf0] sm:$0xff]  ;;  %v3508_v10 = vld [vmem:[#allocation52 + $0xa98] sm:$0xff] }
0x1c89   :  { %5567 = vmatprep.subr.bf16.mxu1 %v6414_v11  ;;  %5608 = vmatprep.subr.bf16.mxu0 %v6416_v12  ;;  %v3520_v11 = vld [vmem:[#allocation52 + $0xaf8] sm:$0xff]  ;;  %v6581_v12 = vcombine.low %v3483_v62, %v3495_v63  ;;  %v6606_v17 = vcombine.high %v3507_v49, %v3519_v9 }
0x1c8a   :  { %v6608_v18 = vcombine.high %v3508_v10, %v3520_v11  ;;  %v6607_v29 = vcombine.low %v3508_v10, %v3520_v11  ;;  %v3317_v11 = vld [vmem:[#allocation52 + $0x4a0] sm:$0xff] }
0x1c8c   :  { %5568 = vmatpush1.bf16.msra.mxu1 %v6413_v24  ;;  %5609 = vmatpush1.bf16.msra.mxu0 %v6415_v25  ;;  %v3543_v24 = vld [vmem:[#allocation52 + $0xbb0] sm:$0xff]  ;;  %v3532_v25 = vld [vmem:[#allocation52 + $0xb58] sm:$0xff] }
0x1c8d   :  { %5569 = vmatprep.subr.bf16.mxu1 %v6438_v27  ;;  %5610 = vmatprep.subr.bf16.mxu0 %v6440_v28  ;;  %v3544_v27 = vld [vmem:[#allocation52 + $0xbb8] sm:$0xff]  ;;  %v6605_v28 = vcombine.low %v3507_v49, %v3519_v9  ;;  %v6630_v30 = vcombine.high %v3531_v19, %v3543_v24 }
0x1c8e   :  { %v6632_v31 = vcombine.high %v3532_v25, %v3544_v27  ;;  %v6631_v14 = vcombine.low %v3532_v25, %v3544_v27  ;;  %v3341_v27 = vld [vmem:[#allocation52 + $0x560] sm:$0xff] }
0x1c90   :  { %5570 = vmatpush1.bf16.msra.mxu1 %v6437_v33  ;;  %5611 = vmatpush1.bf16.msra.mxu0 %v6439_v13  ;;  %v3185_v33 = vld [vmem:[#allocation52 + $0x80] sm:$0xff]  ;;  %v3174_v13 = vld [vmem:[#allocation52 + $0x28] sm:$0xff] }
0x1c91   :  { %5571 = vmatprep.subr.bf16.mxu1 %v6462_v34  ;;  %5612 = vmatprep.subr.bf16.mxu0 %v6464_v2  ;;  %v3186_v34 = vld [vmem:[#allocation52 + $0x88] sm:$0xff]  ;;  %v6629_v2 = vcombine.low %v3531_v19, %v3543_v24  ;;  %v6274_v35 = vcombine.high %v3173_v32, %v3185_v33 }
0x1c92   :  { %v6276_v37 = vcombine.high %v3174_v13, %v3186_v34  ;;  %v6275_v44 = vcombine.low %v3174_v13, %v3186_v34  ;;  %v3365_v34 = vld [vmem:[#allocation52 + $0x620] sm:$0xff] }
0x1c94   :  { %5572 = vmatpush1.bf16.msra.mxu1 %v6461_v40  ;;  %5613 = vmatpush1.bf16.msra.mxu0 %v6463_v20  ;;  %v3209_v40 = vld [vmem:[#allocation52 + $0x140] sm:$0xff]  ;;  %v3198_v20 = vld [vmem:[#allocation52 + $0xe8] sm:$0xff] }
0x1c95   :  { %5573 = vmatprep.subr.bf16.mxu1 %v6486_v21  ;;  %5614 = vmatprep.subr.bf16.mxu0 %v6488_v43  ;;  %v3210_v21 = vld [vmem:[#allocation52 + $0x148] sm:$0xff]  ;;  %v6273_v43 = vcombine.low %v3173_v32, %v3185_v33  ;;  %v6298_v45 = vcombine.high %v3197_v42, %v3209_v40 }
0x1c96   :  { %v6300_v46 = vcombine.high %v3198_v20, %v3210_v21  ;;  %v6299_v52 = vcombine.low %v3198_v20, %v3210_v21  ;;  %v3389_v21 = vld [vmem:[#allocation52 + $0x6e0] sm:$0xff] }
0x1c98   :  { %5574 = vmatpush1.bf16.msra.mxu1 %v6485_v48  ;;  %5615 = vmatpush1.bf16.msra.mxu0 %v6487_v50  ;;  %v3233_v48 = vld [vmem:[#allocation52 + $0x200] sm:$0xff]  ;;  %v3222_v50 = vld [vmem:[#allocation52 + $0x1a8] sm:$0xff] }
0x1c99   :  { %5575 = vmatprep.subr.bf16.mxu1 %v6510_v51  ;;  %5616 = vmatprep.subr.bf16.mxu0 %v6512_v15  ;;  %v3234_v51 = vld [vmem:[#allocation52 + $0x208] sm:$0xff]  ;;  %v6297_v15 = vcombine.low %v3197_v42, %v3209_v40  ;;  %v6322_v53 = vcombine.high %v3221_v47, %v3233_v48 }
0x1c9a   :  { %v6324_v54 = vcombine.high %v3222_v50, %v3234_v51  ;;  %v6323_v0 = vcombine.low %v3222_v50, %v3234_v51  ;;  %v3413_v51 = vld [vmem:[#allocation52 + $0x7a0] sm:$0xff] }
0x1c9c   :  { %5576 = vmatpush1.bf16.msra.mxu1 %v6509_v56  ;;  %5617 = vmatpush1.bf16.msra.mxu0 %v6511_v57  ;;  %v3257_v56 = vld [vmem:[#allocation52 + $0x2c0] sm:$0xff]  ;;  %v3246_v57 = vld [vmem:[#allocation52 + $0x268] sm:$0xff] }
0x1c9d   :  { %5577 = vmatprep.subr.bf16.mxu1 %v6534_v36  ;;  %5618 = vmatprep.subr.bf16.mxu0 %v6536_v6  ;;  %v3258_v36 = vld [vmem:[#allocation52 + $0x2c8] sm:$0xff]  ;;  %v6321_v6 = vcombine.low %v3221_v47, %v3233_v48  ;;  %v6346_v58 = vcombine.high %v3245_v55, %v3257_v56 }
0x1c9e   :  { %v6348_v59 = vcombine.high %v3246_v57, %v3258_v36  ;;  %v6347_v62 = vcombine.low %v3246_v57, %v3258_v36  ;;  %v3437_v36 = vld [vmem:[#allocation52 + $0x860] sm:$0xff] }
0x1ca0   :  { %5578 = vmatpush1.bf16.msra.mxu1 %v6533_v22  ;;  %5619 = vmatpush1.bf16.msra.mxu0 %v6535_v23  ;;  %v3281_v22 = vld [vmem:[#allocation52 + $0x380] sm:$0xff]  ;;  %v3270_v23 = vld [vmem:[#allocation52 + $0x328] sm:$0xff] }
0x1ca1   :  { %5579 = vmatprep.subr.bf16.mxu1 %v6558_v61  ;;  %5620 = vmatprep.subr.bf16.mxu0 %v6560_v26  ;;  %v3282_v61 = vld [vmem:[#allocation52 + $0x388] sm:$0xff]  ;;  %v6345_v26 = vcombine.low %v3245_v55, %v3257_v56  ;;  %v6370_v63 = vcombine.high %v3269_v60, %v3281_v22 }
0x1ca2   :  { %v6372_v1 = vcombine.high %v3270_v23, %v3282_v61  ;;  %v6371_v49 = vcombine.low %v3270_v23, %v3282_v61  ;;  %v3461_v61 = vld [vmem:[#allocation52 + $0x920] sm:$0xff] }
0x1ca4   :  { %5580 = vmatpush1.bf16.msra.mxu1 %v6557_v4  ;;  %5621 = vmatpush1.bf16.msra.mxu0 %v6559_v5  ;;  %v3305_v4 = vld [vmem:[#allocation52 + $0x440] sm:$0xff]  ;;  %v3294_v5 = vld [vmem:[#allocation52 + $0x3e8] sm:$0xff] }
0x1ca5   :  { %5581 = vmatprep.subr.bf16.mxu1 %v6582_v7  ;;  %5622 = vmatprep.subr.bf16.mxu0 %v6584_v8  ;;  %v3306_v7 = vld [vmem:[#allocation52 + $0x448] sm:$0xff]  ;;  %v6369_v8 = vcombine.low %v3269_v60, %v3281_v22  ;;  %v6394_v9 = vcombine.high %v3293_v3, %v3305_v4 }
0x1ca6   :  { %v6396_v10 = vcombine.high %v3294_v5, %v3306_v7  ;;  %v6395_v19 = vcombine.low %v3294_v5, %v3306_v7  ;;  %v3485_v7 = vld [vmem:[#allocation52 + $0x9e0] sm:$0xff] }
0x1ca8   :  { %5582 = vmatpush1.bf16.msra.mxu1 %v6581_v12  ;;  %5623 = vmatpush1.bf16.msra.mxu0 %v6583_v16  ;;  %v3329_v12 = vld [vmem:[#allocation52 + $0x500] sm:$0xff]  ;;  %v3318_v16 = vld [vmem:[#allocation52 + $0x4a8] sm:$0xff] }
0x1ca9   :  { %5583 = vmatprep.subr.bf16.mxu1 %v6606_v17  ;;  %5624 = vmatprep.subr.bf16.mxu0 %v6608_v18  ;;  %v3330_v17 = vld [vmem:[#allocation52 + $0x508] sm:$0xff]  ;;  %v6393_v18 = vcombine.low %v3293_v3, %v3305_v4  ;;  %v6418_v24 = vcombine.high %v3317_v11, %v3329_v12 }
0x1caa   :  { %v6420_v25 = vcombine.high %v3318_v16, %v3330_v17  ;;  %v6419_v32 = vcombine.low %v3318_v16, %v3330_v17  ;;  %v3509_v17 = vld [vmem:[#allocation52 + $0xaa0] sm:$0xff] }
0x1cac   :  { %5584 = vmatpush1.bf16.msra.mxu1 %v6605_v28  ;;  %5625 = vmatpush1.bf16.msra.mxu0 %v6607_v29  ;;  %v3353_v28 = vld [vmem:[#allocation52 + $0x5c0] sm:$0xff]  ;;  %v3342_v29 = vld [vmem:[#allocation52 + $0x568] sm:$0xff] }
0x1cad   :  { %5585 = vmatprep.subr.bf16.mxu1 %v6630_v30  ;;  %5626 = vmatprep.subr.bf16.mxu0 %v6632_v31  ;;  %v3354_v30 = vld [vmem:[#allocation52 + $0x5c8] sm:$0xff]  ;;  %v6417_v31 = vcombine.low %v3317_v11, %v3329_v12  ;;  %v6442_v33 = vcombine.high %v3341_v27, %v3353_v28 }
0x1cae   :  { %v6444_v13 = vcombine.high %v3342_v29, %v3354_v30  ;;  %v6443_v42 = vcombine.low %v3342_v29, %v3354_v30  ;;  %v3533_v30 = vld [vmem:[#allocation52 + $0xb60] sm:$0xff] }
0x1cb0   :  { %5586 = vmatpush1.bf16.msra.mxu1 %v6629_v2  ;;  %5627 = vmatpush1.bf16.msra.mxu0 %v6631_v14  ;;  %v3377_v2 = vld [vmem:[#allocation52 + $0x680] sm:$0xff]  ;;  %v3366_v14 = vld [vmem:[#allocation52 + $0x628] sm:$0xff] }
0x1cb1   :  { %5637 = vmatprep.subr.bf16.mxu1 %v6274_v35  ;;  %5678 = vmatprep.subr.bf16.mxu0 %v6276_v37  ;;  %v3378_v35 = vld [vmem:[#allocation52 + $0x688] sm:$0xff]  ;;  %v6441_v37 = vcombine.low %v3341_v27, %v3353_v28  ;;  %v6466_v40 = vcombine.high %v3365_v34, %v3377_v2 }
0x1cb2   :  { %v6468_v20 = vcombine.high %v3366_v14, %v3378_v35  ;;  %v6467_v47 = vcombine.low %v3366_v14, %v3378_v35  ;;  %v3175_v35 = vld [vmem:[#allocation52 + $0x30] sm:$0xff] }
0x1cb3   :  { %5588 = vmatmul.mubr.bf16.vlgmr.msra.gmra.mrb[48].mxu1 %v9166_v41  ;;  %5629 = vmatmul.mubr.bf16.vlgmr.msra.gmra.mrb[40].mxu0 %v9166_v41 }
0x1cb4   :  { %5638 = vmatpush1.bf16.msra.mxu1 %v6273_v43  ;;  %5669 = vmatprep.mubr.bf16.mxu1 %v9164_v38  ;;  %v3401_v43 = vld [vmem:[#allocation52 + $0x740] sm:$0xff] }
0x1cb5   :  { %5679 = vmatpush1.bf16.msra.mxu0 %v6275_v44  ;;  %5710 = vmatprep.mubr.bf16.mxu0 %v9164_v38  ;;  %v3390_v44 = vld [vmem:[#allocation52 + $0x6e8] sm:$0xff]  ;;  %v6490_v48 = vcombine.high %v3389_v21, %v3401_v43 }
0x1cb6   :  { %5639 = vmatprep.subr.bf16.mxu1 %v6298_v45  ;;  %5680 = vmatprep.subr.bf16.mxu0 %v6300_v46  ;;  %v3402_v45 = vld [vmem:[#allocation52 + $0x748] sm:$0xff]  ;;  %v6465_v46 = vcombine.low %v3365_v34, %v3377_v2 }
0x1cb7   :  { %v6492_v50 = vcombine.high %v3390_v44, %v3402_v45  ;;  %v6491_v55 = vcombine.low %v3390_v44, %v3402_v45  ;;  %v3199_v45 = vld [vmem:[#allocation52 + $0xf0] sm:$0xff] }
0x1cb8   :  { %5640 = vmatpush1.bf16.msra.mxu1 %v6297_v15  ;;  %v3425_v15 = vld [vmem:[#allocation52 + $0x800] sm:$0xff] }
0x1cb9   :  { %5681 = vmatpush1.bf16.msra.mxu0 %v6299_v52  ;;  %5641 = vmatprep.subr.bf16.mxu1 %v6322_v53  ;;  %v3414_v52 = vld [vmem:[#allocation52 + $0x7a8] sm:$0xff]  ;;  %v6514_v56 = vcombine.high %v3413_v51, %v3425_v15 }
0x1cba   :  { %5682 = vmatprep.subr.bf16.mxu0 %v6324_v54  ;;  %v3426_v53 = vld [vmem:[#allocation52 + $0x808] sm:$0xff]  ;;  %v6489_v54 = vcombine.low %v3389_v21, %v3401_v43 }
0x1cbb   :  { %v6516_v57 = vcombine.high %v3414_v52, %v3426_v53  ;;  %v6515_v60 = vcombine.low %v3414_v52, %v3426_v53  ;;  %v3223_v52 = vld [vmem:[#allocation52 + $0x1b0] sm:$0xff] }
0x1cbc   :  { %5642 = vmatpush1.bf16.msra.mxu1 %v6321_v6  ;;  %v3449_v6 = vld [vmem:[#allocation52 + $0x8c0] sm:$0xff]  ;;  %v3235_v53 = vld [vmem:[#allocation52 + $0x210] sm:$0xff] }
0x1cbd   :  { %5683 = vmatpush1.bf16.msra.mxu0 %v6323_v0  ;;  %5643 = vmatprep.subr.bf16.mxu1 %v6346_v58  ;;  %v3438_v0 = vld [vmem:[#allocation52 + $0x868] sm:$0xff]  ;;  %v6538_v22 = vcombine.high %v3437_v36, %v3449_v6 }
0x1cbe   :  { %5684 = vmatprep.subr.bf16.mxu0 %v6348_v59  ;;  %v3450_v58 = vld [vmem:[#allocation52 + $0x8c8] sm:$0xff]  ;;  %v6513_v59 = vcombine.low %v3413_v51, %v3425_v15 }
0x1cbf   :  { %v6540_v23 = vcombine.high %v3438_v0, %v3450_v58  ;;  %v6539_v3 = vcombine.low %v3438_v0, %v3450_v58  ;;  %v3247_v58 = vld [vmem:[#allocation52 + $0x270] sm:$0xff] }
0x1cc0   :  { %5644 = vmatpush1.bf16.msra.mxu1 %v6345_v26  ;;  %v3473_v26 = vld [vmem:[#allocation52 + $0x980] sm:$0xff] }
0x1cc1   :  { %5685 = vmatpush1.bf16.msra.mxu0 %v6347_v62  ;;  %5645 = vmatprep.subr.bf16.mxu1 %v6370_v63  ;;  %v3462_v62 = vld [vmem:[#allocation52 + $0x928] sm:$0xff]  ;;  %v6562_v4 = vcombine.high %v3461_v61, %v3473_v26 }
0x1cc2   :  { %5686 = vmatprep.subr.bf16.mxu0 %v6372_v1  ;;  %v3474_v63 = vld [vmem:[#allocation52 + $0x988] sm:$0xff]  ;;  %v6537_v1 = vcombine.low %v3437_v36, %v3449_v6  ;;  %v6326_v6 = vcombine.high %v3223_v52, %v3235_v53 }
0x1cc3   :  { %v6564_v5 = vcombine.high %v3462_v62, %v3474_v63  ;;  %v6563_v11 = vcombine.low %v3462_v62, %v3474_v63  ;;  %v3271_v63 = vld [vmem:[#allocation52 + $0x330] sm:$0xff] }
0x1cc4   :  { %5646 = vmatpush1.bf16.msra.mxu1 %v6369_v8  ;;  %v3497_v8 = vld [vmem:[#allocation52 + $0xa40] sm:$0xff] }
0x1cc5   :  { %5687 = vmatpush1.bf16.msra.mxu0 %v6371_v49  ;;  %5647 = vmatprep.subr.bf16.mxu1 %v6394_v9  ;;  %v3486_v49 = vld [vmem:[#allocation52 + $0x9e8] sm:$0xff]  ;;  %v6586_v12 = vcombine.high %v3485_v7, %v3497_v8 }
0x1cc6   :  { %5688 = vmatprep.subr.bf16.mxu0 %v6396_v10  ;;  %v3498_v9 = vld [vmem:[#allocation52 + $0xa48] sm:$0xff]  ;;  %v6561_v10 = vcombine.low %v3461_v61, %v3473_v26 }
0x1cc7   :  { %v6588_v16 = vcombine.high %v3486_v49, %v3498_v9  ;;  %v6587_v27 = vcombine.low %v3486_v49, %v3498_v9  ;;  %v3295_v9 = vld [vmem:[#allocation52 + $0x3f0] sm:$0xff] }
0x1cc8   :  { %5648 = vmatpush1.bf16.msra.mxu1 %v6393_v18  ;;  %v3521_v18 = vld [vmem:[#allocation52 + $0xb00] sm:$0xff] }
0x1cc9   :  { %5689 = vmatpush1.bf16.msra.mxu0 %v6395_v19  ;;  %5649 = vmatprep.subr.bf16.mxu1 %v6418_v24  ;;  %v3510_v19 = vld [vmem:[#allocation52 + $0xaa8] sm:$0xff]  ;;  %v6610_v28 = vcombine.high %v3509_v17, %v3521_v18 }
0x1cca   :  { %5690 = vmatprep.subr.bf16.mxu0 %v6420_v25  ;;  %v3522_v24 = vld [vmem:[#allocation52 + $0xb08] sm:$0xff]  ;;  %v6585_v25 = vcombine.low %v3485_v7, %v3497_v8 }
0x1ccb   :  { %v6612_v29 = vcombine.high %v3510_v19, %v3522_v24  ;;  %v6611_v34 = vcombine.low %v3510_v19, %v3522_v24  ;;  %v3319_v24 = vld [vmem:[#allocation52 + $0x4b0] sm:$0xff] }
0x1ccc   :  { %5650 = vmatpush1.bf16.msra.mxu1 %v6417_v31  ;;  %v3545_v31 = vld [vmem:[#allocation52 + $0xbc0] sm:$0xff] }
0x1ccd   :  { %5691 = vmatpush1.bf16.msra.mxu0 %v6419_v32  ;;  %5651 = vmatprep.subr.bf16.mxu1 %v6442_v33  ;;  %v3534_v32 = vld [vmem:[#allocation52 + $0xb68] sm:$0xff]  ;;  %v6634_v2 = vcombine.high %v3533_v30, %v3545_v31 }
0x1cce   :  { %5692 = vmatprep.subr.bf16.mxu0 %v6444_v13  ;;  %v3546_v33 = vld [vmem:[#allocation52 + $0xbc8] sm:$0xff]  ;;  %v6609_v13 = vcombine.low %v3509_v17, %v3521_v18 }
0x1ccf   :  { %v6636_v14 = vcombine.high %v3534_v32, %v3546_v33  ;;  %v6635_v21 = vcombine.low %v3534_v32, %v3546_v33  ;;  %v3343_v33 = vld [vmem:[#allocation52 + $0x570] sm:$0xff] }
0x1cd0   :  { %5652 = vmatpush1.bf16.msra.mxu1 %v6441_v37  ;;  %v3187_v37 = vld [vmem:[#allocation52 + $0x90] sm:$0xff] }
0x1cd1   :  { %5693 = vmatpush1.bf16.msra.mxu0 %v6443_v42  ;;  %5653 = vmatprep.subr.bf16.mxu1 %v6466_v40  ;;  %v3176_v42 = vld [vmem:[#allocation52 + $0x38] sm:$0xff]  ;;  %v6278_v43 = vcombine.high %v3175_v35, %v3187_v37 }
0x1cd2   :  { %5694 = vmatprep.subr.bf16.mxu0 %v6468_v20  ;;  %v3188_v40 = vld [vmem:[#allocation52 + $0x98] sm:$0xff]  ;;  %v6633_v20 = vcombine.low %v3533_v30, %v3545_v31 }
0x1cd3   :  { %v6280_v44 = vcombine.high %v3176_v42, %v3188_v40  ;;  %v6279_v51 = vcombine.low %v3176_v42, %v3188_v40  ;;  %v3367_v40 = vld [vmem:[#allocation52 + $0x630] sm:$0xff] }
0x1cd4   :  { %5654 = vmatpush1.bf16.msra.mxu1 %v6465_v46  ;;  %v3211_v46 = vld [vmem:[#allocation52 + $0x150] sm:$0xff] }
0x1cd5   :  { %5695 = vmatpush1.bf16.msra.mxu0 %v6467_v47  ;;  %5655 = vmatprep.subr.bf16.mxu1 %v6490_v48  ;;  %v6277_v47 = vcombine.low %v3175_v35, %v3187_v37  ;;  %v3200_v48 = vld [vmem:[#allocation52 + $0xf8] sm:$0xff]  ;;  %v6302_v15 = vcombine.high %v3199_v45, %v3211_v46 }
0x1cd6   :  { %5696 = vmatprep.subr.bf16.mxu0 %v6492_v50  ;;  %v3212_v50 = vld [vmem:[#allocation52 + $0x158] sm:$0xff] }
0x1cd7   :  { %v6303_v36 = vcombine.low %v3200_v48, %v3212_v50 }
0x1cd8   :  { %5656 = vmatpush1.bf16.msra.mxu1 %v6489_v54  ;;  %v6304_v54 = vcombine.high %v3200_v48, %v3212_v50  ;;  %v3391_v48 = vld [vmem:[#allocation52 + $0x6f0] sm:$0xff] }
0x1cd9   :  { %5697 = vmatpush1.bf16.msra.mxu0 %v6491_v55  ;;  %5657 = vmatprep.subr.bf16.mxu1 %v6514_v56  ;;  %v3224_v55 = vld [vmem:[#allocation52 + $0x1b8] sm:$0xff]  ;;  %v3403_v50 = vld [vmem:[#allocation52 + $0x750] sm:$0xff] }
0x1cda   :  { %5698 = vmatprep.subr.bf16.mxu0 %v6516_v57  ;;  %v3236_v56 = vld [vmem:[#allocation52 + $0x218] sm:$0xff]  ;;  %v6301_v57 = vcombine.low %v3199_v45, %v3211_v46 }
0x1cdb   :  { %v6328_v0 = vcombine.high %v3224_v55, %v3236_v56  ;;  %v6327_v61 = vcombine.low %v3224_v55, %v3236_v56  ;;  %v3415_v56 = vld [vmem:[#allocation52 + $0x7b0] sm:$0xff] }
0x1cdc   :  { %5658 = vmatpush1.bf16.msra.mxu1 %v6513_v59  ;;  %v3259_v59 = vld [vmem:[#allocation52 + $0x2d0] sm:$0xff] }
0x1cdd   :  { %5699 = vmatpush1.bf16.msra.mxu0 %v6515_v60  ;;  %5659 = vmatprep.subr.bf16.mxu1 %v6538_v22  ;;  %v3248_v60 = vld [vmem:[#allocation52 + $0x278] sm:$0xff]  ;;  %v6350_v26 = vcombine.high %v3247_v58, %v3259_v59 }
0x1cde   :  { %5700 = vmatprep.subr.bf16.mxu0 %v6540_v23  ;;  %v3260_v22 = vld [vmem:[#allocation52 + $0x2d8] sm:$0xff]  ;;  %v6325_v23 = vcombine.low %v3223_v52, %v3235_v53 }
0x1cdf   :  { %v6352_v62 = vcombine.high %v3248_v60, %v3260_v22  ;;  %v6351_v7 = vcombine.low %v3248_v60, %v3260_v22  ;;  %v3439_v22 = vld [vmem:[#allocation52 + $0x870] sm:$0xff] }
0x1ce0   :  { %5660 = vmatpush1.bf16.msra.mxu1 %v6537_v1  ;;  %v3283_v1 = vld [vmem:[#allocation52 + $0x390] sm:$0xff] }
0x1ce1   :  { %5701 = vmatpush1.bf16.msra.mxu0 %v6539_v3  ;;  %5661 = vmatprep.subr.bf16.mxu1 %v6562_v4  ;;  %v3272_v3 = vld [vmem:[#allocation52 + $0x338] sm:$0xff]  ;;  %v6374_v8 = vcombine.high %v3271_v63, %v3283_v1 }
0x1ce2   :  { %5702 = vmatprep.subr.bf16.mxu0 %v6564_v5  ;;  %v3284_v4 = vld [vmem:[#allocation52 + $0x398] sm:$0xff]  ;;  %v6349_v5 = vcombine.low %v3247_v58, %v3259_v59 }
0x1ce3   :  { %v6376_v49 = vcombine.high %v3272_v3, %v3284_v4  ;;  %v6375_v17 = vcombine.low %v3272_v3, %v3284_v4  ;;  %v3463_v4 = vld [vmem:[#allocation52 + $0x930] sm:$0xff] }
0x1ce4   :  { %5662 = vmatpush1.bf16.msra.mxu1 %v6561_v10  ;;  %v3307_v10 = vld [vmem:[#allocation52 + $0x450] sm:$0xff] }
0x1ce5   :  { %5703 = vmatpush1.bf16.msra.mxu0 %v6563_v11  ;;  %5663 = vmatprep.subr.bf16.mxu1 %v6586_v12  ;;  %v3296_v11 = vld [vmem:[#allocation52 + $0x3f8] sm:$0xff]  ;;  %v6398_v18 = vcombine.high %v3295_v9, %v3307_v10 }
0x1ce6   :  { %5704 = vmatprep.subr.bf16.mxu0 %v6588_v16  ;;  %v3308_v12 = vld [vmem:[#allocation52 + $0x458] sm:$0xff]  ;;  %v6373_v16 = vcombine.low %v3271_v63, %v3283_v1 }
0x1ce7   :  { %v6400_v19 = vcombine.high %v3296_v11, %v3308_v12  ;;  %v6399_v30 = vcombine.low %v3296_v11, %v3308_v12  ;;  %v3487_v12 = vld [vmem:[#allocation52 + $0x9f0] sm:$0xff] }
0x1ce8   :  { %5664 = vmatpush1.bf16.msra.mxu1 %v6585_v25  ;;  %v3331_v25 = vld [vmem:[#allocation52 + $0x510] sm:$0xff] }
0x1ce9   :  { %5705 = vmatpush1.bf16.msra.mxu0 %v6587_v27  ;;  %5665 = vmatprep.subr.bf16.mxu1 %v6610_v28  ;;  %v3320_v27 = vld [vmem:[#allocation52 + $0x4b8] sm:$0xff]  ;;  %v6422_v31 = vcombine.high %v3319_v24, %v3331_v25 }
0x1cea   :  { %5706 = vmatprep.subr.bf16.mxu0 %v6612_v29  ;;  %v3332_v28 = vld [vmem:[#allocation52 + $0x518] sm:$0xff]  ;;  %v6397_v29 = vcombine.low %v3295_v9, %v3307_v10 }
0x1ceb   :  { %v6424_v32 = vcombine.high %v3320_v27, %v3332_v28  ;;  %v6423_v35 = vcombine.low %v3320_v27, %v3332_v28  ;;  %v3511_v28 = vld [vmem:[#allocation52 + $0xab0] sm:$0xff] }
0x1cec   :  { %5666 = vmatpush1.bf16.msra.mxu1 %v6609_v13  ;;  %v3355_v13 = vld [vmem:[#allocation52 + $0x5d0] sm:$0xff] }
0x1ced   :  { %5707 = vmatpush1.bf16.msra.mxu0 %v6611_v34  ;;  %5667 = vmatprep.subr.bf16.mxu1 %v6634_v2  ;;  %v3344_v34 = vld [vmem:[#allocation52 + $0x578] sm:$0xff]  ;;  %v6446_v37 = vcombine.high %v3343_v33, %v3355_v13 }
0x1cee   :  { %5708 = vmatprep.subr.bf16.mxu0 %v6636_v14  ;;  %v3356_v2 = vld [vmem:[#allocation52 + $0x5d8] sm:$0xff]  ;;  %v6421_v14 = vcombine.low %v3319_v24, %v3331_v25 }
0x1cef   :  { %v6448_v42 = vcombine.high %v3344_v34, %v3356_v2  ;;  %v6447_v45 = vcombine.low %v3344_v34, %v3356_v2  ;;  %v3535_v2 = vld [vmem:[#allocation52 + $0xb70] sm:$0xff] }
0x1cf0   :  { %5668 = vmatpush1.bf16.msra.mxu1 %v6633_v20  ;;  %v3379_v20 = vld [vmem:[#allocation52 + $0x690] sm:$0xff] }
0x1cf1   :  { %5709 = vmatpush1.bf16.msra.mxu0 %v6635_v21  ;;  %5719 = vmatprep.subr.bf16.mxu1 %v6278_v43  ;;  %v3368_v21 = vld [vmem:[#allocation52 + $0x638] sm:$0xff]  ;;  %v6470_v46 = vcombine.high %v3367_v40, %v3379_v20  ;;  %v6469_v52 = vcombine.low %v3367_v40, %v3379_v20 }
0x1cf2   :  { %5760 = vmatprep.subr.bf16.mxu0 %v6280_v44  ;;  %v3380_v43 = vld [vmem:[#allocation52 + $0x698] sm:$0xff]  ;;  %v6445_v44 = vcombine.low %v3343_v33, %v3355_v13 }
0x1cf3   :  { %5670 = vmatmul.mubr.bf16.vlgmr.msra.gmra.mrb[52].mxu1 %v9166_v41  ;;  %v6471_v53 = vcombine.low %v3368_v21, %v3380_v43 }
0x1cf4   :  { %5711 = vmatmul.mubr.bf16.vlgmr.msra.gmra.mrb[44].mxu0 %v9166_v41  ;;  %5720 = vmatpush1.bf16.msra.mxu1 %v6277_v47  ;;  %v6472_v47 = vcombine.high %v3368_v21, %v3380_v43  ;;  %v3177_v43 = vld [vmem:[#allocation52 + $0x40] sm:$0xff] }
0x1cf5   :  { %5751 = vmatprep.mubr.bf16.mxu1 %v9164_v38  ;;  %5761 = vmatpush1.bf16.msra.mxu0 %v6279_v51  ;;  %v3392_v51 = vld [vmem:[#allocation52 + $0x6f8] sm:$0xff] }
0x1cf6   :  { %5792 = vmatprep.mubr.bf16.mxu0 %v9164_v38  ;;  %5721 = vmatprep.subr.bf16.mxu1 %v6302_v15  ;;  %v3404_v15 = vld [vmem:[#allocation52 + $0x758] sm:$0xff] }
0x1cf7   :  { %5762 = vmatprep.subr.bf16.mxu0 %v6304_v54  ;;  %v6494_v54 = vcombine.high %v3391_v48, %v3403_v50  ;;  %v6496_v55 = vcombine.high %v3392_v51, %v3404_v15  ;;  %v6495_v58 = vcombine.low %v3392_v51, %v3404_v15  ;;  %v3201_v15 = vld [vmem:[#allocation52 + $0x100] sm:$0xff] }
0x1cf8   :  { %5722 = vmatpush1.bf16.msra.mxu1 %v6301_v57  ;;  %v3427_v57 = vld [vmem:[#allocation52 + $0x810] sm:$0xff] }
0x1cf9   :  { %5763 = vmatpush1.bf16.msra.mxu0 %v6303_v36  ;;  %5723 = vmatprep.subr.bf16.mxu1 %v6326_v6  ;;  %v3416_v36 = vld [vmem:[#allocation52 + $0x7b8] sm:$0xff]  ;;  %v6518_v59 = vcombine.high %v3415_v56, %v3427_v57 }
0x1cfa   :  { %5764 = vmatprep.subr.bf16.mxu0 %v6328_v0  ;;  %v3428_v6 = vld [vmem:[#allocation52 + $0x818] sm:$0xff]  ;;  %v6493_v0 = vcombine.low %v3391_v48, %v3403_v50 }
0x1cfb   :  { %v6520_v60 = vcombine.high %v3416_v36, %v3428_v6  ;;  %v6519_v63 = vcombine.low %v3416_v36, %v3428_v6  ;;  %v3225_v36 = vld [vmem:[#allocation52 + $0x1c0] sm:$0xff] }
0x1cfc   :  { %5724 = vmatpush1.bf16.msra.mxu1 %v6325_v23  ;;  %v3451_v23 = vld [vmem:[#allocation52 + $0x8d0] sm:$0xff]  ;;  %v3237_v6 = vld [vmem:[#allocation52 + $0x220] sm:$0xff] }
0x1cfd   :  { %5765 = vmatpush1.bf16.msra.mxu0 %v6327_v61  ;;  %5725 = vmatprep.subr.bf16.mxu1 %v6350_v26  ;;  %v3440_v61 = vld [vmem:[#allocation52 + $0x878] sm:$0xff]  ;;  %v6542_v1 = vcombine.high %v3439_v22, %v3451_v23 }
0x1cfe   :  { %5766 = vmatprep.subr.bf16.mxu0 %v6352_v62  ;;  %v3452_v26 = vld [vmem:[#allocation52 + $0x8d8] sm:$0xff]  ;;  %v6517_v62 = vcombine.low %v3415_v56, %v3427_v57 }
0x1cff   :  { %v6544_v3 = vcombine.high %v3440_v61, %v3452_v26  ;;  %v6543_v9 = vcombine.low %v3440_v61, %v3452_v26  ;;  %v3249_v26 = vld [vmem:[#allocation52 + $0x280] sm:$0xff] }
0x1d00   :  { %5726 = vmatpush1.bf16.msra.mxu1 %v6349_v5  ;;  %v3475_v5 = vld [vmem:[#allocation52 + $0x990] sm:$0xff] }
0x1d01   :  { %5767 = vmatpush1.bf16.msra.mxu0 %v6351_v7  ;;  %5727 = vmatprep.subr.bf16.mxu1 %v6374_v8  ;;  %v3464_v7 = vld [vmem:[#allocation52 + $0x938] sm:$0xff]  ;;  %v6566_v10 = vcombine.high %v3463_v4, %v3475_v5 }
0x1d02   :  { %5768 = vmatprep.subr.bf16.mxu0 %v6376_v49  ;;  %v3476_v8 = vld [vmem:[#allocation52 + $0x998] sm:$0xff]  ;;  %v6541_v49 = vcombine.low %v3439_v22, %v3451_v23  ;;  %v6330_v23 = vcombine.high %v3225_v36, %v3237_v6 }
0x1d03   :  { %v6568_v11 = vcombine.high %v3464_v7, %v3476_v8  ;;  %v6567_v24 = vcombine.low %v3464_v7, %v3476_v8  ;;  %v3273_v8 = vld [vmem:[#allocation52 + $0x340] sm:$0xff] }
0x1d04   :  { %5728 = vmatpush1.bf16.msra.mxu1 %v6373_v16  ;;  %v3499_v16 = vld [vmem:[#allocation52 + $0xa50] sm:$0xff] }
0x1d05   :  { %5769 = vmatpush1.bf16.msra.mxu0 %v6375_v17  ;;  %5729 = vmatprep.subr.bf16.mxu1 %v6398_v18  ;;  %v3488_v17 = vld [vmem:[#allocation52 + $0x9f8] sm:$0xff]  ;;  %v6590_v25 = vcombine.high %v3487_v12, %v3499_v16 }
0x1d06   :  { %5770 = vmatprep.subr.bf16.mxu0 %v6400_v19  ;;  %v3500_v18 = vld [vmem:[#allocation52 + $0xa58] sm:$0xff]  ;;  %v6565_v19 = vcombine.low %v3463_v4, %v3475_v5 }
0x1d07   :  { %v6592_v27 = vcombine.high %v3488_v17, %v3500_v18  ;;  %v6591_v33 = vcombine.low %v3488_v17, %v3500_v18  ;;  %v3297_v18 = vld [vmem:[#allocation52 + $0x400] sm:$0xff] }
0x1d08   :  { %5730 = vmatpush1.bf16.msra.mxu1 %v6397_v29  ;;  %v3523_v29 = vld [vmem:[#allocation52 + $0xb10] sm:$0xff] }
0x1d09   :  { %5771 = vmatpush1.bf16.msra.mxu0 %v6399_v30  ;;  %5731 = vmatprep.subr.bf16.mxu1 %v6422_v31  ;;  %v3512_v30 = vld [vmem:[#allocation52 + $0xab8] sm:$0xff]  ;;  %v6614_v13 = vcombine.high %v3511_v28, %v3523_v29 }
0x1d0a   :  { %5772 = vmatprep.subr.bf16.mxu0 %v6424_v32  ;;  %v3524_v31 = vld [vmem:[#allocation52 + $0xb18] sm:$0xff]  ;;  %v6589_v32 = vcombine.low %v3487_v12, %v3499_v16 }
0x1d0b   :  { %v6616_v34 = vcombine.high %v3512_v30, %v3524_v31  ;;  %v6615_v40 = vcombine.low %v3512_v30, %v3524_v31  ;;  %v3321_v31 = vld [vmem:[#allocation52 + $0x4c0] sm:$0xff] }
0x1d0c   :  { %5732 = vmatpush1.bf16.msra.mxu1 %v6421_v14  ;;  %v3547_v14 = vld [vmem:[#allocation52 + $0xbd0] sm:$0xff] }
0x1d0d   :  { %5773 = vmatpush1.bf16.msra.mxu0 %v6423_v35  ;;  %5733 = vmatprep.subr.bf16.mxu1 %v6446_v37  ;;  %v3536_v35 = vld [vmem:[#allocation52 + $0xb78] sm:$0xff]  ;;  %v6638_v20 = vcombine.high %v3535_v2, %v3547_v14 }
0x1d0e   :  { %5774 = vmatprep.subr.bf16.mxu0 %v6448_v42  ;;  %v3548_v37 = vld [vmem:[#allocation52 + $0xbd8] sm:$0xff]  ;;  %v6613_v42 = vcombine.low %v3511_v28, %v3523_v29 }
0x1d0f   :  { %v6640_v21 = vcombine.high %v3536_v35, %v3548_v37  ;;  %v6639_v48 = vcombine.low %v3536_v35, %v3548_v37 }
0x1d10   :  { %5734 = vmatpush1.bf16.msra.mxu1 %v6445_v44  ;;  %v3189_v44 = vld [vmem:[#allocation52 + $0xa0] sm:$0xff] }
0x1d11   :  { %5775 = vmatpush1.bf16.msra.mxu0 %v6447_v45  ;;  %5735 = vmatprep.subr.bf16.mxu1 %v6470_v46  ;;  %v3178_v45 = vld [vmem:[#allocation52 + $0x48] sm:$0xff]  ;;  %v6282_v50 = vcombine.high %v3177_v43, %v3189_v44 }
0x1d12   :  { %5776 = vmatprep.subr.bf16.mxu0 %v6472_v47  ;;  %v3190_v46 = vld [vmem:[#allocation52 + $0xa8] sm:$0xff]  ;;  %v6637_v47 = vcombine.low %v3535_v2, %v3547_v14 }
0x1d13   :  { %v6284_v51 = vcombine.high %v3178_v45, %v3190_v46  ;;  %v6283_v56 = vcombine.low %v3178_v45, %v3190_v46  ;;  %v3358_v45 = vld [vmem:[#allocation52 + $0x5e8] sm:$0xff] }
0x1d14   :  { %5736 = vmatpush1.bf16.msra.mxu1 %v6469_v52  ;;  %v3213_v52 = vld [vmem:[#allocation52 + $0x160] sm:$0xff] }
0x1d15   :  { %5777 = vmatpush1.bf16.msra.mxu0 %v6471_v53  ;;  %5737 = vmatprep.subr.bf16.mxu1 %v6494_v54  ;;  %v6281_v53 = vcombine.low %v3177_v43, %v3189_v44  ;;  %v3202_v54 = vld [vmem:[#allocation52 + $0x108] sm:$0xff]  ;;  %v6306_v57 = vcombine.high %v3201_v15, %v3213_v52 }
0x1d16   :  { %5778 = vmatprep.subr.bf16.mxu0 %v6496_v55  ;;  %v3214_v55 = vld [vmem:[#allocation52 + $0x168] sm:$0xff] }
0x1d17   :  { %v6307_v22 = vcombine.low %v3202_v54, %v3214_v55  ;;  %v3346_v44 = vld [vmem:[#allocation52 + $0x588] sm:$0xff] }
0x1d18   :  { %5738 = vmatpush1.bf16.msra.mxu1 %v6493_v0  ;;  %v6308_v0 = vcombine.high %v3202_v54, %v3214_v55  ;;  %v6452_v55 = vcombine.high %v3346_v44, %v3358_v45 }
0x1d19   :  { %5779 = vmatpush1.bf16.msra.mxu0 %v6495_v58  ;;  %5739 = vmatprep.subr.bf16.mxu1 %v6518_v59  ;;  %v3226_v58 = vld [vmem:[#allocation52 + $0x1c8] sm:$0xff] }
0x1d1a   :  { %5780 = vmatprep.subr.bf16.mxu0 %v6520_v60  ;;  %v3238_v59 = vld [vmem:[#allocation52 + $0x228] sm:$0xff]  ;;  %v6305_v60 = vcombine.low %v3201_v15, %v3213_v52 }
0x1d1b   :  { %v6332_v61 = vcombine.high %v3226_v58, %v3238_v59  ;;  %v6331_v4 = vcombine.low %v3226_v58, %v3238_v59  ;;  %v6451_v58 = vcombine.low %v3346_v44, %v3358_v45  ;;  %v3489_v45 = vld [vmem:[#allocation52 + $0xa00] sm:$0xff] }
0x1d1c   :  { %5740 = vmatpush1.bf16.msra.mxu1 %v6517_v62  ;;  %v3261_v62 = vld [vmem:[#allocation52 + $0x2e0] sm:$0xff] }
0x1d1d   :  { %5781 = vmatpush1.bf16.msra.mxu0 %v6519_v63  ;;  %5741 = vmatprep.subr.bf16.mxu1 %v6542_v1  ;;  %v3250_v63 = vld [vmem:[#allocation52 + $0x288] sm:$0xff]  ;;  %v6354_v5 = vcombine.high %v3249_v26, %v3261_v62 }
0x1d1e   :  { %5782 = vmatprep.subr.bf16.mxu0 %v6544_v3  ;;  %v3262_v1 = vld [vmem:[#allocation52 + $0x2e8] sm:$0xff]  ;;  %v6329_v3 = vcombine.low %v3225_v36, %v3237_v6 }
0x1d1f   :  { %v6356_v7 = vcombine.high %v3250_v63, %v3262_v1  ;;  %v6355_v12 = vcombine.low %v3250_v63, %v3262_v1  ;;  %v3370_v36 = vld [vmem:[#allocation52 + $0x648] sm:$0xff] }
0x1d20   :  { %5742 = vmatpush1.bf16.msra.mxu1 %v6541_v49  ;;  %v3285_v49 = vld [vmem:[#allocation52 + $0x3a0] sm:$0xff]  ;;  %v3382_v6 = vld [vmem:[#allocation52 + $0x6a8] sm:$0xff] }
0x1d21   :  { %5783 = vmatpush1.bf16.msra.mxu0 %v6543_v9  ;;  %5743 = vmatprep.subr.bf16.mxu1 %v6566_v10  ;;  %v3274_v9 = vld [vmem:[#allocation52 + $0x348] sm:$0xff]  ;;  %v6378_v16 = vcombine.high %v3273_v8, %v3285_v49 }
0x1d22   :  { %5784 = vmatprep.subr.bf16.mxu0 %v6568_v11  ;;  %v3286_v10 = vld [vmem:[#allocation52 + $0x3a8] sm:$0xff]  ;;  %v6353_v11 = vcombine.low %v3249_v26, %v3261_v62 }
0x1d23   :  { %v6380_v17 = vcombine.high %v3274_v9, %v3286_v10  ;;  %v6379_v28 = vcombine.low %v3274_v9, %v3286_v10  ;;  %v3394_v26 = vld [vmem:[#allocation52 + $0x708] sm:$0xff]  ;;  %v3429_v9 = vld [vmem:[#allocation52 + $0x820] sm:$0xff] }
0x1d24   :  { %5744 = vmatpush1.bf16.msra.mxu1 %v6565_v19  ;;  %v3309_v19 = vld [vmem:[#allocation52 + $0x460] sm:$0xff]  ;;  %v3406_v62 = vld [vmem:[#allocation52 + $0x768] sm:$0xff] }
0x1d25   :  { %5785 = vmatpush1.bf16.msra.mxu0 %v6567_v24  ;;  %5745 = vmatprep.subr.bf16.mxu1 %v6590_v25  ;;  %v3298_v24 = vld [vmem:[#allocation52 + $0x408] sm:$0xff]  ;;  %v6402_v29 = vcombine.high %v3297_v18, %v3309_v19 }
0x1d26   :  { %5786 = vmatprep.subr.bf16.mxu0 %v6592_v27  ;;  %v3310_v25 = vld [vmem:[#allocation52 + $0x468] sm:$0xff]  ;;  %v6377_v27 = vcombine.low %v3273_v8, %v3285_v49  ;;  %v6500_v8 = vcombine.high %v3394_v26, %v3406_v62  ;;  %v3417_v49 = vld [vmem:[#allocation52 + $0x7c0] sm:$0xff] }
0x1d27   :  { %v6404_v30 = vcombine.high %v3298_v24, %v3310_v25  ;;  %v6403_v2 = vcombine.low %v3298_v24, %v3310_v25  ;;  %v6499_v24 = vcombine.low %v3394_v26, %v3406_v62  ;;  %v6522_v25 = vcombine.high %v3417_v49, %v3429_v9 }
0x1d28   :  { %5746 = vmatpush1.bf16.msra.mxu1 %v6589_v32  ;;  %v3333_v32 = vld [vmem:[#allocation52 + $0x520] sm:$0xff] }
0x1d29   :  { %5787 = vmatpush1.bf16.msra.mxu0 %v6591_v33  ;;  %5747 = vmatprep.subr.bf16.mxu1 %v6614_v13  ;;  %v3322_v33 = vld [vmem:[#allocation52 + $0x4c8] sm:$0xff]  ;;  %v6426_v14 = vcombine.high %v3321_v31, %v3333_v32 }
0x1d2a   :  { %5788 = vmatprep.subr.bf16.mxu0 %v6616_v34  ;;  %v3334_v13 = vld [vmem:[#allocation52 + $0x528] sm:$0xff]  ;;  %v6401_v34 = vcombine.low %v3297_v18, %v3309_v19 }
0x1d2b   :  { %v6427_v15 = vcombine.low %v3322_v33, %v3334_v13 }
0x1d2c   :  { %5748 = vmatpush1.bf16.msra.mxu1 %v6613_v42  ;;  %v6428_v42 = vcombine.high %v3322_v33, %v3334_v13  ;;  %v6521_v33 = vcombine.low %v3417_v49, %v3429_v9 }
0x1d2d   :  { %5789 = vmatpush1.bf16.msra.mxu0 %v6615_v40  ;;  %5749 = vmatprep.subr.bf16.mxu1 %v6638_v20  ;;  %v3345_v40 = vld [vmem:[#allocation52 + $0x580] sm:$0xff] }
0x1d2e   :  { %5790 = vmatprep.subr.bf16.mxu0 %v6640_v21  ;;  %v3357_v20 = vld [vmem:[#allocation52 + $0x5e0] sm:$0xff] }
0x1d2f   :  { %v6450_v52 = vcombine.high %v3345_v40, %v3357_v20 }
0x1d30   :  { %5750 = vmatpush1.bf16.msra.mxu1 %v6637_v47 }
0x1d31   :  { %5791 = vmatpush1.bf16.msra.mxu0 %v6639_v48  ;;  %5801 = vmatprep.subr.bf16.mxu1 %v6282_v50  ;;  %v6425_v48 = vcombine.low %v3321_v31, %v3333_v32  ;;  %v3442_v31 = vld [vmem:[#allocation52 + $0x888] sm:$0xff] }
0x1d32   :  { %5842 = vmatprep.subr.bf16.mxu0 %v6284_v51  ;;  %v3454_v32 = vld [vmem:[#allocation52 + $0x8e8] sm:$0xff] }
0x1d33   :  { %5752 = vmatmul.mubr.bf16.vlgmr.msra.gmra.mrb[56].mxu1 %v9166_v41 }
0x1d34   :  { %5793 = vmatmul.mubr.bf16.vlgmr.msra.gmra.mrb[48].mxu0 %v9166_v41  ;;  %5802 = vmatpush1.bf16.msra.mxu1 %v6281_v53  ;;  %v8461_v53 = vmov 1983009808  }
0x1d35   :  { %5833 = vmatprep.mubr.bf16.mxu1 %v9164_v38  ;;  %5843 = vmatpush1.bf16.msra.mxu0 %v6283_v56  ;;  %v6016_v54 = vunpack.c.l.s4 %v8461_v53  ;;  %v3369_v56 = vld [vmem:[#allocation52 + $0x640] sm:$0xff] }
0x1d36   :  { %5874 = vmatprep.mubr.bf16.mxu0 %v9164_v38  ;;  %5803 = vmatprep.subr.bf16.mxu1 %v6306_v57  ;;  %v3381_v57 = vld [vmem:[#allocation52 + $0x6a0] sm:$0xff] }
0x1d37   :  { %5844 = vmatprep.subr.bf16.mxu0 %v6308_v0  ;;  %v6449_v0 = vcombine.low %v3345_v40, %v3357_v20  ;;  %v6474_v59 = vcombine.high %v3369_v56, %v3381_v57  ;;  %v6473_v63 = vcombine.low %v3369_v56, %v3381_v57  ;;  %v3478_v40 = vld [vmem:[#allocation52 + $0x9a8] sm:$0xff]  ;;  %v3513_v53 = vld [vmem:[#allocation52 + $0xac0] sm:$0xff] }
0x1d38   :  { %5804 = vmatpush1.bf16.msra.mxu1 %v6305_v60  ;;  %v6017_v60 = vunpack.c.0.s8 %v6016_v54  ;;  %v3525_v54 = vld [vmem:[#allocation52 + $0xb20] sm:$0xff]  ;;  %v3526_v56 = vld [vmem:[#allocation52 + $0xb28] sm:$0xff] }
0x1d39   :  { %5845 = vmatpush1.bf16.msra.mxu0 %v6307_v22  ;;  %5805 = vmatprep.subr.bf16.mxu1 %v6330_v23  ;;  %v6476_v22 = vcombine.high %v3370_v36, %v3382_v6  ;;  %v3393_v23 = vld [vmem:[#allocation52 + $0x700] sm:$0xff] }
0x1d3a   :  { %5846 = vmatprep.subr.bf16.mxu0 %v6332_v61  ;;  %v3405_v61 = vld [vmem:[#allocation52 + $0x760] sm:$0xff] }
0x1d3b   :  { %v6497_v18 = vcombine.low %v3393_v23, %v3405_v61 }
0x1d3c   :  { %5806 = vmatpush1.bf16.msra.mxu1 %v6329_v3  ;;  %v6475_v3 = vcombine.low %v3370_v36, %v3382_v6  ;;  %v6618_v6 = vcombine.high %v3513_v53, %v3525_v54 }
0x1d3d   :  { %5847 = vmatpush1.bf16.msra.mxu0 %v6331_v4  ;;  %5807 = vmatprep.subr.bf16.mxu1 %v6354_v5  ;;  %v6498_v4 = vcombine.high %v3393_v23, %v3405_v61  ;;  %v6617_v23 = vcombine.low %v3513_v53, %v3525_v54 }
0x1d3e   :  { %5848 = vmatprep.subr.bf16.mxu0 %v6356_v7  ;;  %v9187_v7 = vsub.s32 %v6017_v60, %v8902_v39  ;;  %v3538_v60 = vld [vmem:[#allocation52 + $0xb88] sm:$0xff] }
0x1d40   :  { %5808 = vmatpush1.bf16.msra.mxu1 %v6353_v11  ;;  %v3418_v11 = vld [vmem:[#allocation52 + $0x7c8] sm:$0xff] }
0x1d41   :  { %5849 = vmatpush1.bf16.msra.mxu0 %v6355_v12  ;;  %5809 = vmatprep.subr.bf16.mxu1 %v6378_v16  ;;  %v3430_v12 = vld [vmem:[#allocation52 + $0x828] sm:$0xff] }
0x1d42   :  { %5850 = vmatprep.subr.bf16.mxu0 %v6380_v17  ;;  %v6524_v39 = vcombine.high %v3418_v11, %v3430_v12 }
0x1d44   :  { %5810 = vmatpush1.bf16.msra.mxu1 %v6377_v27 }
0x1d45   :  { %5851 = vmatpush1.bf16.msra.mxu0 %v6379_v28  ;;  %5811 = vmatprep.subr.bf16.mxu1 %v6402_v29  ;;  %v3441_v28 = vld [vmem:[#allocation52 + $0x880] sm:$0xff] }
0x1d46   :  { %v5507_v35 = vpop.f32.mrb[44].mxu1  ;;  %v5548_v37 = vpop.f32.mrb[36].mxu0  ;;  %5852 = vmatprep.subr.bf16.mxu0 %v6404_v30  ;;  %v3453_v29 = vld [vmem:[#allocation52 + $0x8e0] sm:$0xff] }
0x1d47   :  { %7548 = vtanh.f32 %v5507_v35  ;;  %v5509_v21 = vpop.f32.mrb[45].mxu1  ;;  %v5550_v43 = vpop.f32.mrb[37].mxu0  ;;  %v3465_v35 = vld [vmem:[#allocation52 + $0x940] sm:$0xff]  ;;  %v6545_v20 = vcombine.low %v3441_v28, %v3453_v29 }
0x1d48   :  { %7550 = vtanh.f32 %v5548_v37  ;;  %5812 = vmatpush1.bf16.msra.mxu1 %v6401_v34  ;;  %v5511_v46 = vpop.f32.mrb[46].mxu1  ;;  %v5552_v47 = vpop.f32.mrb[38].mxu0  ;;  %v6523_v34 = vcombine.low %v3418_v11, %v3430_v12  ;;  %v3477_v37 = vld [vmem:[#allocation52 + $0x9a0] sm:$0xff]  ;;  %v3215_v11 = vld [vmem:[#allocation52 + $0x170] sm:$0xff] }
0x1d49   :  { %7552 = vtanh.f32 %v5509_v21  ;;  %5853 = vmatpush1.bf16.msra.mxu0 %v6403_v2  ;;  %v5512_v50 = vpop.f32.mrb[47].mxu1  ;;  %v5553_v51 = vpop.f32.mrb[39].mxu0  ;;  %5813 = vmatprep.subr.bf16.mxu1 %v6426_v14  ;;  %v6546_v2 = vcombine.high %v3441_v28, %v3453_v29  ;;  %v6548_v14 = vcombine.high %v3442_v31, %v3454_v32  ;;  %v6547_v21 = vcombine.low %v3442_v31, %v3454_v32  ;;  %v3501_v46 = vld [vmem:[#allocation52 + $0xa60] sm:$0xff]  ;;  %v3490_v47 = vld [vmem:[#allocation52 + $0xa08] sm:$0xff]  ;;  %v3240_v28 = vld [vmem:[#allocation52 + $0x238] sm:$0xff] }
0x1d4a   :  { %7554 = vtanh.f32 %v5550_v43  ;;  %5854 = vmatprep.subr.bf16.mxu0 %v6428_v42  ;;  %v3466_v42 = vld [vmem:[#allocation52 + $0x948] sm:$0xff]  ;;  %v6570_v43 = vcombine.high %v3465_v35, %v3477_v37  ;;  %v6569_v50 = vcombine.low %v3465_v35, %v3477_v37  ;;  %v6593_v57 = vcombine.low %v3489_v45, %v3501_v46 }
0x1d4b   :  { %v6572_v44 = vcombine.high %v3466_v42, %v3478_v40  ;;  %v6571_v51 = vcombine.low %v3466_v42, %v3478_v40  ;;  %v3275_v40 = vld [vmem:[#allocation52 + $0x350] sm:$0xff] }
0x1d4c   :  { %5814 = vmatpush1.bf16.msra.mxu1 %v6425_v48  ;;  %v3502_v48 = vld [vmem:[#allocation52 + $0xa68] sm:$0xff] }
0x1d4d   :  { %5855 = vmatpush1.bf16.msra.mxu0 %v6427_v15  ;;  %5815 = vmatprep.subr.bf16.mxu1 %v6450_v52  ;;  %v6594_v15 = vcombine.high %v3489_v45, %v3501_v46  ;;  %v6596_v52 = vcombine.high %v3490_v47, %v3502_v48  ;;  %v6595_v36 = vcombine.low %v3490_v47, %v3502_v48  ;;  %v3299_v47 = vld [vmem:[#allocation52 + $0x410] sm:$0xff] }
0x1d4e   :  { %5856 = vmatprep.subr.bf16.mxu0 %v6452_v55  ;;  %v3514_v55 = vld [vmem:[#allocation52 + $0xac8] sm:$0xff]  ;;  %v3311_v48 = vld [vmem:[#allocation52 + $0x470] sm:$0xff] }
0x1d4f   :  { %v6619_v61 = vcombine.low %v3514_v55, %v3526_v56  ;;  %v6406_v53 = vcombine.high %v3299_v47, %v3311_v48 }
0x1d50   :  { %5816 = vmatpush1.bf16.msra.mxu1 %v6449_v0  ;;  %v6620_v0 = vcombine.high %v3514_v55, %v3526_v56  ;;  %v3323_v55 = vld [vmem:[#allocation52 + $0x4d0] sm:$0xff] }
0x1d51   :  { %v7549_v1 = vpop.eup %7548  ;;  %5857 = vmatpush1.bf16.msra.mxu0 %v6451_v58  ;;  %5817 = vmatprep.subr.bf16.mxu1 %v6474_v59  ;;  %v3537_v58 = vld [vmem:[#allocation52 + $0xb80] sm:$0xff]  ;;  %v3335_v56 = vld [vmem:[#allocation52 + $0x530] sm:$0xff] }
0x1d52   :  { %v7551_v5 = vpop.eup %7550  ;;  %5858 = vmatprep.subr.bf16.mxu0 %v6476_v22  ;;  %v3549_v59 = vld [vmem:[#allocation52 + $0xbe0] sm:$0xff]  ;;  %v3550_v22 = vld [vmem:[#allocation52 + $0xbe8] sm:$0xff] }
0x1d53   :  { %v7553_v10 = vpop.eup %7552  ;;  %v6642_v26 = vcombine.high %v3537_v58, %v3549_v59  ;;  %v6644_v62 = vcombine.high %v3538_v60, %v3550_v22 }
0x1d54   :  { %v7555_v16 = vpop.eup %7554  ;;  %v6013_v17 = vcombine.low %v7549_v1, %v7553_v10  ;;  %5818 = vmatpush1.bf16.msra.mxu1 %v6473_v63  ;;  %v3179_v63 = vld [vmem:[#allocation52 + $0x50] sm:$0xff] }
0x1d55   :  { %v6014_v19 = vcombine.low %v7551_v5, %v7555_v16  ;;  %5859 = vmatpush1.bf16.msra.mxu0 %v6475_v3  ;;  %5819 = vmatprep.subr.bf16.mxu1 %v6498_v4  ;;  %v3191_v1 = vld [vmem:[#allocation52 + $0xb0] sm:$0xff]  ;;  %v3180_v3 = vld [vmem:[#allocation52 + $0x58] sm:$0xff]  ;;  %v6641_v5 = vcombine.low %v3537_v58, %v3549_v59  ;;  %v6430_v58 = vcombine.high %v3323_v55, %v3335_v56 }
0x1d56   :  { %v6021_v27 = vrot.slane %v6013_v17, %v9187_v7  ;;  %5860 = vmatprep.subr.bf16.mxu0 %v6500_v8  ;;  %v3192_v4 = vld [vmem:[#allocation52 + $0xb8] sm:$0xff]  ;;  %v6643_v8 = vcombine.low %v3538_v60, %v3550_v22  ;;  %v6286_v49 = vcombine.high %v3179_v63, %v3191_v1  ;;  %v3203_v10 = vld [vmem:[#allocation52 + $0x110] sm:$0xff]  ;;  %v6285_v12 = vcombine.low %v3179_v63, %v3191_v1 }
0x1d57   :  { %v6028_v30 = vrot.slane %v6014_v19, %v9187_v7  ;;  %v6288_v9 = vcombine.high %v3180_v3, %v3192_v4  ;;  %v3204_v16 = vld [vmem:[#allocation52 + $0x118] sm:$0xff]  ;;  %v6310_v19 = vcombine.high %v3203_v10, %v3215_v11  ;;  %v6309_v29 = vcombine.low %v3203_v10, %v3215_v11 }
0x1d58   :  { %5820 = vmatpush1.bf16.msra.mxu1 %v6497_v18  ;;  %v3216_v17 = vld [vmem:[#allocation52 + $0x178] sm:$0xff]  ;;  %v6287_v18 = vcombine.low %v3180_v3, %v3192_v4 }
0x1d59   :  { %v6029_v13 = vcombine.low %v6021_v27, %v6028_v30  ;;  %5861 = vmatpush1.bf16.msra.mxu0 %v6499_v24  ;;  %5821 = vmatprep.subr.bf16.mxu1 %v6522_v25  ;;  %v3227_v24 = vld [vmem:[#allocation52 + $0x1d0] sm:$0xff]  ;;  %v6312_v27 = vcombine.high %v3204_v16, %v3216_v17  ;;  %v6311_v30 = vcombine.low %v3204_v16, %v3216_v17  ;;  %v3348_v63 = vld [vmem:[#allocation52 + $0x598] sm:$0xff] }
0x1d5a   :  { %5862 = vmatprep.subr.bf16.mxu0 %v6524_v39  ;;  %v3239_v25 = vld [vmem:[#allocation52 + $0x230] sm:$0xff]  ;;  %v3228_v39 = vld [vmem:[#allocation52 + $0x1d8] sm:$0xff] }
0x1d5b   :  { %6121 = vst [vmem:[%s8645_s20] sm:$0xff] %v6029_v13  ;;  %v6334_v31 = vcombine.high %v3227_v24, %v3239_v25  ;;  %v6336_v32 = vcombine.high %v3228_v39, %v3240_v28  ;;  %v3263_v13 = vld [vmem:[#allocation52 + $0x2f0] sm:$0xff]  ;;  %v6335_v35 = vcombine.low %v3228_v39, %v3240_v28  ;;  %v3360_v1 = vld [vmem:[#allocation52 + $0x5f8] sm:$0xff] }
0x1d5c   :  { %5822 = vmatpush1.bf16.msra.mxu1 %v6521_v33  ;;  %v3251_v33 = vld [vmem:[#allocation52 + $0x290] sm:$0xff]  ;;  %v6456_v11 = vcombine.high %v3348_v63, %v3360_v1  ;;  %v3372_v17 = vld [vmem:[#allocation52 + $0x658] sm:$0xff] }
0x1d5d   :  { %5863 = vmatpush1.bf16.msra.mxu0 %v6523_v34  ;;  %5823 = vmatprep.subr.bf16.mxu1 %v6546_v2  ;;  %v3252_v34 = vld [vmem:[#allocation52 + $0x298] sm:$0xff]  ;;  %v6358_v37 = vcombine.high %v3251_v33, %v3263_v13  ;;  %v3383_v16 = vld [vmem:[#allocation52 + $0x6b0] sm:$0xff] }
0x1d5e   :  { %5864 = vmatprep.subr.bf16.mxu0 %v6548_v14  ;;  %v3264_v2 = vld [vmem:[#allocation52 + $0x2f8] sm:$0xff]  ;;  %v6333_v14 = vcombine.low %v3227_v24, %v3239_v25  ;;  %v6455_v24 = vcombine.low %v3348_v63, %v3360_v1  ;;  %v3395_v39 = vld [vmem:[#allocation52 + $0x710] sm:$0xff] }
0x1d5f   :  { %v6360_v42 = vcombine.high %v3252_v34, %v3264_v2  ;;  %v3407_v28 = vld [vmem:[#allocation52 + $0x770] sm:$0xff]  ;;  %v3504_v63 = vld [vmem:[#allocation52 + $0xa78] sm:$0xff] }
0x1d60   :  { %5824 = vmatpush1.bf16.msra.mxu1 %v6545_v20  ;;  %v3287_v20 = vld [vmem:[#allocation52 + $0x3b0] sm:$0xff] }
0x1d61   :  { %5865 = vmatpush1.bf16.msra.mxu0 %v6547_v21  ;;  %5825 = vmatprep.subr.bf16.mxu1 %v6570_v43  ;;  %v3276_v21 = vld [vmem:[#allocation52 + $0x358] sm:$0xff]  ;;  %v6382_v45 = vcombine.high %v3275_v40, %v3287_v20 }
0x1d62   :  { %5866 = vmatprep.subr.bf16.mxu0 %v6572_v44  ;;  %v3288_v43 = vld [vmem:[#allocation52 + $0x3b8] sm:$0xff]  ;;  %v6359_v44 = vcombine.low %v3252_v34, %v3264_v2 }
0x1d63   :  { %v6384_v46 = vcombine.high %v3276_v21, %v3288_v43 }
0x1d64   :  { %5826 = vmatpush1.bf16.msra.mxu1 %v6569_v50  ;;  %v3300_v50 = vld [vmem:[#allocation52 + $0x418] sm:$0xff] }
0x1d65   :  { %5867 = vmatpush1.bf16.msra.mxu0 %v6571_v51  ;;  %5827 = vmatprep.subr.bf16.mxu1 %v6594_v15  ;;  %v3312_v51 = vld [vmem:[#allocation52 + $0x478] sm:$0xff]  ;;  %v6381_v15 = vcombine.low %v3275_v40, %v3287_v20 }
0x1d66   :  { %5868 = vmatprep.subr.bf16.mxu0 %v6596_v52  ;;  %v6383_v52 = vcombine.low %v3276_v21, %v3288_v43  ;;  %v6408_v54 = vcombine.high %v3300_v50, %v3312_v51  ;;  %v3432_v40 = vld [vmem:[#allocation52 + $0x838] sm:$0xff]  ;;  %v6501_v43 = vcombine.low %v3395_v39, %v3407_v28 }
0x1d68   :  { %5828 = vmatpush1.bf16.msra.mxu1 %v6593_v57  ;;  %v3324_v57 = vld [vmem:[#allocation52 + $0x4d8] sm:$0xff] }
0x1d69   :  { %5869 = vmatpush1.bf16.msra.mxu0 %v6595_v36  ;;  %5829 = vmatprep.subr.bf16.mxu1 %v6618_v6  ;;  %v3336_v36 = vld [vmem:[#allocation52 + $0x538] sm:$0xff]  ;;  %v6405_v6 = vcombine.low %v3299_v47, %v3311_v48  ;;  %v3443_v48 = vld [vmem:[#allocation52 + $0x890] sm:$0xff] }
0x1d6a   :  { %5870 = vmatprep.subr.bf16.mxu0 %v6620_v0  ;;  %v6407_v0 = vcombine.low %v3300_v50, %v3312_v51  ;;  %v6432_v22 = vcombine.high %v3324_v57, %v3336_v36  ;;  %v3455_v50 = vld [vmem:[#allocation52 + $0x8f0] sm:$0xff] }
0x1d6c   :  { %5830 = vmatpush1.bf16.msra.mxu1 %v6617_v23  ;;  %v3347_v23 = vld [vmem:[#allocation52 + $0x590] sm:$0xff] }
0x1d6d   :  { %5871 = vmatpush1.bf16.msra.mxu0 %v6619_v61  ;;  %5831 = vmatprep.subr.bf16.mxu1 %v6642_v26  ;;  %v3359_v61 = vld [vmem:[#allocation52 + $0x5f0] sm:$0xff] }
0x1d6e   :  { %5872 = vmatprep.subr.bf16.mxu0 %v6644_v62  ;;  %v6454_v10 = vcombine.high %v3347_v23, %v3359_v61 }
0x1d70   :  { %5832 = vmatpush1.bf16.msra.mxu1 %v6641_v5  ;;  %v6429_v5 = vcombine.low %v3323_v55, %v3335_v56  ;;  %v6550_v56 = vcombine.high %v3443_v48, %v3455_v50 }
0x1d71   :  { %5873 = vmatpush1.bf16.msra.mxu0 %v6643_v8  ;;  %5883 = vmatprep.subr.bf16.mxu1 %v6286_v49 }
0x1d72   :  { %5924 = vmatprep.subr.bf16.mxu0 %v6288_v9  ;;  %v6431_v9 = vcombine.low %v3324_v57, %v3336_v36  ;;  %v3467_v36 = vld [vmem:[#allocation52 + $0x950] sm:$0xff] }
0x1d73   :  { %5834 = vmatmul.mubr.bf16.vlgmr.msra.gmra.mrb[60].mxu1 %v9166_v41 }
0x1d74   :  { %5875 = vmatmul.mubr.bf16.vlgmr.msra.gmra.mrb[52].mxu0 %v9166_v41  ;;  %5884 = vmatpush1.bf16.msra.mxu1 %v6285_v12  ;;  %v3371_v12 = vld [vmem:[#allocation52 + $0x650] sm:$0xff] }
0x1d75   :  { %5915 = vmatprep.mubr.bf16.mxu1 %v9164_v38  ;;  %5925 = vmatpush1.bf16.msra.mxu0 %v6287_v18  ;;  %v3384_v18 = vld [vmem:[#allocation52 + $0x6b8] sm:$0xff]  ;;  %v6478_v25 = vcombine.high %v3371_v12, %v3383_v16 }
0x1d76   :  { %5956 = vmatprep.mubr.bf16.mxu0 %v9164_v38  ;;  %5885 = vmatprep.subr.bf16.mxu1 %v6310_v19  ;;  %v6357_v38 = vcombine.low %v3251_v33, %v3263_v13  ;;  %v6453_v19 = vcombine.low %v3347_v23, %v3359_v61  ;;  %v6479_v33 = vcombine.low %v3372_v17, %v3384_v18  ;;  %v3491_v61 = vld [vmem:[#allocation52 + $0xa10] sm:$0xff] }
0x1d77   :  { %5926 = vmatprep.subr.bf16.mxu0 %v6312_v27  ;;  %v6480_v27 = vcombine.high %v3372_v17, %v3384_v18  ;;  %v6502_v13 = vcombine.high %v3395_v39, %v3407_v28  ;;  %v3539_v18 = vld [vmem:[#allocation52 + $0xb90] sm:$0xff] }
0x1d78   :  { %5886 = vmatpush1.bf16.msra.mxu1 %v6309_v29  ;;  %v3396_v29 = vld [vmem:[#allocation52 + $0x718] sm:$0xff] }
0x1d79   :  { %5927 = vmatpush1.bf16.msra.mxu0 %v6311_v30  ;;  %5887 = vmatprep.subr.bf16.mxu1 %v6334_v31  ;;  %v3408_v30 = vld [vmem:[#allocation52 + $0x778] sm:$0xff]  ;;  %v6477_v31 = vcombine.low %v3371_v12, %v3383_v16 }
0x1d7a   :  { %5928 = vmatprep.subr.bf16.mxu0 %v6336_v32  ;;  %v6504_v2 = vcombine.high %v3396_v29, %v3408_v30 }
0x1d7c   :  { %5888 = vmatpush1.bf16.msra.mxu1 %v6333_v14  ;;  %v3419_v14 = vld [vmem:[#allocation52 + $0x7d0] sm:$0xff] }
0x1d7d   :  { %5929 = vmatpush1.bf16.msra.mxu0 %v6335_v35  ;;  %5889 = vmatprep.subr.bf16.mxu1 %v6358_v37  ;;  %v3431_v35 = vld [vmem:[#allocation52 + $0x830] sm:$0xff] }
0x1d7e   :  { %5930 = vmatprep.subr.bf16.mxu0 %v6360_v42  ;;  %v3420_v42 = vld [vmem:[#allocation52 + $0x7d8] sm:$0xff] }
0x1d7f   :  { %v6528_v47 = vcombine.high %v3420_v42, %v3432_v40  ;;  %v6527_v55 = vcombine.low %v3420_v42, %v3432_v40 }
0x1d80   :  { %5890 = vmatpush1.bf16.msra.mxu1 %v6357_v38 }
0x1d81   :  { %5931 = vmatpush1.bf16.msra.mxu0 %v6359_v44  ;;  %5891 = vmatprep.subr.bf16.mxu1 %v6382_v45  ;;  %v6503_v44 = vcombine.low %v3396_v29, %v3408_v30  ;;  %v6526_v45 = vcombine.high %v3419_v14, %v3431_v35 }
0x1d82   :  { %5932 = vmatprep.subr.bf16.mxu0 %v6384_v46 }
0x1d84   :  { %5892 = vmatpush1.bf16.msra.mxu1 %v6381_v15  ;;  %v3444_v15 = vld [vmem:[#allocation52 + $0x898] sm:$0xff] }
0x1d85   :  { %5933 = vmatpush1.bf16.msra.mxu0 %v6383_v52  ;;  %5893 = vmatprep.subr.bf16.mxu1 %v6406_v53  ;;  %v3456_v52 = vld [vmem:[#allocation52 + $0x8f8] sm:$0xff]  ;;  %v6525_v53 = vcombine.low %v3419_v14, %v3431_v35 }
0x1d86   :  { %v5589_v59 = vpop.f32.mrb[48].mxu1  ;;  %v5630_v60 = vpop.f32.mrb[40].mxu0  ;;  %5934 = vmatprep.subr.bf16.mxu0 %v6408_v54  ;;  %v6552_v57 = vcombine.high %v3444_v15, %v3456_v52 }
0x1d87   :  { %7556 = vtanh.f32 %v5589_v59  ;;  %v5591_v26 = vpop.f32.mrb[49].mxu1  ;;  %v5632_v62 = vpop.f32.mrb[41].mxu0  ;;  %v6549_v59 = vcombine.low %v3443_v48, %v3455_v50 }
0x1d88   :  { %7558 = vtanh.f32 %v5630_v60  ;;  %v5593_v3 = vpop.f32.mrb[50].mxu1  ;;  %v5634_v4 = vpop.f32.mrb[42].mxu0  ;;  %5894 = vmatpush1.bf16.msra.mxu1 %v6405_v6  ;;  %v3479_v6 = vld [vmem:[#allocation52 + $0x9b0] sm:$0xff]  ;;  %v6551_v60 = vcombine.low %v3444_v15, %v3456_v52 }
0x1d89   :  { %7560 = vtanh.f32 %v5591_v26  ;;  %5935 = vmatpush1.bf16.msra.mxu0 %v6407_v0  ;;  %v5594_v8 = vpop.f32.mrb[51].mxu1  ;;  %v5635_v49 = vpop.f32.mrb[43].mxu0  ;;  %5895 = vmatprep.subr.bf16.mxu1 %v6430_v58  ;;  %v3468_v0 = vld [vmem:[#allocation52 + $0x958] sm:$0xff]  ;;  %v3503_v26 = vld [vmem:[#allocation52 + $0xa70] sm:$0xff]  ;;  %v6573_v1 = vcombine.low %v3467_v36, %v3479_v6 }
0x1d8a   :  { %7562 = vtanh.f32 %v5632_v62  ;;  %5936 = vmatprep.subr.bf16.mxu0 %v6432_v22  ;;  %v3480_v58 = vld [vmem:[#allocation52 + $0x9b8] sm:$0xff]  ;;  %v6574_v22 = vcombine.high %v3467_v36, %v3479_v6  ;;  %v6598_v4 = vcombine.high %v3491_v61, %v3503_v26  ;;  %v3515_v8 = vld [vmem:[#allocation52 + $0xad0] sm:$0xff] }
0x1d8b   :  { %v6576_v23 = vcombine.high %v3468_v0, %v3480_v58  ;;  %v3492_v62 = vld [vmem:[#allocation52 + $0xa18] sm:$0xff]  ;;  %v6575_v3 = vcombine.low %v3468_v0, %v3480_v58  ;;  %v3527_v49 = vld [vmem:[#allocation52 + $0xb30] sm:$0xff] }
0x1d8c   :  { %5896 = vmatpush1.bf16.msra.mxu1 %v6429_v5  ;;  %v6600_v5 = vcombine.high %v3492_v62, %v3504_v63  ;;  %v6599_v12 = vcombine.low %v3492_v62, %v3504_v63  ;;  %v6622_v16 = vcombine.high %v3515_v8, %v3527_v49 }
0x1d8d   :  { %5937 = vmatpush1.bf16.msra.mxu0 %v6431_v9  ;;  %5897 = vmatprep.subr.bf16.mxu1 %v6454_v10  ;;  %v3516_v9 = vld [vmem:[#allocation52 + $0xad8] sm:$0xff] }
0x1d8e   :  { %5938 = vmatprep.subr.bf16.mxu0 %v6456_v11  ;;  %v3528_v10 = vld [vmem:[#allocation52 + $0xb38] sm:$0xff]  ;;  %v6597_v11 = vcombine.low %v3491_v61, %v3503_v26 }
0x1d8f   :  { %v6624_v17 = vcombine.high %v3516_v9, %v3528_v10  ;;  %v6623_v39 = vcombine.low %v3516_v9, %v3528_v10 }
0x1d90   :  { %5898 = vmatpush1.bf16.msra.mxu1 %v6453_v19  ;;  %v3551_v19 = vld [vmem:[#allocation52 + $0xbf0] sm:$0xff] }
0x1d91   :  { %v7557_v32 = vpop.eup %7556  ;;  %5939 = vmatpush1.bf16.msra.mxu0 %v6455_v24  ;;  %5899 = vmatprep.subr.bf16.mxu1 %v6478_v25  ;;  %v3540_v24 = vld [vmem:[#allocation52 + $0xb98] sm:$0xff]  ;;  %v6646_v28 = vcombine.high %v3539_v18, %v3551_v19  ;;  %v6645_v30 = vcombine.low %v3539_v18, %v3551_v19 }
0x1d92   :  { %v7559_v34 = vpop.eup %7558  ;;  %5940 = vmatprep.subr.bf16.mxu0 %v6480_v27  ;;  %v3552_v25 = vld [vmem:[#allocation52 + $0xbf8] sm:$0xff]  ;;  %v6621_v27 = vcombine.low %v3515_v8, %v3527_v49 }
0x1d93   :  { %v7561_v37 = vpop.eup %7560  ;;  %v6648_v29 = vcombine.high %v3540_v24, %v3552_v25 }
0x1d94   :  { %v7563_v20 = vpop.eup %7562  ;;  %v6030_v21 = vcombine.low %v7557_v32, %v7561_v37  ;;  %5900 = vmatpush1.bf16.msra.mxu1 %v6477_v31  ;;  %v6647_v31 = vcombine.low %v3540_v24, %v3552_v25 }
0x1d95   :  { %v6031_v38 = vcombine.low %v7559_v34, %v7563_v20  ;;  %5941 = vmatpush1.bf16.msra.mxu0 %v6479_v33  ;;  %5901 = vmatprep.subr.bf16.mxu1 %v6502_v13 }
0x1d96   :  { %v6038_v46 = vrot.slane %v6030_v21, %v9187_v7  ;;  %5942 = vmatprep.subr.bf16.mxu0 %v6504_v2 }
0x1d97   :  { %v6045_v51 = vrot.slane %v6031_v38, %v9187_v7 }
0x1d98   :  { %5902 = vmatpush1.bf16.msra.mxu1 %v6501_v43 }
0x1d99   :  { %v6046_v54 = vcombine.low %v6038_v46, %v6045_v51  ;;  %5943 = vmatpush1.bf16.msra.mxu0 %v6503_v44  ;;  %5903 = vmatprep.subr.bf16.mxu1 %v6526_v45 }
0x1d9a   :  { %5944 = vmatprep.subr.bf16.mxu0 %v6528_v47 }
0x1d9b   :  { %6122 = vst [vmem:[%s8645_s20 + $0x8] sm:$0xff] %v6046_v54 }
0x1d9c   :  { %5904 = vmatpush1.bf16.msra.mxu1 %v6525_v53 }
0x1d9d   :  { %5945 = vmatpush1.bf16.msra.mxu0 %v6527_v55  ;;  %5905 = vmatprep.subr.bf16.mxu1 %v6550_v56 }
0x1d9e   :  { %5946 = vmatprep.subr.bf16.mxu0 %v6552_v57 }
0x1da0   :  { %5906 = vmatpush1.bf16.msra.mxu1 %v6549_v59 }
0x1da1   :  { %5947 = vmatpush1.bf16.msra.mxu0 %v6551_v60  ;;  %5907 = vmatprep.subr.bf16.mxu1 %v6574_v22 }
0x1da2   :  { %5948 = vmatprep.subr.bf16.mxu0 %v6576_v23 }
0x1da4   :  { %5908 = vmatpush1.bf16.msra.mxu1 %v6573_v1 }
0x1da5   :  { %5949 = vmatpush1.bf16.msra.mxu0 %v6575_v3  ;;  %5909 = vmatprep.subr.bf16.mxu1 %v6598_v4 }
0x1da6   :  { %5950 = vmatprep.subr.bf16.mxu0 %v6600_v5 }
0x1da8   :  { %5910 = vmatpush1.bf16.msra.mxu1 %v6597_v11 }
0x1da9   :  { %5951 = vmatpush1.bf16.msra.mxu0 %v6599_v12  ;;  %5911 = vmatprep.subr.bf16.mxu1 %v6622_v16 }
0x1daa   :  { %5952 = vmatprep.subr.bf16.mxu0 %v6624_v17 }
0x1dac   :  { %5912 = vmatpush1.bf16.msra.mxu1 %v6621_v27 }
0x1dad   :  { %5953 = vmatpush1.bf16.msra.mxu0 %v6623_v39  ;;  %5913 = vmatprep.subr.bf16.mxu1 %v6646_v28 }
0x1dae   :  { %5954 = vmatprep.subr.bf16.mxu0 %v6648_v29 }
0x1db0   :  { %5914 = vmatpush1.bf16.msra.mxu1 %v6645_v30 }
0x1db1   :  { %5955 = vmatpush1.bf16.msra.mxu0 %v6647_v31 }
0x1db3   :  { %5916 = vmatmul.mubr.bf16.vlgmr.msra.gmra.mrb[64].mxu1 %v9166_v41 }
0x1db4   :  { %5957 = vmatmul.mubr.bf16.vlgmr.msra.gmra.mrb[56].mxu0 %v9166_v41 }
0x1dc6   :  { %v5671_v32 = vpop.f32.mrb[52].mxu1 }
0x1dc7   :  { %7564 = vtanh.f32 %v5671_v32  ;;  %v5712_v33 = vpop.f32.mrb[44].mxu0  ;;  %v5673_v13 = vpop.f32.mrb[53].mxu1 }
0x1dc8   :  { %7566 = vtanh.f32 %v5712_v33  ;;  %v5714_v34 = vpop.f32.mrb[45].mxu0  ;;  %v5675_v2 = vpop.f32.mrb[54].mxu1 }
0x1dc9   :  { %7568 = vtanh.f32 %v5673_v13  ;;  %v5716_v14 = vpop.f32.mrb[46].mxu0  ;;  %v5676_v35 = vpop.f32.mrb[55].mxu1 }
0x1dca   :  { %7570 = vtanh.f32 %v5714_v34  ;;  %v5717_v37 = vpop.f32.mrb[47].mxu0 }
0x1dd1   :  { %v7565_v42 = vpop.eup %7564 }
0x1dd2   :  { %v7567_v40 = vpop.eup %7566 }
0x1dd3   :  { %v7569_v20 = vpop.eup %7568 }
0x1dd4   :  { %v7571_v21 = vpop.eup %7570  ;;  %v6047_v43 = vcombine.low %v7565_v42, %v7569_v20 }
0x1dd5   :  { %v6048_v38 = vcombine.low %v7567_v40, %v7571_v21 }
0x1dd6   :  { %v6055_v41 = vrot.slane %v6047_v43, %v9187_v7 }
0x1dd7   :  { %v6062_v44 = vrot.slane %v6048_v38, %v9187_v7 }
0x1dd9   :  { %v6063_v45 = vcombine.low %v6055_v41, %v6062_v44 }
0x1ddb   :  { %6123 = vst [vmem:[%s8645_s20 + $0x10] sm:$0xff] %v6063_v45 }
0x1e06   :  { %v5753_v46 = vpop.f32.mrb[56].mxu1 }
0x1e07   :  { %7572 = vtanh.f32 %v5753_v46  ;;  %v5794_v47 = vpop.f32.mrb[48].mxu0  ;;  %v5755_v48 = vpop.f32.mrb[57].mxu1 }
0x1e08   :  { %7574 = vtanh.f32 %v5794_v47  ;;  %v5796_v50 = vpop.f32.mrb[49].mxu0  ;;  %v5757_v51 = vpop.f32.mrb[58].mxu1 }
0x1e09   :  { %7576 = vtanh.f32 %v5755_v48  ;;  %v5798_v15 = vpop.f32.mrb[50].mxu0  ;;  %v5758_v52 = vpop.f32.mrb[59].mxu1 }
0x1e0a   :  { %7578 = vtanh.f32 %v5796_v50  ;;  %v5799_v53 = vpop.f32.mrb[51].mxu0 }
0x1e11   :  { %v7573_v54 = vpop.eup %7572 }
0x1e12   :  { %v7575_v55 = vpop.eup %7574 }
0x1e13   :  { %v7577_v56 = vpop.eup %7576 }
0x1e14   :  { %v7579_v57 = vpop.eup %7578  ;;  %v6064_v36 = vcombine.low %v7573_v54, %v7577_v56 }
0x1e15   :  { %v6065_v6 = vcombine.low %v7575_v55, %v7579_v57 }
0x1e16   :  { %v6072_v0 = vrot.slane %v6064_v36, %v9187_v7 }
0x1e17   :  { %v6079_v58 = vrot.slane %v6065_v6, %v9187_v7 }
0x1e19   :  { %v6080_v59 = vcombine.low %v6072_v0, %v6079_v58 }
0x1e1b   :  { %6124 = vst [vmem:[%s8645_s20 + $0x18] sm:$0xff] %v6080_v59 }
0x1e46   :  { %v5835_v60 = vpop.f32.mrb[60].mxu1 }
0x1e47   :  { %7580 = vtanh.f32 %v5835_v60  ;;  %v5876_v22 = vpop.f32.mrb[52].mxu0  ;;  %v5837_v23 = vpop.f32.mrb[61].mxu1 }
0x1e48   :  { %7582 = vtanh.f32 %v5876_v22  ;;  %v5878_v61 = vpop.f32.mrb[53].mxu0  ;;  %v5839_v26 = vpop.f32.mrb[62].mxu1 }
0x1e49   :  { %7584 = vtanh.f32 %v5837_v23  ;;  %v5880_v62 = vpop.f32.mrb[54].mxu0  ;;  %v5840_v63 = vpop.f32.mrb[63].mxu1 }
0x1e4a   :  { %7586 = vtanh.f32 %v5878_v61  ;;  %v5881_v1 = vpop.f32.mrb[55].mxu0 }
0x1e51   :  { %v7581_v3 = vpop.eup %7580 }
0x1e52   :  { %v7583_v4 = vpop.eup %7582 }
0x1e53   :  { %v7585_v5 = vpop.eup %7584 }
0x1e54   :  { %v7587_v8 = vpop.eup %7586  ;;  %v6081_v49 = vcombine.low %v7581_v3, %v7585_v5 }
0x1e55   :  { %v6082_v9 = vcombine.low %v7583_v4, %v7587_v8 }
0x1e56   :  { %v6089_v10 = vrot.slane %v6081_v49, %v9187_v7 }
0x1e57   :  { %v6096_v11 = vrot.slane %v6082_v9, %v9187_v7 }
0x1e59   :  { %v6097_v12 = vcombine.low %v6089_v10, %v6096_v11 }
0x1e5b   :  { %6125 = vst [vmem:[%s8645_s20 + $0x20] sm:$0xff] %v6097_v12 }
0x1e86   :  { %v5917_v16 = vpop.f32.mrb[64].mxu1 }
0x1e87   :  { %7588 = vtanh.f32 %v5917_v16  ;;  %v5958_v17 = vpop.f32.mrb[56].mxu0  ;;  %v5919_v18 = vpop.f32.mrb[65].mxu1 }
0x1e88   :  { %7590 = vtanh.f32 %v5958_v17  ;;  %v5960_v19 = vpop.f32.mrb[57].mxu0  ;;  %v5921_v24 = vpop.f32.mrb[66].mxu1 }
0x1e89   :  { %7592 = vtanh.f32 %v5919_v18  ;;  %v5962_v25 = vpop.f32.mrb[58].mxu0  ;;  %v5922_v27 = vpop.f32.mrb[67].mxu1 }
0x1e8a   :  { %7594 = vtanh.f32 %v5960_v19  ;;  %v5963_v39 = vpop.f32.mrb[59].mxu0 }
0x1e91   :  { %v7589_v28 = vpop.eup %7588 }
0x1e92   :  { %v7591_v29 = vpop.eup %7590 }
0x1e93   :  { %v7593_v30 = vpop.eup %7592 }
0x1e94   :  { %v7595_v31 = vpop.eup %7594  ;;  %v6098_v32 = vcombine.low %v7589_v28, %v7593_v30 }
0x1e95   :  { %v6099_v33 = vcombine.low %v7591_v29, %v7595_v31 }
0x1e96   :  { %v6106_v13 = vrot.slane %v6098_v32, %v9187_v7 }
0x1e97   :  { %v6113_v34 = vrot.slane %v6099_v33, %v9187_v7 }
0x1e99   :  { %v6114_v2 = vcombine.low %v6106_v13, %v6113_v34 }
0x1e9b   :  { %6126 = vst [vmem:[%s8645_s20 + $0x28] sm:$0xff] %v6114_v2 }
0x1e9c   :  { %6131 = vsyncpa [#allocation3], 1 }
0x1e9d   :  { %6132 = vsyncpa [#allocation5], 1 }
0x1e9e   :  { %6133 = vsyncpa [#allocation8], 1 }
0x1e9f   :  { %6134 = vsyncpa [#allocation11], 1 }
0x1ea0   :  { %6135 = vsyncpa [#allocation14], 1 }
0x1ea1   :  { %6136 = vsyncpa [#allocation17], 1 }
0x1ea2   :  { %6137 = vsyncpa [#allocation20], 1 }
0x1ea3   :  { %6138 = vsyncpa [#allocation23], 1 }
0x1ea4   :  { %6139 = vsyncpa [#allocation26], 1 }
0x1ea5   :  { %6140 = vsyncpa [#allocation29], 1 }
0x1ea6   :  { %6141 = vsyncpa [#allocation32], 1 }
0x1ea7   :  { %6142 = vsyncpa [#allocation35], 1 }
0x1ea8   :  { %6143 = vsyncpa [#allocation38], 1 }
0x1ea9   :  { %6144 = vsyncpa [#allocation41], 1 }
0x1eaa   :  { %6145 = vsyncpa [#allocation44], 1 }
0x1eab   :  { %6146 = vsyncpa [#allocation47], 1 }
0x1eac   :  { %6147 = vsyncpa [#allocation50], 1 }
0x1ead   :  { %6148 = vsyncpa [#allocation53], 1 }

</bundles_post_ra>
